<compile_context>
chip_gen: v5e
topology: v5e:2x2
jax: 0.10.0
libtpu: 0.0.40
codegen_flags: <defaults>
</compile_context>

<pallas_src>
import functools

import jax
import jax.numpy as jnp
import numpy as np
from jax import lax
from jax.experimental import pallas as pl
from jax.experimental.pallas import tpu as pltpu


def _round_up(n, m):
    return ((n + m - 1) // m) * m


def _hidden_map_ctrnn_kernel(
        x_ref, ctx0_ref,
        wx_ref, bx_ref,
        wctx_ref, bctx_ref,
        wh2o_ref, bh2o_ref,
        gamma_ref, beta_ref,
        seg_ref, seg_t_ref, tile_ref,
        out_ref, ctx_out_ref,
        h0_scr, gh0_scr, i2c_scr, bh0_scr, h1_scr,
        *, seq_len, batch, num_steps, hidden_size, h_pad, hh_pad,
        alpha, eps, compute_dtype):
    H = hidden_size
    HH = H * H
    B = batch
    inv_h = 1.0 / H
    cd = compute_dtype

    # ---- hoist all parameter loads (no per-iteration reloads) ----------------
    wx = wx_ref[...]        # (In, h_pad + C)   fused [input2hidden(pad) | input2context]
    bx = bx_ref[...]        # (1,  h_pad + C)
    wctx = wctx_ref[...]    # (C,  hh_pad + C)  fused [context2hidden_map(pad) | context2context]
    bctx = bctx_ref[...]    # (1,  hh_pad + C)
    seg = seg_ref[...]      # (H*H, H)   segment-sum selector
    seg_t = seg_t_ref[...]  # (H, H*H)   segment-broadcast selector
    gamma = gamma_ref[...]  # (1, H)
    beta = beta_ref[...]    # (1, H)

    # ---- x-only work for ALL timesteps, batched into single MXU pushes -------
    x_all = x_ref[...].astype(cd)                                          # (S*B, In)
    xproj = jnp.dot(x_all, wx, preferred_element_type=jnp.float32) + bx    # (S*B, h_pad+C)
    h0_all = jnp.maximum(xproj[:, :H], 0.0)                                # relu(input2hidden(x))
    h0_scr[...] = h0_all
    i2c_scr[...] = xproj[:, h_pad:]                                        # input2context(x)
    # hidden0*gamma tiled to the flat (H*H) layout; loop-invariant per timestep.
    gh0_scr[...] = jnp.dot((h0_all * gamma).astype(cd), tile_ref[...],
                           preferred_element_type=jnp.float32)             # (S*B, H*H)
    # Entire LN-beta contribution to the bmm collapses to the scalar beta . hidden0.
    bh0_scr[...] = jnp.sum(h0_all * beta, axis=-1, keepdims=True)          # (S*B, 1)

    one_minus_alpha = 1.0 - alpha

    def seq_step(t, context):
        off = pl.multiple_of(t * B, B)
        h0 = h0_scr[pl.ds(off, B), :]       # (B, H)
        gh0 = gh0_scr[pl.ds(off, B), :]     # (B, H*H)
        i2c = i2c_scr[pl.ds(off, B), :]     # (B, C)
        bh0 = bh0_scr[pl.ds(off, B), :]     # (B, 1)

        def inner(_, carry):
            ctx, _h1 = carry
            # Fused context matmul on the OLD context (hidden map | c2c), one push.
            ctxp = jnp.dot(ctx.astype(cd), wctx,
                           preferred_element_type=jnp.float32) + bctx
            hm = ctxp[:, :HH]                                   # (B, H*H) hidden map
            c2c = ctxp[:, hh_pad:]                              # (B, C)

            # CTRNN context update (old context feeds both branches, as in torch).
            ctx_new = jnp.maximum(c2c + i2c, 0.0)
            ctx_upd = ctx * one_minus_alpha + ctx_new * alpha

            # LayerNorm stats: one (2B, H*H)@(H*H, H) push -> mean and E[x^2].
            stats = jnp.dot(jnp.concatenate([hm, hm * hm], axis=0).astype(cd),
                            seg, preferred_element_type=jnp.float32) * inv_h  # (2B, H)
            mean = stats[:B]
            var = jnp.maximum(stats[B:] - mean * mean, 0.0)     # clamp: cancellation guard
            inv = lax.rsqrt(var + eps)                          # EUP
            # Broadcast mean and inv back to (B, H*H) in one push.
            bc = jnp.dot(jnp.concatenate([mean, inv], axis=0).astype(cd),
                         seg_t, preferred_element_type=jnp.float32)           # (2B, H*H)

            # Normalize * (gamma*hidden0 tiled), segment-sum (== bmm), + beta term.
            lhs = (hm - bc[:B]) * bc[B:] * gh0
            h1 = jnp.dot(lhs.astype(cd), seg,
                         preferred_element_type=jnp.float32) + bh0            # (B, H)
            hidden1 = jnp.maximum(h1, 0.0) + h0
            return ctx_upd, hidden1

        context, hidden1 = lax.fori_loop(
            0, num_steps, inner,
            (context, jnp.zeros((B, H), jnp.float32)), unroll=True)
        h1_scr[pl.ds(off, B), :] = hidden1          # VMEM store; h2o deferred
        return context

    ctx_final = lax.fori_loop(0, seq_len, seq_step, ctx0_ref[...])

    # Deferred output projection: one (S*B, H)@(H, O) push for the whole sequence.
    out_ref[...] = jnp.dot(h1_scr[...].astype(cd), wh2o_ref[...],
                           preferred_element_type=jnp.float32) + bh2o_ref[...]
    ctx_out_ref[...] = ctx_final


def hidden_map_rnn_net(x, params, context=None, num_steps=1, alpha=1.0,
                       compute_dtype=jnp.float32):
    """JAX/Pallas equivalent of HiddenMapRNNNet.forward (use_tanh=False, dt=None)."""
    assert num_steps >= 1, "num_steps must be >= 1 (matches torch semantics)"
    S, B, In = x.shape
    C = params['c2c_w'].shape[0]
    H = params['i2h_w'].shape[0]
    O = params['h2o_w'].shape[0]
    HH = H * H
    h_pad = _round_up(H, 128)     # i2c block of the fused x-weight starts lane-aligned
    hh_pad = _round_up(HH, 128)   # c2c block of the fused ctx-weight starts lane-aligned

    if context is None:
        ctx0 = jnp.zeros((B, C), jnp.float32)
    else:
        ctx0 = context.reshape(B, C).astype(jnp.float32)

    f32 = jnp.float32
    # Fused, lane-aligned x-side weights: x @ [i2h.T(pad) | i2c.T].
    wx_h = jnp.zeros((In, h_pad), f32).at[:, :H].set(params['i2h_w'].T.astype(f32))
    wx = jnp.concatenate([wx_h, params['i2c_w'].T.astype(f32)], axis=1)      # (In, h_pad+C)
    bx_h = jnp.zeros((h_pad,), f32).at[:H].set(params['i2h_b'].astype(f32))
    bx = jnp.concatenate([bx_h, params['i2c_b'].astype(f32)]).reshape(1, h_pad + C)
    # Fused, lane-aligned context-side weights: ctx @ [c2hm.T(pad) | c2c.T].
    wc_h = jnp.zeros((C, hh_pad), f32).at[:, :HH].set(params['c2hm_w'].T.astype(f32))
    wctx = jnp.concatenate([wc_h, params['c2c_w'].T.astype(f32)], axis=1)    # (C, hh_pad+C)
    bc_h = jnp.zeros((hh_pad,), f32).at[:HH].set(params['c2hm_b'].astype(f32))
    bctx = jnp.concatenate([bc_h, params['c2c_b'].astype(f32)]).reshape(1, hh_pad + C)

    wh2o = params['h2o_w'].T.astype(f32)                                     # (H, O)
    bh2o = params['h2o_b'].astype(f32).reshape(1, O)
    gamma = params['ln_g'].astype(f32).reshape(1, H)
    beta = params['ln_b'].astype(f32).reshape(1, H)

    # Static 0/1 selector matrices (flat index k = i*H + j):
    #   seg[k, i]    = 1[k//H == i]  -> segment sum / mean
    #   seg_t        = seg.T         -> segment broadcast
    #   tile_m[j, k] = 1[k%H == j]   -> tile hidden0 across rows
    k = np.arange(HH)
    seg = (k[:, None] // H == np.arange(H)[None, :]).astype(np.float32)      # (H*H, H)
    seg_t = np.ascontiguousarray(seg.T)                                      # (H, H*H)
    tile_m = (k[None, :] % H == np.arange(H)[:, None]).astype(np.float32)    # (H, H*H)

    # MXU operand dtype: bf16 halves VMEM/HBM footprint and doubles MXU throughput;
    # selectors are 0/1 so exact in bf16. Accumulation stays f32.
    wx = wx.astype(compute_dtype)
    wctx = wctx.astype(compute_dtype)
    wh2o = wh2o.astype(compute_dtype)
    seg_j = jnp.asarray(seg, compute_dtype)
    seg_t_j = jnp.asarray(seg_t, compute_dtype)
    tile_j = jnp.asarray(tile_m, compute_dtype)

    x2d = x.astype(f32).reshape(S * B, In)

    inputs = (x2d, ctx0, wx, bx, wctx, bctx, wh2o, bh2o,
              gamma, beta, seg_j, seg_t_j, tile_j)

    def full_spec(a):
        nd = a.ndim
        return pl.BlockSpec(a.shape, lambda i, _nd=nd: (0,) * _nd)

    in_specs = [full_spec(a) for a in inputs]
    out_shape = (jax.ShapeDtypeStruct((S * B, O), f32),   # stacked outputs (flat)
                 jax.ShapeDtypeStruct((B, C), f32))       # final context
    out_specs = (pl.BlockSpec((S * B, O), lambda i: (0, 0)),
                 pl.BlockSpec((B, C), lambda i: (0, 0)))
    scratch_shapes = [
        pltpu.VMEM((S * B, H), f32),    # hidden0 for all t
        pltpu.VMEM((S * B, HH), f32),   # (gamma*hidden0) @ tile_m for all t
        pltpu.VMEM((S * B, C), f32),    # input2context(x) for all t
        pltpu.VMEM((S * B, 1), f32),    # beta . hidden0 for all t
        pltpu.VMEM((S * B, H), f32),    # last-inner-step hidden1 for all t
    ]

    kernel = functools.partial(
        _hidden_map_ctrnn_kernel,
        seq_len=S, batch=B, num_steps=num_steps, hidden_size=H,
        h_pad=h_pad, hh_pad=hh_pad, alpha=float(alpha), eps=1e-5,
        compute_dtype=compute_dtype)

    outs_flat, ctx_f = pl.pallas_call(
        kernel,
        out_shape=out_shape,
        grid=(1,),
        in_specs=in_specs,
        out_specs=out_specs,
        scratch_shapes=scratch_shapes,
        compiler_params=pltpu.CompilerParams(
            dimension_semantics=("arbitrary",)),
    )(*inputs)
    return outs_flat.reshape(S, B, O), ctx_f


def reference(x, params, context=None, num_steps=1, alpha=1.0):
    """Pure-JAX reference mirroring HiddenMapCTRNN.forward exactly."""
    S, B, In = x.shape
    C = params['c2c_w'].shape[0]
    H = params['i2h_w'].shape[0]
    ctx = jnp.zeros((B, C), jnp.float32) if context is None else context
    outs = []
    for t in range(S):
        xt = x[t]
        out = None
        for _ in range(num_steps):
            hm = (ctx @ params['c2hm_w'].T + params['c2hm_b']).reshape(B, H, H)
            mean = hm.mean(-1, keepdims=True)
            var = ((hm - mean) ** 2).mean(-1, keepdims=True)
            hm = (hm - mean) / jnp.sqrt(var + 1e-5) * params['ln_g'] + params['ln_b']
            ctx_new = jax.nn.relu(ctx @ params['c2c_w'].T + params['c2c_b']
                                  + xt @ params['i2c_w'].T + params['i2c_b'])
            ctx = ctx * (1 - alpha) + ctx_new * alpha
            h0 = jax.nn.relu(xt @ params['i2h_w'].T + params['i2h_b'])
            h1 = jnp.einsum('bij,bj->bi', hm, h0)
            h1 = jax.nn.relu(h1) + h0
            out = h1 @ params['h2o_w'].T + params['h2o_b']
        outs.append(out)
    return jnp.stack(outs, 0), ctx


if __name__ == "__main__":
    # Small shapes consistent with the module's forward.
    In, C, H, O = 8, 16, 32, 8      # input, context, hidden, output sizes
    S, B = 8, 8                     # sequence length, batch (multiple of 8 sublanes)
    num_steps = 2

    key = jax.random.PRNGKey(0)
    keys = jax.random.split(key, 12)

    def rnd(k, shape, scale=0.1):
        return (scale * jax.random.normal(k, shape)).astype(jnp.float32)

    params = {
        'c2c_w': rnd(keys[0], (C, C)),
        'c2c_b': rnd(keys[1], (C,)),
        'i2c_w': rnd(keys[2], (C, In)),
        'i2c_b': rnd(keys[3], (C,)),
        'i2h_w': rnd(keys[4], (H, In)),
        'i2h_b': rnd(keys[5], (H,)),
        'h2o_w': rnd(keys[6], (O, H)),
        'h2o_b': rnd(keys[7], (O,)),
        'c2hm_w': rnd(keys[8], (H * H, C)),
        'c2hm_b': rnd(keys[9], (H * H,)),
        'ln_g': jnp.ones((H,), jnp.float32),
        'ln_b': jnp.zeros((H,), jnp.float32),
    }
    x = rnd(keys[10], (S, B, In), scale=1.0)

    ref_outs, ref_ctx = reference(x, params, num_steps=num_steps, alpha=1.0)

    # ---- f32 MXU operands: numerically faithful, tight tolerance -------------
    outs, ctx_f = hidden_map_rnn_net(x, params, num_steps=num_steps, alpha=1.0,
                                     compute_dtype=jnp.float32)
    outs = jax.block_until_ready(outs)
    assert outs.shape == (S, B, O)
    assert ctx_f.shape == (B, C)
    assert np.allclose(np.asarray(outs), np.asarray(ref_outs), atol=2e-3, rtol=2e-3)
    assert np.allclose(np.asarray(ctx_f), np.asarray(ref_ctx), atol=2e-3, rtol=2e-3)

    # ---- bf16 MXU operands (f32 accumulation): performance path --------------
    # bf16 rounding of weights/activations gives ~1% relative error; generous bound.
    outs_bf, ctx_bf = hidden_map_rnn_net(x, params, num_steps=num_steps, alpha=1.0,
                                         compute_dtype=jnp.bfloat16)
    outs_bf = jax.block_until_ready(outs_bf)
    assert np.allclose(np.asarray(outs_bf), np.asarray(ref_outs), atol=5e-2, rtol=5e-2)
    assert np.allclose(np.asarray(ctx_bf), np.asarray(ref_ctx), atol=5e-2, rtol=5e-2)

    print("KERNEL_OK")
</pallas_src>

<mosaic_0001>
module attributes {stable_mosaic.version = 11 : i64} {
  func.func @_hidden_map_ctrnn_kernel(%arg0: i32, %arg1: memref<64x8xf32, #tpu.memory_space<vmem>>, %arg2: memref<8x16xf32, #tpu.memory_space<vmem>>, %arg3: memref<8x144xf32, #tpu.memory_space<vmem>>, %arg4: memref<1x144xf32, #tpu.memory_space<vmem>>, %arg5: memref<16x1040xf32, #tpu.memory_space<vmem>>, %arg6: memref<1x1040xf32, #tpu.memory_space<vmem>>, %arg7: memref<32x8xf32, #tpu.memory_space<vmem>>, %arg8: memref<1x8xf32, #tpu.memory_space<vmem>>, %arg9: memref<1x32xf32, #tpu.memory_space<vmem>>, %arg10: memref<1x32xf32, #tpu.memory_space<vmem>>, %arg11: memref<1024x32xf32, #tpu.memory_space<vmem>>, %arg12: memref<32x1024xf32, #tpu.memory_space<vmem>>, %arg13: memref<32x1024xf32, #tpu.memory_space<vmem>>, %arg14: memref<64x8xf32, #tpu.memory_space<vmem>>, %arg15: memref<8x16xf32, #tpu.memory_space<vmem>>, %arg16: memref<64x32xf32, #tpu.memory_space<vmem>>, %arg17: memref<64x1024xf32, #tpu.memory_space<vmem>>, %arg18: memref<64x16xf32, #tpu.memory_space<vmem>>, %arg19: memref<64x1xf32, #tpu.memory_space<vmem>>, %arg20: memref<64x32xf32, #tpu.memory_space<vmem>>) attributes {dimension_semantics = [#tpu.dimension_semantics<arbitrary>], iteration_bounds = array<i64: 1>, scalar_prefetch = 0 : i64, scratch_operands = 5 : i64, tpu.core_type = #tpu.core_type<tc>, window_params = [{pipeline_mode = #tpu.pipeline_mode<synchronous>, transform_indices = @transform_0, window_bounds = array<i64: 64, 8>}, {pipeline_mode = #tpu.pipeline_mode<synchronous>, transform_indices = @transform_1, window_bounds = array<i64: 8, 16>}, {pipeline_mode = #tpu.pipeline_mode<synchronous>, transform_indices = @transform_2, window_bounds = array<i64: 8, 144>}, {pipeline_mode = #tpu.pipeline_mode<synchronous>, transform_indices = @transform_3, window_bounds = array<i64: 1, 144>}, {pipeline_mode = #tpu.pipeline_mode<synchronous>, transform_indices = @transform_4, window_bounds = array<i64: 16, 1040>}, {pipeline_mode = #tpu.pipeline_mode<synchronous>, transform_indices = @transform_5, window_bounds = array<i64: 1, 1040>}, {pipeline_mode = #tpu.pipeline_mode<synchronous>, transform_indices = @transform_6, window_bounds = array<i64: 32, 8>}, {pipeline_mode = #tpu.pipeline_mode<synchronous>, transform_indices = @transform_7, window_bounds = array<i64: 1, 8>}, {pipeline_mode = #tpu.pipeline_mode<synchronous>, transform_indices = @transform_8, window_bounds = array<i64: 1, 32>}, {pipeline_mode = #tpu.pipeline_mode<synchronous>, transform_indices = @transform_9, window_bounds = array<i64: 1, 32>}, {pipeline_mode = #tpu.pipeline_mode<synchronous>, transform_indices = @transform_10, window_bounds = array<i64: 1024, 32>}, {pipeline_mode = #tpu.pipeline_mode<synchronous>, transform_indices = @transform_11, window_bounds = array<i64: 32, 1024>}, {pipeline_mode = #tpu.pipeline_mode<synchronous>, transform_indices = @transform_12, window_bounds = array<i64: 32, 1024>}, {pipeline_mode = #tpu.pipeline_mode<synchronous>, transform_indices = @transform_13, window_bounds = array<i64: 64, 8>}, {pipeline_mode = #tpu.pipeline_mode<synchronous>, transform_indices = @transform_14, window_bounds = array<i64: 8, 16>}]} {
    %c0 = arith.constant 0 : index
    %c0_0 = arith.constant 0 : index
    %0 = vector.load %arg3[%c0, %c0_0] : memref<8x144xf32, #tpu.memory_space<vmem>>, vector<8x144xf32>
    %c0_1 = arith.constant 0 : index
    %c0_2 = arith.constant 0 : index
    %1 = vector.load %arg4[%c0_1, %c0_2] : memref<1x144xf32, #tpu.memory_space<vmem>>, vector<1x144xf32>
    %c0_3 = arith.constant 0 : index
    %c0_4 = arith.constant 0 : index
    %2 = vector.load %arg5[%c0_3, %c0_4] : memref<16x1040xf32, #tpu.memory_space<vmem>>, vector<16x1040xf32>
    %c0_5 = arith.constant 0 : index
    %c0_6 = arith.constant 0 : index
    %3 = vector.load %arg6[%c0_5, %c0_6] : memref<1x1040xf32, #tpu.memory_space<vmem>>, vector<1x1040xf32>
    %c0_7 = arith.constant 0 : index
    %c0_8 = arith.constant 0 : index
    %4 = vector.load %arg11[%c0_7, %c0_8] : memref<1024x32xf32, #tpu.memory_space<vmem>>, vector<1024x32xf32>
    %c0_9 = arith.constant 0 : index
    %c0_10 = arith.constant 0 : index
    %5 = vector.load %arg12[%c0_9, %c0_10] : memref<32x1024xf32, #tpu.memory_space<vmem>>, vector<32x1024xf32>
    %c0_11 = arith.constant 0 : index
    %c0_12 = arith.constant 0 : index
    %6 = vector.load %arg9[%c0_11, %c0_12] : memref<1x32xf32, #tpu.memory_space<vmem>>, vector<1x32xf32>
    %c0_13 = arith.constant 0 : index
    %c0_14 = arith.constant 0 : index
    %7 = vector.load %arg10[%c0_13, %c0_14] : memref<1x32xf32, #tpu.memory_space<vmem>>, vector<1x32xf32>
    %c0_15 = arith.constant 0 : index
    %c0_16 = arith.constant 0 : index
    %8 = vector.load %arg1[%c0_15, %c0_16] : memref<64x8xf32, #tpu.memory_space<vmem>>, vector<64x8xf32>
    %cst = arith.constant dense<0.000000e+00> : vector<64x144xf32>
    %9 = tpu.matmul %8, %0, %cst {dimension_numbers = #tpu.dot_dimension_numbers<[1], [0], [0], [1], [0, 0, 1, 1], [], []>} : vector<64x8xf32>, vector<8x144xf32>, vector<64x144xf32> -> vector<64x144xf32>
    %10 = vector.broadcast %1 : vector<1x144xf32> to vector<64x144xf32>
    %11 = arith.addf %9, %10 : vector<64x144xf32>
    %12 = vector.extract_strided_slice %11 {offsets = [0, 0], sizes = [64, 32], strides = [1, 1]} : vector<64x144xf32> to vector<64x32xf32>
    %cst_17 = arith.constant 0.000000e+00 : f32
    %13 = vector.broadcast %cst_17 : f32 to vector<64x32xf32>
    %14 = arith.maximumf %12, %13 : vector<64x32xf32>
    %c0_18 = arith.constant 0 : index
    %c0_19 = arith.constant 0 : index
    %15 = vector.load %arg16[%c0_18, %c0_19] : memref<64x32xf32, #tpu.memory_space<vmem>>, vector<64x32xf32>
    tpu.vector_store %arg16[%c0_18, %c0_19], %14 {strides = array<i32>} : memref<64x32xf32, #tpu.memory_space<vmem>>, vector<64x32xf32>,
    %16 = vector.extract_strided_slice %11 {offsets = [0, 128], sizes = [64, 16], strides = [1, 1]} : vector<64x144xf32> to vector<64x16xf32>
    %c0_20 = arith.constant 0 : index
    %c0_21 = arith.constant 0 : index
    %17 = vector.load %arg18[%c0_20, %c0_21] : memref<64x16xf32, #tpu.memory_space<vmem>>, vector<64x16xf32>
    tpu.vector_store %arg18[%c0_20, %c0_21], %16 {strides = array<i32>} : memref<64x16xf32, #tpu.memory_space<vmem>>, vector<64x16xf32>,
    %18 = vector.broadcast %6 : vector<1x32xf32> to vector<64x32xf32>
    %19 = arith.mulf %14, %18 : vector<64x32xf32>
    %c0_22 = arith.constant 0 : index
    %c0_23 = arith.constant 0 : index
    %20 = vector.load %arg13[%c0_22, %c0_23] : memref<32x1024xf32, #tpu.memory_space<vmem>>, vector<32x1024xf32>
    %cst_24 = arith.constant dense<0.000000e+00> : vector<64x1024xf32>
    %21 = tpu.matmul %19, %20, %cst_24 {dimension_numbers = #tpu.dot_dimension_numbers<[1], [0], [0], [1], [0, 0, 1, 1], [], []>} : vector<64x32xf32>, vector<32x1024xf32>, vector<64x1024xf32> -> vector<64x1024xf32>
    %c0_25 = arith.constant 0 : index
    %c0_26 = arith.constant 0 : index
    %22 = vector.load %arg17[%c0_25, %c0_26] : memref<64x1024xf32, #tpu.memory_space<vmem>>, vector<64x1024xf32>
    tpu.vector_store %arg17[%c0_25, %c0_26], %21 {strides = array<i32>} : memref<64x1024xf32, #tpu.memory_space<vmem>>, vector<64x1024xf32>,
    %23 = vector.broadcast %7 : vector<1x32xf32> to vector<64x32xf32>
    %24 = arith.mulf %14, %23 : vector<64x32xf32>
    %cst_27 = arith.constant dense<0.000000e+00> : vector<64xf32>
    %25 = vector.multi_reduction <add>, %24, %cst_27 [1] : vector<64x32xf32> to vector<64xf32>
    %26 = vector.shape_cast %25 : vector<64xf32> to vector<64x1xf32>
    %c0_28 = arith.constant 0 : index
    %c0_29 = arith.constant 0 : index
    %27 = vector.load %arg19[%c0_28, %c0_29] : memref<64x1xf32, #tpu.memory_space<vmem>>, vector<64x1xf32>
    tpu.vector_store %arg19[%c0_28, %c0_29], %26 {strides = array<i32>} : memref<64x1xf32, #tpu.memory_space<vmem>>, vector<64x1xf32>,
    %c0_30 = arith.constant 0 : index
    %c0_31 = arith.constant 0 : index
    %28 = vector.load %arg2[%c0_30, %c0_31] : memref<8x16xf32, #tpu.memory_space<vmem>>, vector<8x16xf32>
    %c0_i32 = arith.constant 0 : i32
    %c8_i32 = arith.constant 8 : i32
    %29 = arith.addi %c0_i32, %c8_i32 : i32
    %c1_i32 = arith.constant 1 : i32
    %30 = scf.for %arg21 = %c0_i32 to %29 step %c1_i32 iter_args(%arg22 = %28) -> (vector<8x16xf32>)  : i32 {
      %c8_i32_44 = arith.constant 8 : i32
      %39 = arith.muli %arg21, %c8_i32_44 : i32
      %40 = tpu.assume_multiple %39, 8 : i32
      %41 = arith.index_cast %40 : i32 to index
      %c0_45 = arith.constant 0 : index
      %42 = vector.load %arg16[%41, %c0_45] : memref<64x32xf32, #tpu.memory_space<vmem>>, vector<8x32xf32>
      %43 = arith.index_cast %40 : i32 to index
      %c0_46 = arith.constant 0 : index
      %44 = vector.load %arg17[%43, %c0_46] : memref<64x1024xf32, #tpu.memory_space<vmem>>, vector<8x1024xf32>
      %45 = arith.index_cast %40 : i32 to index
      %c0_47 = arith.constant 0 : index
      %46 = vector.load %arg18[%45, %c0_47] : memref<64x16xf32, #tpu.memory_space<vmem>>, vector<8x16xf32>
      %47 = arith.index_cast %40 : i32 to index
      %c0_48 = arith.constant 0 : index
      %48 = vector.load %arg19[%47, %c0_48] : memref<64x1xf32, #tpu.memory_space<vmem>>, vector<8x1xf32>
      %cst_49 = arith.constant 0.000000e+00 : f32
      %49 = vector.broadcast %cst_49 : f32 to vector<8x32xf32>
      %c0_i32_50 = arith.constant 0 : i32
      %cst_51 = arith.constant dense<0.000000e+00> : vector<8x1040xf32>
      %50 = tpu.matmul %arg22, %2, %cst_51 {dimension_numbers = #tpu.dot_dimension_numbers<[1], [0], [0], [1], [0, 0, 1, 1], [], []>} : vector<8x16xf32>, vector<16x1040xf32>, vector<8x1040xf32> -> vector<8x1040xf32>
      %51 = vector.broadcast %3 : vector<1x1040xf32> to vector<8x1040xf32>
      %52 = arith.addf %50, %51 : vector<8x1040xf32>
      %53 = vector.extract_strided_slice %52 {offsets = [0, 0], sizes = [8, 1024], strides = [1, 1]} : vector<8x1040xf32> to vector<8x1024xf32>
      %54 = vector.extract_strided_slice %52 {offsets = [0, 1024], sizes = [8, 16], strides = [1, 1]} : vector<8x1040xf32> to vector<8x16xf32>
      %55 = arith.addf %54, %46 : vector<8x16xf32>
      %cst_52 = arith.constant 0.000000e+00 : f32
      %56 = vector.broadcast %cst_52 : f32 to vector<8x16xf32>
      %57 = arith.maximumf %55, %56 : vector<8x16xf32>
      %cst_53 = arith.constant 0.000000e+00 : f32
      %58 = vector.broadcast %cst_53 : f32 to vector<8x16xf32>
      %59 = arith.mulf %arg22, %58 : vector<8x16xf32>
      %cst_54 = arith.constant 1.000000e+00 : f32
      %60 = vector.broadcast %cst_54 : f32 to vector<8x16xf32>
      %61 = arith.mulf %57, %60 : vector<8x16xf32>
      %62 = arith.addf %59, %61 : vector<8x16xf32>
      %63 = arith.mulf %53, %53 : vector<8x1024xf32>
      %64 = tpu.concatenate %53, %63 in 0 : vector<8x1024xf32>, vector<8x1024xf32> -> vector<16x1024xf32>
      %cst_55 = arith.constant dense<0.000000e+00> : vector<16x32xf32>
      %65 = tpu.matmul %64, %4, %cst_55 {dimension_numbers = #tpu.dot_dimension_numbers<[1], [0], [0], [1], [0, 0, 1, 1], [], []>} : vector<16x1024xf32>, vector<1024x32xf32>, vector<16x32xf32> -> vector<16x32xf32>
      %cst_56 = arith.constant 3.125000e-02 : f32
      %66 = vector.broadcast %cst_56 : f32 to vector<16x32xf32>
      %67 = arith.mulf %65, %66 : vector<16x32xf32>
      %68 = vector.extract_strided_slice %67 {offsets = [0, 0], sizes = [8, 32], strides = [1, 1]} : vector<16x32xf32> to vector<8x32xf32>
      %69 = vector.extract_strided_slice %67 {offsets = [8, 0], sizes = [8, 32], strides = [1, 1]} : vector<16x32xf32> to vector<8x32xf32>
      %70 = arith.mulf %68, %68 : vector<8x32xf32>
      %71 = arith.subf %69, %70 : vector<8x32xf32>
      %cst_57 = arith.constant 0.000000e+00 : f32
      %72 = vector.broadcast %cst_57 : f32 to vector<8x32xf32>
      %73 = arith.maximumf %71, %72 : vector<8x32xf32>
      %cst_58 = arith.constant 9.99999974E-6 : f32
      %74 = vector.broadcast %cst_58 : f32 to vector<8x32xf32>
      %75 = arith.addf %73, %74 : vector<8x32xf32>
      %76 = math.rsqrt %75 : vector<8x32xf32>
      %77 = tpu.concatenate %68, %76 in 0 : vector<8x32xf32>, vector<8x32xf32> -> vector<16x32xf32>
      %cst_59 = arith.constant dense<0.000000e+00> : vector<16x1024xf32>
      %78 = tpu.matmul %77, %5, %cst_59 {dimension_numbers = #tpu.dot_dimension_numbers<[1], [0], [0], [1], [0, 0, 1, 1], [], []>} : vector<16x32xf32>, vector<32x1024xf32>, vector<16x1024xf32> -> vector<16x1024xf32>
      %79 = vector.extract_strided_slice %78 {offsets = [0, 0], sizes = [8, 1024], strides = [1, 1]} : vector<16x1024xf32> to vector<8x1024xf32>
      %80 = arith.subf %53, %79 : vector<8x1024xf32>
      %81 = vector.extract_strided_slice %78 {offsets = [8, 0], sizes = [8, 1024], strides = [1, 1]} : vector<16x1024xf32> to vector<8x1024xf32>
      %82 = arith.mulf %80, %81 : vector<8x1024xf32>
      %83 = arith.mulf %82, %44 : vector<8x1024xf32>
      %cst_60 = arith.constant dense<0.000000e+00> : vector<8x32xf32>
      %84 = tpu.matmul %83, %4, %cst_60 {dimension_numbers = #tpu.dot_dimension_numbers<[1], [0], [0], [1], [0, 0, 1, 1], [], []>} : vector<8x1024xf32>, vector<1024x32xf32>, vector<8x32xf32> -> vector<8x32xf32>
      %85 = vector.broadcast %48 : vector<8x1xf32> to vector<8x32xf32>
      %86 = arith.addf %84, %85 : vector<8x32xf32>
      %cst_61 = arith.constant 0.000000e+00 : f32
      %87 = vector.broadcast %cst_61 : f32 to vector<8x32xf32>
      %88 = arith.maximumf %86, %87 : vector<8x32xf32>
      %89 = arith.addf %88, %42 : vector<8x32xf32>
      %c1_i32_62 = arith.constant 1 : i32
      %cst_63 = arith.constant dense<0.000000e+00> : vector<8x1040xf32>
      %90 = tpu.matmul %62, %2, %cst_63 {dimension_numbers = #tpu.dot_dimension_numbers<[1], [0], [0], [1], [0, 0, 1, 1], [], []>} : vector<8x16xf32>, vector<16x1040xf32>, vector<8x1040xf32> -> vector<8x1040xf32>
      %91 = vector.broadcast %3 : vector<1x1040xf32> to vector<8x1040xf32>
      %92 = arith.addf %90, %91 : vector<8x1040xf32>
      %93 = vector.extract_strided_slice %92 {offsets = [0, 0], sizes = [8, 1024], strides = [1, 1]} : vector<8x1040xf32> to vector<8x1024xf32>
      %94 = vector.extract_strided_slice %92 {offsets = [0, 1024], sizes = [8, 16], strides = [1, 1]} : vector<8x1040xf32> to vector<8x16xf32>
      %95 = arith.addf %94, %46 : vector<8x16xf32>
      %cst_64 = arith.constant 0.000000e+00 : f32
      %96 = vector.broadcast %cst_64 : f32 to vector<8x16xf32>
      %97 = arith.maximumf %95, %96 : vector<8x16xf32>
      %cst_65 = arith.constant 0.000000e+00 : f32
      %98 = vector.broadcast %cst_65 : f32 to vector<8x16xf32>
      %99 = arith.mulf %62, %98 : vector<8x16xf32>
      %cst_66 = arith.constant 1.000000e+00 : f32
      %100 = vector.broadcast %cst_66 : f32 to vector<8x16xf32>
      %101 = arith.mulf %97, %100 : vector<8x16xf32>
      %102 = arith.addf %99, %101 : vector<8x16xf32>
      %103 = arith.mulf %93, %93 : vector<8x1024xf32>
      %104 = tpu.concatenate %93, %103 in 0 : vector<8x1024xf32>, vector<8x1024xf32> -> vector<16x1024xf32>
      %cst_67 = arith.constant dense<0.000000e+00> : vector<16x32xf32>
      %105 = tpu.matmul %104, %4, %cst_67 {dimension_numbers = #tpu.dot_dimension_numbers<[1], [0], [0], [1], [0, 0, 1, 1], [], []>} : vector<16x1024xf32>, vector<1024x32xf32>, vector<16x32xf32> -> vector<16x32xf32>
      %cst_68 = arith.constant 3.125000e-02 : f32
      %106 = vector.broadcast %cst_68 : f32 to vector<16x32xf32>
      %107 = arith.mulf %105, %106 : vector<16x32xf32>
      %108 = vector.extract_strided_slice %107 {offsets = [0, 0], sizes = [8, 32], strides = [1, 1]} : vector<16x32xf32> to vector<8x32xf32>
      %109 = vector.extract_strided_slice %107 {offsets = [8, 0], sizes = [8, 32], strides = [1, 1]} : vector<16x32xf32> to vector<8x32xf32>
      %110 = arith.mulf %108, %108 : vector<8x32xf32>
      %111 = arith.subf %109, %110 : vector<8x32xf32>
      %cst_69 = arith.constant 0.000000e+00 : f32
      %112 = vector.broadcast %cst_69 : f32 to vector<8x32xf32>
      %113 = arith.maximumf %111, %112 : vector<8x32xf32>
      %cst_70 = arith.constant 9.99999974E-6 : f32
      %114 = vector.broadcast %cst_70 : f32 to vector<8x32xf32>
      %115 = arith.addf %113, %114 : vector<8x32xf32>
      %116 = math.rsqrt %115 : vector<8x32xf32>
      %117 = tpu.concatenate %108, %116 in 0 : vector<8x32xf32>, vector<8x32xf32> -> vector<16x32xf32>
      %cst_71 = arith.constant dense<0.000000e+00> : vector<16x1024xf32>
      %118 = tpu.matmul %117, %5, %cst_71 {dimension_numbers = #tpu.dot_dimension_numbers<[1], [0], [0], [1], [0, 0, 1, 1], [], []>} : vector<16x32xf32>, vector<32x1024xf32>, vector<16x1024xf32> -> vector<16x1024xf32>
      %119 = vector.extract_strided_slice %118 {offsets = [0, 0], sizes = [8, 1024], strides = [1, 1]} : vector<16x1024xf32> to vector<8x1024xf32>
      %120 = arith.subf %93, %119 : vector<8x1024xf32>
      %121 = vector.extract_strided_slice %118 {offsets = [8, 0], sizes = [8, 1024], strides = [1, 1]} : vector<16x1024xf32> to vector<8x1024xf32>
      %122 = arith.mulf %120, %121 : vector<8x1024xf32>
      %123 = arith.mulf %122, %44 : vector<8x1024xf32>
      %cst_72 = arith.constant dense<0.000000e+00> : vector<8x32xf32>
      %124 = tpu.matmul %123, %4, %cst_72 {dimension_numbers = #tpu.dot_dimension_numbers<[1], [0], [0], [1], [0, 0, 1, 1], [], []>} : vector<8x1024xf32>, vector<1024x32xf32>, vector<8x32xf32> -> vector<8x32xf32>
      %125 = vector.broadcast %48 : vector<8x1xf32> to vector<8x32xf32>
      %126 = arith.addf %124, %125 : vector<8x32xf32>
      %cst_73 = arith.constant 0.000000e+00 : f32
      %127 = vector.broadcast %cst_73 : f32 to vector<8x32xf32>
      %128 = arith.maximumf %126, %127 : vector<8x32xf32>
      %129 = arith.addf %128, %42 : vector<8x32xf32>
      %130 = arith.index_cast %40 : i32 to index
      %c0_74 = arith.constant 0 : index
      %131 = vector.load %arg20[%130, %c0_74] : memref<64x32xf32, #tpu.memory_space<vmem>>, vector<8x32xf32>
      tpu.vector_store %arg20[%130, %c0_74], %129 {strides = array<i32>} : memref<64x32xf32, #tpu.memory_space<vmem>>, vector<8x32xf32>,
      scf.yield %102 : vector<8x16xf32>
    }
    %c8_i32_32 = arith.constant 8 : i32
    %c0_33 = arith.constant 0 : index
    %c0_34 = arith.constant 0 : index
    %31 = vector.load %arg20[%c0_33, %c0_34] : memref<64x32xf32, #tpu.memory_space<vmem>>, vector<64x32xf32>
    %c0_35 = arith.constant 0 : index
    %c0_36 = arith.constant 0 : index
    %32 = vector.load %arg7[%c0_35, %c0_36] : memref<32x8xf32, #tpu.memory_space<vmem>>, vector<32x8xf32>
    %cst_37 = arith.constant dense<0.000000e+00> : vector<64x8xf32>
    %33 = tpu.matmul %31, %32, %cst_37 {dimension_numbers = #tpu.dot_dimension_numbers<[1], [0], [0], [1], [0, 0, 1, 1], [], []>} : vector<64x32xf32>, vector<32x8xf32>, vector<64x8xf32> -> vector<64x8xf32>
    %c0_38 = arith.constant 0 : index
    %c0_39 = arith.constant 0 : index
    %34 = vector.load %arg8[%c0_38, %c0_39] : memref<1x8xf32, #tpu.memory_space<vmem>>, vector<1x8xf32>
    %35 = vector.broadcast %34 : vector<1x8xf32> to vector<64x8xf32>
    %36 = arith.addf %33, %35 : vector<64x8xf32>
    %c0_40 = arith.constant 0 : index
    %c0_41 = arith.constant 0 : index
    %37 = vector.load %arg14[%c0_40, %c0_41] : memref<64x8xf32, #tpu.memory_space<vmem>>, vector<64x8xf32>
    tpu.vector_store %arg14[%c0_40, %c0_41], %36 {strides = array<i32>} : memref<64x8xf32, #tpu.memory_space<vmem>>, vector<64x8xf32>,
    %c0_42 = arith.constant 0 : index
    %c0_43 = arith.constant 0 : index
    %38 = vector.load %arg15[%c0_42, %c0_43] : memref<8x16xf32, #tpu.memory_space<vmem>>, vector<8x16xf32>
    tpu.vector_store %arg15[%c0_42, %c0_43], %30 {strides = array<i32>} : memref<8x16xf32, #tpu.memory_space<vmem>>, vector<8x16xf32>,
    return
  }
  func.func @transform_0(%arg0: i32) -> (i32, i32) {
    %c0_i32 = arith.constant 0 : i32
    %c0_i32_0 = arith.constant 0 : i32
    %c0_i32_1 = arith.constant 0 : i32
    return %c0_i32, %c0_i32_0 : i32, i32
  }
  func.func @transform_1(%arg0: i32) -> (i32, i32) {
    %c0_i32 = arith.constant 0 : i32
    %c0_i32_0 = arith.constant 0 : i32
    %c0_i32_1 = arith.constant 0 : i32
    return %c0_i32, %c0_i32_0 : i32, i32
  }
  func.func @transform_2(%arg0: i32) -> (i32, i32) {
    %c0_i32 = arith.constant 0 : i32
    %c0_i32_0 = arith.constant 0 : i32
    %c0_i32_1 = arith.constant 0 : i32
    return %c0_i32, %c0_i32_0 : i32, i32
  }
  func.func @transform_3(%arg0: i32) -> (i32, i32) {
    %c0_i32 = arith.constant 0 : i32
    %c0_i32_0 = arith.constant 0 : i32
    %c0_i32_1 = arith.constant 0 : i32
    return %c0_i32, %c0_i32_0 : i32, i32
  }
  func.func @transform_4(%arg0: i32) -> (i32, i32) {
    %c0_i32 = arith.constant 0 : i32
    %c0_i32_0 = arith.constant 0 : i32
    %c0_i32_1 = arith.constant 0 : i32
    return %c0_i32, %c0_i32_0 : i32, i32
  }
  func.func @transform_5(%arg0: i32) -> (i32, i32) {
    %c0_i32 = arith.constant 0 : i32
    %c0_i32_0 = arith.constant 0 : i32
    %c0_i32_1 = arith.constant 0 : i32
    return %c0_i32, %c0_i32_0 : i32, i32
  }
  func.func @transform_6(%arg0: i32) -> (i32, i32) {
    %c0_i32 = arith.constant 0 : i32
    %c0_i32_0 = arith.constant 0 : i32
    %c0_i32_1 = arith.constant 0 : i32
    return %c0_i32, %c0_i32_0 : i32, i32
  }
  func.func @transform_7(%arg0: i32) -> (i32, i32) {
    %c0_i32 = arith.constant 0 : i32
    %c0_i32_0 = arith.constant 0 : i32
    %c0_i32_1 = arith.constant 0 : i32
    return %c0_i32, %c0_i32_0 : i32, i32
  }
  func.func @transform_8(%arg0: i32) -> (i32, i32) {
    %c0_i32 = arith.constant 0 : i32
    %c0_i32_0 = arith.constant 0 : i32
    %c0_i32_1 = arith.constant 0 : i32
    return %c0_i32, %c0_i32_0 : i32, i32
  }
  func.func @transform_9(%arg0: i32) -> (i32, i32) {
    %c0_i32 = arith.constant 0 : i32
    %c0_i32_0 = arith.constant 0 : i32
    %c0_i32_1 = arith.constant 0 : i32
    return %c0_i32, %c0_i32_0 : i32, i32
  }
  func.func @transform_10(%arg0: i32) -> (i32, i32) {
    %c0_i32 = arith.constant 0 : i32
    %c0_i32_0 = arith.constant 0 : i32
    %c0_i32_1 = arith.constant 0 : i32
    return %c0_i32, %c0_i32_0 : i32, i32
  }
  func.func @transform_11(%arg0: i32) -> (i32, i32) {
    %c0_i32 = arith.constant 0 : i32
    %c0_i32_0 = arith.constant 0 : i32
    %c0_i32_1 = arith.constant 0 : i32
    return %c0_i32, %c0_i32_0 : i32, i32
  }
  func.func @transform_12(%arg0: i32) -> (i32, i32) {
    %c0_i32 = arith.constant 0 : i32
    %c0_i32_0 = arith.constant 0 : i32
    %c0_i32_1 = arith.constant 0 : i32
    return %c0_i32, %c0_i32_0 : i32, i32
  }
  func.func @transform_13(%arg0: i32) -> (i32, i32) {
    %c0_i32 = arith.constant 0 : i32
    %c0_i32_0 = arith.constant 0 : i32
    %c0_i32_1 = arith.constant 0 : i32
    return %c0_i32, %c0_i32_0 : i32, i32
  }
  func.func @transform_14(%arg0: i32) -> (i32, i32) {
    %c0_i32 = arith.constant 0 : i32
    %c0_i32_0 = arith.constant 0 : i32
    %c0_i32_1 = arith.constant 0 : i32
    return %c0_i32, %c0_i32_0 : i32, i32
  }
}

</mosaic_0001>

<bundles_post_ra>
// kernel: tpu_custom_call.1
= control target key start
LH: loop header
LB: loop body
LE: loop exit
PB: predicated region body
PF: predicated region fallthrough
CT: control target
= control target key end

     0   :  { %20 = vsyncpa [#allocation8], 0  ;;  %vm245_vm0 = vcmask 64512   ;;  %vm360_vm1 = vcmask 261120   ;;  %vm369_vm2 = vcmask 130048   ;;  %vm872_vm3 = vcmask 7168   ;;  %s3923_s0 = inlined_call_operand.vmem [shape: f32[64,8], index: 0, kind: input, shape index: {}]   ;;  %s3924_s1 = inlined_call_operand.vmem [shape: f32[8,16], index: 1, kind: input, shape index: {}]   ;;  %s3925_s2 = inlined_call_operand.vmem [shape: f32[8,144], index: 2, kind: input, shape index: {}]   ;;  %s3926_s3 = inlined_call_operand.vmem [shape: f32[1,144], index: 3, kind: input, shape index: {}]   ;;  %s3927_s4 = inlined_call_operand.vmem [shape: f32[16,1040], index: 4, kind: input, shape index: {}]   ;;  %s3928_s5 = inlined_call_operand.vmem [shape: f32[1,1040], index: 5, kind: input, shape index: {}]   ;;  %s3929_s6 = inlined_call_operand.vmem [shape: f32[32,8], index: 6, kind: input, shape index: {}]   ;;  %s3930_s7 = inlined_call_operand.vmem [shape: f32[1,8], index: 7, kind: input, shape index: {}]   ;;  %s3931_s8 = inlined_call_operand.vmem [shape: f32[1,32], index: 8, kind: input, shape index: {}]   ;;  %s3932_s9 = inlined_call_operand.vmem [shape: f32[1,32], index: 9, kind: input, shape index: {}]   ;;  %s3933_s10 = inlined_call_operand.vmem [shape: f32[1024,32], index: 10, kind: input, shape index: {}]   ;;  %s3934_s11 = inlined_call_operand.vmem [shape: f32[32,1024], index: 11, kind: input, shape index: {}]   ;;  %s3935_s12 = inlined_call_operand.vmem [shape: f32[32,1024], index: 12, kind: input, shape index: {}]   ;;  %s3936_s13 = inlined_call_operand.vmem [shape: f32[64,8], index: 13, kind: output, shape index: {0}]   ;;  %s3937_s14 = inlined_call_operand.hbm [shape: f32[8,16], index: 14, kind: output, shape index: {1}]  }
   0x1   :  { %v47_v0 = vld [vmem:[%s3925_s2] sm:$0xff]  ;;  %v2147_v2 = vld [vmem:[%s3927_s4 + $0x8] sm:$0xff]  ;;  %v2152_v3 = vld [vmem:[%s3927_s4 + $0x10] sm:$0xff] }
   0x2   :  { %v2142_v1 = vld [vmem:[%s3927_s4] sm:$0xff]  ;;  %4058 = vst [vmem:[#allocation11_spill] sm:$0xff] %v2147_v2  ;;  %v2157_v4 = vld [vmem:[%s3927_s4 + $0x18] sm:$0xff]  ;;  %285 = vmatpush.msra.mxu0 %v47_v0  ;;  %1980 = vmatpush.msra.mxu2 %v47_v0  ;;  %v2167_v6 = vld [vmem:[%s3927_s4 + $0x28] sm:$0xff] }
   0x3   :  { %4057 = vst [vmem:[#allocation10_spill] sm:$0xff] %v2142_v1  ;;  %v2162_v5 = vld [vmem:[%s3927_s4 + $0x20] sm:$0xff]  ;;  %v2172_v7 = vld [vmem:[%s3927_s4 + $0x30] sm:$0xff]  ;;  %v2177_v8 = vld [vmem:[%s3927_s4 + $0x38] sm:$0xff] }
   0x4   :  { %4059 = vst [vmem:[#allocation12_spill] sm:$0xff] %v2152_v3  ;;  %v2182_v9 = vld [vmem:[%s3927_s4 + $0x40] sm:$0xff]  ;;  %v2187_v10 = vld [vmem:[%s3927_s4 + $0x48] sm:$0xff]  ;;  %v2192_v11 = vld [vmem:[%s3927_s4 + $0x50] sm:$0xff] }
   0x5   :  { %4060 = vst [vmem:[#allocation13_spill] sm:$0xff] %v2157_v4  ;;  %v2197_v12 = vld [vmem:[%s3927_s4 + $0x58] sm:$0xff]  ;;  %v2202_v13 = vld [vmem:[%s3927_s4 + $0x60] sm:$0xff]  ;;  %v2207_v14 = vld [vmem:[%s3927_s4 + $0x68] sm:$0xff] }
   0x6   :  { %4061 = vst [vmem:[#allocation14_spill] sm:$0xff] %v2162_v5  ;;  %v2212_v15 = vld [vmem:[%s3927_s4 + $0x70] sm:$0xff]  ;;  %v2217_v16 = vld [vmem:[%s3927_s4 + $0x78] sm:$0xff]  ;;  %v2222_v17 = vld [vmem:[%s3927_s4 + $0x80] sm:$0xff] }
   0x7   :  { %4062 = vst [vmem:[#allocation15_spill] sm:$0xff] %v2167_v6  ;;  %v2227_v18 = vld [vmem:[%s3927_s4 + $0x88] sm:$0xff]  ;;  %v2232_v19 = vld [vmem:[%s3928_s5] sm:$0xff]  ;;  %v2252_v23 = vld [vmem:[%s3933_s10 + $0x10] sm:$0xff] }
   0x8   :  { %4063 = vst [vmem:[#allocation16_spill] sm:$0xff] %v2172_v7  ;;  %v2237_v20 = vld [vmem:[%s3928_s5 + $0x8] sm:$0x1]  ;;  %v2242_v21 = vld [vmem:[%s3933_s10] sm:$0xff]  ;;  %v2257_v24 = vld [vmem:[%s3933_s10 + $0x18] sm:$0xff] }
   0x9   :  { %4064 = vst [vmem:[#allocation17_spill] sm:$0xff] %v2177_v8  ;;  %v2247_v22 = vld [vmem:[%s3933_s10 + $0x8] sm:$0xff]  ;;  %v2262_v25 = vld [vmem:[%s3933_s10 + $0x20] sm:$0xff]  ;;  %v2272_v27 = vld [vmem:[%s3933_s10 + $0x30] sm:$0xff] }
   0xa   :  { %4065 = vst [vmem:[#allocation18_spill] sm:$0xff] %v2182_v9  ;;  %v2267_v26 = vld [vmem:[%s3933_s10 + $0x28] sm:$0xff]  ;;  %v2277_v28 = vld [vmem:[%s3933_s10 + $0x38] sm:$0xff]  ;;  %v2282_v29 = vld [vmem:[%s3933_s10 + $0x40] sm:$0xff] }
   0xb   :  { %4066 = vst [vmem:[#allocation19_spill] sm:$0xff] %v2187_v10  ;;  %v2287_v30 = vld [vmem:[%s3933_s10 + $0x48] sm:$0xff]  ;;  %v2292_v31 = vld [vmem:[%s3933_s10 + $0x50] sm:$0xff]  ;;  %v2297_v32 = vld [vmem:[%s3933_s10 + $0x58] sm:$0xff] }
   0xc   :  { %4067 = vst [vmem:[#allocation20_spill] sm:$0xff] %v2192_v11  ;;  %v2302_v33 = vld [vmem:[%s3933_s10 + $0x60] sm:$0xff]  ;;  %v2307_v34 = vld [vmem:[%s3933_s10 + $0x68] sm:$0xff]  ;;  %v2312_v35 = vld [vmem:[%s3933_s10 + $0x70] sm:$0xff] }
   0xd   :  { %4068 = vst [vmem:[#allocation21_spill] sm:$0xff] %v2197_v12  ;;  %v2317_v36 = vld [vmem:[%s3933_s10 + $0x78] sm:$0xff]  ;;  %v2322_v37 = vld [vmem:[%s3933_s10 + $0x80] sm:$0xff]  ;;  %v2327_v38 = vld [vmem:[%s3933_s10 + $0x88] sm:$0xff] }
   0xe   :  { %4069 = vst [vmem:[#allocation22_spill] sm:$0xff] %v2202_v13  ;;  %v2332_v39 = vld [vmem:[%s3933_s10 + $0x90] sm:$0xff]  ;;  %v2337_v40 = vld [vmem:[%s3933_s10 + $0x98] sm:$0xff]  ;;  %v2342_v41 = vld [vmem:[%s3933_s10 + $0xa0] sm:$0xff] }
   0xf   :  { %4070 = vst [vmem:[#allocation23_spill] sm:$0xff] %v2207_v14  ;;  %v2347_v42 = vld [vmem:[%s3933_s10 + $0xa8] sm:$0xff]  ;;  %v2352_v43 = vld [vmem:[%s3933_s10 + $0xb0] sm:$0xff]  ;;  %v2357_v44 = vld [vmem:[%s3933_s10 + $0xb8] sm:$0xff] }
  0x10   :  { %4071 = vst [vmem:[#allocation24_spill] sm:$0xff] %v2212_v15  ;;  %v2362_v45 = vld [vmem:[%s3933_s10 + $0xc0] sm:$0xff]  ;;  %v2367_v46 = vld [vmem:[%s3933_s10 + $0xc8] sm:$0xff]  ;;  %v2372_v47 = vld [vmem:[%s3933_s10 + $0xd0] sm:$0xff] }
  0x11   :  { %4072 = vst [vmem:[#allocation25_spill] sm:$0xff] %v2217_v16  ;;  %v2377_v48 = vld [vmem:[%s3933_s10 + $0xd8] sm:$0xff]  ;;  %v2382_v49 = vld [vmem:[%s3933_s10 + $0xe0] sm:$0xff]  ;;  %v2387_v50 = vld [vmem:[%s3933_s10 + $0xe8] sm:$0xff] }
  0x12   :  { %4073 = vst [vmem:[#allocation26_spill] sm:$0xff] %v2222_v17  ;;  %v2392_v51 = vld [vmem:[%s3933_s10 + $0xf0] sm:$0xff]  ;;  %v2397_v52 = vld [vmem:[%s3933_s10 + $0xf8] sm:$0xff]  ;;  %v2402_v53 = vld [vmem:[%s3933_s10 + $0x100] sm:$0xff] }
  0x13   :  { %4074 = vst [vmem:[#allocation27_spill] sm:$0xff] %v2227_v18  ;;  %v2407_v54 = vld [vmem:[%s3933_s10 + $0x108] sm:$0xff]  ;;  %v2412_v55 = vld [vmem:[%s3933_s10 + $0x110] sm:$0xff]  ;;  %v2417_v56 = vld [vmem:[%s3933_s10 + $0x118] sm:$0xff] }
  0x14   :  { %4075 = vst [vmem:[#allocation28_spill] sm:$0xff] %v2232_v19  ;;  %v2422_v57 = vld [vmem:[%s3933_s10 + $0x120] sm:$0xff]  ;;  %v2427_v58 = vld [vmem:[%s3933_s10 + $0x128] sm:$0xff]  ;;  %v2432_v59 = vld [vmem:[%s3933_s10 + $0x130] sm:$0xff] }
  0x15   :  { %4076 = vst [vmem:[#allocation29_spill] sm:$0xff] %v2237_v20  ;;  %v2437_v60 = vld [vmem:[%s3933_s10 + $0x138] sm:$0xff]  ;;  %v2442_v61 = vld [vmem:[%s3933_s10 + $0x140] sm:$0xff]  ;;  %v2447_v62 = vld [vmem:[%s3933_s10 + $0x148] sm:$0xff] }
  0x16   :  { %4077 = vst [vmem:[#allocation30_spill] sm:$0xff] %v2242_v21  ;;  %v2452_v63 = vld [vmem:[%s3933_s10 + $0x150] sm:$0xff]  ;;  %v2457_v0 = vld [vmem:[%s3933_s10 + $0x158] sm:$0xff]  ;;  %v2462_v19 = vld [vmem:[%s3933_s10 + $0x160] sm:$0xff] }
  0x17   :  { %4078 = vst [vmem:[#allocation31_spill] sm:$0xff] %v2247_v22  ;;  %v2482_v21 = vld [vmem:[%s3933_s10 + $0x180] sm:$0xff]  ;;  %v2497_v22 = vld [vmem:[%s3933_s10 + $0x198] sm:$0xff] }
  0x18   :  { %4079 = vst [vmem:[#allocation32_spill] sm:$0xff] %v2252_v23  ;;  %v2542_v23 = vld [vmem:[%s3933_s10 + $0x1e0] sm:$0xff] }
  0x19   :  { %4080 = vst [vmem:[#allocation33_spill] sm:$0xff] %v2257_v24  ;;  %v2562_v24 = vld [vmem:[%s3933_s10 + $0x200] sm:$0xff] }
  0x1a   :  { %4081 = vst [vmem:[#allocation34_spill] sm:$0xff] %v2262_v25  ;;  %v2582_v25 = vld [vmem:[%s3933_s10 + $0x220] sm:$0xff] }
  0x1b   :  { %4082 = vst [vmem:[#allocation35_spill] sm:$0xff] %v2267_v26  ;;  %v233_v26 = vld [vmem:[%s3923_s0 + $0x8] sm:$0xff] }
  0x1c   :  { %4083 = vst [vmem:[#allocation36_spill] sm:$0xff] %v2272_v27 }
  0x1d   :  { %4084 = vst [vmem:[#allocation37_spill] sm:$0xff] %v2277_v28 }
  0x1e   :  { %4085 = vst [vmem:[#allocation38_spill] sm:$0xff] %v2282_v29 }
  0x1f   :  { %4086 = vst [vmem:[#allocation39_spill] sm:$0xff] %v2322_v37  ;;  %v2472_v37 = vld [vmem:[%s3933_s10 + $0x170] sm:$0xff] }
  0x20   :  { %4087 = vst [vmem:[#allocation40_spill] sm:$0xff] %v2327_v38  ;;  %v2487_v38 = vld [vmem:[%s3933_s10 + $0x188] sm:$0xff] }
  0x21   :  { %4088 = vst [vmem:[#allocation41_spill] sm:$0xff] %v2332_v39  ;;  %v2502_v39 = vld [vmem:[%s3933_s10 + $0x1a0] sm:$0xff] }
  0x22   :  { %4089 = vst [vmem:[#allocation42_spill] sm:$0xff] %v2337_v40  ;;  %v2547_v40 = vld [vmem:[%s3933_s10 + $0x1e8] sm:$0xff] }
  0x23   :  { %4090 = vst [vmem:[#allocation43_spill] sm:$0xff] %v2342_v41  ;;  %v2567_v41 = vld [vmem:[%s3933_s10 + $0x208] sm:$0xff] }
  0x24   :  { %4091 = vst [vmem:[#allocation44_spill] sm:$0xff] %v2347_v42  ;;  %v415_v42 = vld [vmem:[%s3935_s12 + $0xd0] sm:$0xff] }
  0x25   :  { %4092 = vst [vmem:[#allocation45_spill] sm:$0xff] %v2352_v43  ;;  %539 = vmatpush.msrb.mxu0 %v415_v42  ;;  %v397_v43 = vld [vmem:[%s3935_s12 + $0x40] sm:$0xff]  ;;  %v400_v42 = vld [vmem:[%s3935_s12 + $0x58] sm:$0xff] }
  0x26   :  { %4093 = vst [vmem:[#allocation46_spill] sm:$0xff] %v2357_v44  ;;  %v404_v44 = vld [vmem:[%s3935_s12 + $0x78] sm:$0xff] }
  0x27   :  { %4094 = vst [vmem:[#allocation47_spill] sm:$0xff] %v2362_v45 }
  0x28   :  { %4095 = vst [vmem:[#allocation48_spill] sm:$0xff] %v2367_v46 }
  0x29   :  { %4096 = vst [vmem:[#allocation49_spill] sm:$0xff] %v2402_v53  ;;  %v2467_v53 = vld [vmem:[%s3933_s10 + $0x168] sm:$0xff] }
  0x2a   :  { %4097 = vst [vmem:[#allocation50_spill] sm:$0xff] %v2407_v54  ;;  %v2477_v54 = vld [vmem:[%s3933_s10 + $0x178] sm:$0xff] }
  0x2b   :  { %4098 = vst [vmem:[#allocation51_spill] sm:$0xff] %v2412_v55  ;;  %v2492_v55 = vld [vmem:[%s3933_s10 + $0x190] sm:$0xff] }
  0x2c   :  { %4099 = vst [vmem:[#allocation52_spill] sm:$0xff] %v2417_v56  ;;  %v2537_v56 = vld [vmem:[%s3933_s10 + $0x1d8] sm:$0xff] }
  0x2d   :  { %4100 = vst [vmem:[#allocation53_spill] sm:$0xff] %v2422_v57  ;;  %v2557_v57 = vld [vmem:[%s3933_s10 + $0x1f8] sm:$0xff] }
  0x2e   :  { %4101 = vst [vmem:[#allocation54_spill] sm:$0xff] %v2427_v58  ;;  %v2577_v58 = vld [vmem:[%s3933_s10 + $0x218] sm:$0xff] }
  0x2f   :  { %4102 = vst [vmem:[#allocation55_spill] sm:$0xff] %v2432_v59  ;;  %v406_v59 = vld [vmem:[%s3935_s12 + $0x88] sm:$0xff] }
  0x30   :  { %4103 = vst [vmem:[#allocation56_spill] sm:$0xff] %v2437_v60 }
  0x31   :  { %4104 = vst [vmem:[#allocation57_spill] sm:$0xff] %v2442_v61 }
  0x32   :  { %4105 = vst [vmem:[#allocation58_spill] sm:$0xff] %v2447_v62 }
  0x33   :  { %4106 = vst [vmem:[#allocation59_spill] sm:$0xff] %v2482_v21  ;;  %v2507_v21 = vld [vmem:[%s3933_s10 + $0x1a8] sm:$0xff] }
  0x34   :  { %4107 = vst [vmem:[#allocation60_spill] sm:$0xff] %v2487_v38  ;;  %v2512_v38 = vld [vmem:[%s3933_s10 + $0x1b0] sm:$0xff] }
  0x35   :  { %4108 = vst [vmem:[#allocation61_spill] sm:$0xff] %v2492_v55  ;;  %v2517_v55 = vld [vmem:[%s3933_s10 + $0x1b8] sm:$0xff] }
  0x36   :  { %4109 = vst [vmem:[#allocation62_spill] sm:$0xff] %v2497_v22  ;;  %v2522_v22 = vld [vmem:[%s3933_s10 + $0x1c0] sm:$0xff] }
  0x37   :  { %4110 = vst [vmem:[#allocation63_spill] sm:$0xff] %v2502_v39  ;;  %v2527_v39 = vld [vmem:[%s3933_s10 + $0x1c8] sm:$0xff] }
  0x38   :  { %4111 = vst [vmem:[#allocation64_spill] sm:$0xff] %v2507_v21  ;;  %v2532_v21 = vld [vmem:[%s3933_s10 + $0x1d0] sm:$0xff] }
  0x39   :  { %4112 = vst [vmem:[#allocation65_spill] sm:$0xff] %v2512_v38  ;;  %v2552_v38 = vld [vmem:[%s3933_s10 + $0x1f0] sm:$0xff] }
  0x3a   :  { %4113 = vst [vmem:[#allocation66_spill] sm:$0xff] %v2517_v55  ;;  %v2572_v55 = vld [vmem:[%s3933_s10 + $0x210] sm:$0xff] }
  0x3b   :  { %4114 = vst [vmem:[#allocation67_spill] sm:$0xff] %v2522_v22  ;;  %v416_v22 = vld [vmem:[%s3935_s12 + $0xd8] sm:$0xff] }
  0x3c   :  { %4115 = vst [vmem:[#allocation68_spill] sm:$0xff] %v2527_v39  ;;  %v237_v39 = vld [vmem:[%s3923_s0 + $0x28] sm:$0xff] }
  0x3d   :  { %4116 = vst [vmem:[#allocation69_spill] sm:$0xff] %v2532_v21 }
  0x3e   :  { %4117 = vst [vmem:[#allocation70_spill] sm:$0xff] %v2537_v56  ;;  %v396_v56 = vld [vmem:[%s3935_s12 + $0x38] sm:$0xff] }
  0x3f   :  { %4118 = vst [vmem:[#allocation71_spill] sm:$0xff] %v2562_v24  ;;  %v2587_v24 = vld [vmem:[%s3933_s10 + $0x228] sm:$0xff] }
  0x40   :  { %4119 = vst [vmem:[#allocation72_spill] sm:$0xff] %v2567_v41  ;;  %v2592_v41 = vld [vmem:[%s3933_s10 + $0x230] sm:$0xff] }
  0x41   :  { %4120 = vst [vmem:[#allocation73_spill] sm:$0xff] %v2572_v55  ;;  %v2597_v55 = vld [vmem:[%s3933_s10 + $0x238] sm:$0xff] }
  0x42   :  { %4121 = vst [vmem:[#allocation74_spill] sm:$0xff] %v2577_v58  ;;  %v2602_v58 = vld [vmem:[%s3933_s10 + $0x240] sm:$0xff] }
  0x43   :  { %4122 = vst [vmem:[#allocation75_spill] sm:$0xff] %v2582_v25  ;;  %v2607_v25 = vld [vmem:[%s3933_s10 + $0x248] sm:$0xff] }
  0x44   :  { %4123 = vst [vmem:[#allocation76_spill] sm:$0xff] %v2587_v24  ;;  %v2612_v24 = vld [vmem:[%s3933_s10 + $0x250] sm:$0xff] }
  0x45   :  { %4124 = vst [vmem:[#allocation77_spill] sm:$0xff] %v2592_v41  ;;  %v2617_v41 = vld [vmem:[%s3933_s10 + $0x258] sm:$0xff] }
  0x46   :  { %4125 = vst [vmem:[#allocation78_spill] sm:$0xff] %v2597_v55  ;;  %v2622_v55 = vld [vmem:[%s3933_s10 + $0x260] sm:$0xff] }
  0x47   :  { %4126 = vst [vmem:[#allocation79_spill] sm:$0xff] %v2602_v58  ;;  %v2627_v58 = vld [vmem:[%s3933_s10 + $0x268] sm:$0xff] }
  0x48   :  { %4127 = vst [vmem:[#allocation80_spill] sm:$0xff] %v2607_v25  ;;  %v2632_v25 = vld [vmem:[%s3933_s10 + $0x270] sm:$0xff] }
  0x49   :  { %4128 = vst [vmem:[#allocation81_spill] sm:$0xff] %v2612_v24  ;;  %v2637_v24 = vld [vmem:[%s3933_s10 + $0x278] sm:$0xff] }
  0x4a   :  { %4129 = vst [vmem:[#allocation82_spill] sm:$0xff] %v2617_v41  ;;  %v2642_v41 = vld [vmem:[%s3933_s10 + $0x280] sm:$0xff] }
  0x4b   :  { %4130 = vst [vmem:[#allocation83_spill] sm:$0xff] %v2622_v55  ;;  %v2647_v55 = vld [vmem:[%s3933_s10 + $0x288] sm:$0xff] }
  0x4c   :  { %4131 = vst [vmem:[#allocation84_spill] sm:$0xff] %v2627_v58  ;;  %v2652_v58 = vld [vmem:[%s3933_s10 + $0x290] sm:$0xff] }
  0x4d   :  { %4132 = vst [vmem:[#allocation85_spill] sm:$0xff] %v2632_v25  ;;  %v2657_v25 = vld [vmem:[%s3933_s10 + $0x298] sm:$0xff] }
  0x4e   :  { %4133 = vst [vmem:[#allocation86_spill] sm:$0xff] %v2637_v24  ;;  %v2662_v24 = vld [vmem:[%s3933_s10 + $0x2a0] sm:$0xff] }
  0x4f   :  { %4134 = vst [vmem:[#allocation87_spill] sm:$0xff] %v2642_v41  ;;  %v2667_v41 = vld [vmem:[%s3933_s10 + $0x2a8] sm:$0xff] }
  0x50   :  { %4135 = vst [vmem:[#allocation88_spill] sm:$0xff] %v2647_v55  ;;  %v2672_v55 = vld [vmem:[%s3933_s10 + $0x2b0] sm:$0xff] }
  0x51   :  { %4136 = vst [vmem:[#allocation89_spill] sm:$0xff] %v2652_v58  ;;  %v2677_v58 = vld [vmem:[%s3933_s10 + $0x2b8] sm:$0xff] }
  0x52   :  { %4137 = vst [vmem:[#allocation90_spill] sm:$0xff] %v2657_v25  ;;  %v2682_v25 = vld [vmem:[%s3933_s10 + $0x2c0] sm:$0xff] }
  0x53   :  { %4138 = vst [vmem:[#allocation91_spill] sm:$0xff] %v2662_v24  ;;  %v2687_v24 = vld [vmem:[%s3933_s10 + $0x2c8] sm:$0xff] }
  0x54   :  { %4139 = vst [vmem:[#allocation92_spill] sm:$0xff] %v2667_v41  ;;  %v2692_v41 = vld [vmem:[%s3933_s10 + $0x2d0] sm:$0xff] }
  0x55   :  { %4140 = vst [vmem:[#allocation93_spill] sm:$0xff] %v2672_v55  ;;  %v2697_v55 = vld [vmem:[%s3933_s10 + $0x2d8] sm:$0xff] }
  0x56   :  { %4141 = vst [vmem:[#allocation94_spill] sm:$0xff] %v2677_v58  ;;  %v2702_v58 = vld [vmem:[%s3933_s10 + $0x2e0] sm:$0xff] }
  0x57   :  { %4142 = vst [vmem:[#allocation95_spill] sm:$0xff] %v2682_v25  ;;  %v2707_v25 = vld [vmem:[%s3933_s10 + $0x2e8] sm:$0xff] }
  0x58   :  { %4143 = vst [vmem:[#allocation96_spill] sm:$0xff] %v2687_v24  ;;  %v2712_v24 = vld [vmem:[%s3933_s10 + $0x2f0] sm:$0xff] }
  0x59   :  { %4144 = vst [vmem:[#allocation97_spill] sm:$0xff] %v2692_v41  ;;  %v2717_v41 = vld [vmem:[%s3933_s10 + $0x2f8] sm:$0xff] }
  0x5a   :  { %4145 = vst [vmem:[#allocation98_spill] sm:$0xff] %v2697_v55  ;;  %v2722_v55 = vld [vmem:[%s3933_s10 + $0x300] sm:$0xff] }
  0x5b   :  { %4146 = vst [vmem:[#allocation99_spill] sm:$0xff] %v2702_v58  ;;  %v2727_v58 = vld [vmem:[%s3933_s10 + $0x308] sm:$0xff] }
  0x5c   :  { %4147 = vst [vmem:[#allocation100_spill] sm:$0xff] %v2707_v25  ;;  %v2732_v25 = vld [vmem:[%s3933_s10 + $0x310] sm:$0xff] }
  0x5d   :  { %4148 = vst [vmem:[#allocation101_spill] sm:$0xff] %v2712_v24  ;;  %v2737_v24 = vld [vmem:[%s3933_s10 + $0x318] sm:$0xff] }
  0x5e   :  { %4149 = vst [vmem:[#allocation102_spill] sm:$0xff] %v2717_v41  ;;  %v2742_v41 = vld [vmem:[%s3933_s10 + $0x320] sm:$0xff] }
  0x5f   :  { %4150 = vst [vmem:[#allocation103_spill] sm:$0xff] %v2722_v55  ;;  %v2747_v55 = vld [vmem:[%s3933_s10 + $0x328] sm:$0xff] }
  0x60   :  { %4151 = vst [vmem:[#allocation104_spill] sm:$0xff] %v2727_v58  ;;  %v2752_v58 = vld [vmem:[%s3933_s10 + $0x330] sm:$0xff] }
  0x61   :  { %4152 = vst [vmem:[#allocation105_spill] sm:$0xff] %v2732_v25  ;;  %v2757_v25 = vld [vmem:[%s3933_s10 + $0x338] sm:$0xff] }
  0x62   :  { %4153 = vst [vmem:[#allocation106_spill] sm:$0xff] %v2737_v24  ;;  %v2762_v24 = vld [vmem:[%s3933_s10 + $0x340] sm:$0xff] }
  0x63   :  { %4154 = vst [vmem:[#allocation107_spill] sm:$0xff] %v2742_v41  ;;  %v2767_v41 = vld [vmem:[%s3933_s10 + $0x348] sm:$0xff] }
  0x64   :  { %4155 = vst [vmem:[#allocation108_spill] sm:$0xff] %v2747_v55  ;;  %v2772_v55 = vld [vmem:[%s3933_s10 + $0x350] sm:$0xff] }
  0x65   :  { %4156 = vst [vmem:[#allocation109_spill] sm:$0xff] %v2752_v58  ;;  %v2777_v58 = vld [vmem:[%s3933_s10 + $0x358] sm:$0xff] }
  0x66   :  { %4157 = vst [vmem:[#allocation110_spill] sm:$0xff] %v2757_v25  ;;  %v2782_v25 = vld [vmem:[%s3933_s10 + $0x360] sm:$0xff] }
  0x67   :  { %4158 = vst [vmem:[#allocation111_spill] sm:$0xff] %v2762_v24  ;;  %v2787_v24 = vld [vmem:[%s3933_s10 + $0x368] sm:$0xff] }
  0x68   :  { %4159 = vst [vmem:[#allocation112_spill] sm:$0xff] %v2767_v41  ;;  %v2792_v41 = vld [vmem:[%s3933_s10 + $0x370] sm:$0xff] }
  0x69   :  { %4160 = vst [vmem:[#allocation113_spill] sm:$0xff] %v2772_v55  ;;  %v2797_v55 = vld [vmem:[%s3933_s10 + $0x378] sm:$0xff] }
  0x6a   :  { %4161 = vst [vmem:[#allocation114_spill] sm:$0xff] %v2777_v58  ;;  %v2802_v58 = vld [vmem:[%s3933_s10 + $0x380] sm:$0xff] }
  0x6b   :  { %4162 = vst [vmem:[#allocation115_spill] sm:$0xff] %v2782_v25  ;;  %v2807_v25 = vld [vmem:[%s3933_s10 + $0x388] sm:$0xff] }
  0x6c   :  { %4163 = vst [vmem:[#allocation116_spill] sm:$0xff] %v2787_v24  ;;  %v2812_v24 = vld [vmem:[%s3933_s10 + $0x390] sm:$0xff] }
  0x6d   :  { %4164 = vst [vmem:[#allocation117_spill] sm:$0xff] %v2792_v41  ;;  %v2817_v41 = vld [vmem:[%s3933_s10 + $0x398] sm:$0xff] }
  0x6e   :  { %4165 = vst [vmem:[#allocation118_spill] sm:$0xff] %v2797_v55  ;;  %v2822_v55 = vld [vmem:[%s3933_s10 + $0x3a0] sm:$0xff] }
  0x6f   :  { %4166 = vst [vmem:[#allocation119_spill] sm:$0xff] %v2802_v58  ;;  %v2827_v58 = vld [vmem:[%s3933_s10 + $0x3a8] sm:$0xff] }
  0x70   :  { %4167 = vst [vmem:[#allocation120_spill] sm:$0xff] %v2807_v25  ;;  %v2832_v25 = vld [vmem:[%s3933_s10 + $0x3b0] sm:$0xff] }
  0x71   :  { %4168 = vst [vmem:[#allocation121_spill] sm:$0xff] %v2812_v24  ;;  %v2837_v24 = vld [vmem:[%s3933_s10 + $0x3b8] sm:$0xff] }
  0x72   :  { %4169 = vst [vmem:[#allocation122_spill] sm:$0xff] %v2817_v41  ;;  %v2842_v41 = vld [vmem:[%s3933_s10 + $0x3c0] sm:$0xff] }
  0x73   :  { %4170 = vst [vmem:[#allocation123_spill] sm:$0xff] %v2822_v55  ;;  %v2847_v55 = vld [vmem:[%s3933_s10 + $0x3c8] sm:$0xff] }
  0x74   :  { %4171 = vst [vmem:[#allocation124_spill] sm:$0xff] %v2827_v58  ;;  %v2852_v58 = vld [vmem:[%s3933_s10 + $0x3d0] sm:$0xff] }
  0x75   :  { %4172 = vst [vmem:[#allocation125_spill] sm:$0xff] %v2832_v25  ;;  %v2857_v25 = vld [vmem:[%s3933_s10 + $0x3d8] sm:$0xff] }
  0x76   :  { %4173 = vst [vmem:[#allocation126_spill] sm:$0xff] %v2837_v24  ;;  %v2862_v24 = vld [vmem:[%s3933_s10 + $0x3e0] sm:$0xff] }
  0x77   :  { %4174 = vst [vmem:[#allocation127_spill] sm:$0xff] %v2842_v41  ;;  %v2867_v41 = vld [vmem:[%s3933_s10 + $0x3e8] sm:$0xff] }
  0x78   :  { %4175 = vst [vmem:[#allocation128_spill] sm:$0xff] %v2847_v55  ;;  %v2872_v55 = vld [vmem:[%s3933_s10 + $0x3f0] sm:$0xff] }
  0x79   :  { %4176 = vst [vmem:[#allocation129_spill] sm:$0xff] %v2852_v58  ;;  %v2877_v58 = vld [vmem:[%s3933_s10 + $0x3f8] sm:$0xff] }
  0x7a   :  { %4177 = vst [vmem:[#allocation130_spill] sm:$0xff] %v2857_v25  ;;  %v2882_v25 = vld [vmem:[%s3934_s11] sm:$0xff] }
  0x7b   :  { %4178 = vst [vmem:[#allocation131_spill] sm:$0xff] %v2862_v24  ;;  %v2887_v24 = vld [vmem:[%s3934_s11 + $0x8] sm:$0xff] }
  0x7c   :  { %4179 = vst [vmem:[#allocation132_spill] sm:$0xff] %v2867_v41  ;;  %v2892_v41 = vld [vmem:[%s3934_s11 + $0x10] sm:$0xff] }
  0x7d   :  { %4180 = vst [vmem:[#allocation133_spill] sm:$0xff] %v2872_v55  ;;  %v2897_v55 = vld [vmem:[%s3934_s11 + $0x18] sm:$0xff] }
  0x7e   :  { %4181 = vst [vmem:[#allocation134_spill] sm:$0xff] %v2877_v58  ;;  %v2902_v58 = vld [vmem:[%s3934_s11 + $0x20] sm:$0xff] }
  0x7f   :  { %4182 = vst [vmem:[#allocation135_spill] sm:$0xff] %v2882_v25  ;;  %v2907_v25 = vld [vmem:[%s3934_s11 + $0x28] sm:$0xff] }
  0x80   :  { %4183 = vst [vmem:[#allocation136_spill] sm:$0xff] %v2887_v24  ;;  %v2912_v24 = vld [vmem:[%s3934_s11 + $0x30] sm:$0xff] }
  0x81   :  { %4184 = vst [vmem:[#allocation137_spill] sm:$0xff] %v2892_v41  ;;  %v2917_v41 = vld [vmem:[%s3934_s11 + $0x38] sm:$0xff] }
  0x82   :  { %4185 = vst [vmem:[#allocation138_spill] sm:$0xff] %v2897_v55  ;;  %v2922_v55 = vld [vmem:[%s3934_s11 + $0x40] sm:$0xff] }
  0x83   :  { %4186 = vst [vmem:[#allocation139_spill] sm:$0xff] %v2902_v58  ;;  %v2927_v58 = vld [vmem:[%s3934_s11 + $0x48] sm:$0xff] }
  0x84   :  { %4187 = vst [vmem:[#allocation140_spill] sm:$0xff] %v2907_v25  ;;  %v2932_v25 = vld [vmem:[%s3934_s11 + $0x50] sm:$0xff] }
  0x85   :  { %4188 = vst [vmem:[#allocation141_spill] sm:$0xff] %v2912_v24  ;;  %v2937_v24 = vld [vmem:[%s3934_s11 + $0x58] sm:$0xff] }
  0x86   :  { %4189 = vst [vmem:[#allocation142_spill] sm:$0xff] %v2917_v41  ;;  %v2942_v41 = vld [vmem:[%s3934_s11 + $0x60] sm:$0xff] }
  0x87   :  { %4190 = vst [vmem:[#allocation143_spill] sm:$0xff] %v2922_v55  ;;  %v2947_v55 = vld [vmem:[%s3934_s11 + $0x68] sm:$0xff] }
  0x88   :  { %4191 = vst [vmem:[#allocation144_spill] sm:$0xff] %v2927_v58  ;;  %v2952_v58 = vld [vmem:[%s3934_s11 + $0x70] sm:$0xff] }
  0x89   :  { %4192 = vst [vmem:[#allocation145_spill] sm:$0xff] %v2932_v25  ;;  %v2957_v25 = vld [vmem:[%s3934_s11 + $0x78] sm:$0xff] }
  0x8a   :  { %4193 = vst [vmem:[#allocation146_spill] sm:$0xff] %v2937_v24  ;;  %v2962_v24 = vld [vmem:[%s3934_s11 + $0x80] sm:$0xff] }
  0x8b   :  { %4194 = vst [vmem:[#allocation147_spill] sm:$0xff] %v2942_v41  ;;  %v2967_v41 = vld [vmem:[%s3934_s11 + $0x88] sm:$0xff] }
  0x8c   :  { %4195 = vst [vmem:[#allocation148_spill] sm:$0xff] %v2947_v55  ;;  %v2972_v55 = vld [vmem:[%s3934_s11 + $0x90] sm:$0xff] }
  0x8d   :  { %4196 = vst [vmem:[#allocation149_spill] sm:$0xff] %v2952_v58  ;;  %v2977_v58 = vld [vmem:[%s3934_s11 + $0x98] sm:$0xff] }
  0x8e   :  { %4197 = vst [vmem:[#allocation150_spill] sm:$0xff] %v2957_v25  ;;  %v2982_v25 = vld [vmem:[%s3934_s11 + $0xa0] sm:$0xff] }
  0x8f   :  { %4198 = vst [vmem:[#allocation151_spill] sm:$0xff] %v2962_v24  ;;  %v2987_v24 = vld [vmem:[%s3934_s11 + $0xa8] sm:$0xff] }
  0x90   :  { %4199 = vst [vmem:[#allocation152_spill] sm:$0xff] %v2967_v41  ;;  %v2992_v41 = vld [vmem:[%s3934_s11 + $0xb0] sm:$0xff] }
  0x91   :  { %4200 = vst [vmem:[#allocation153_spill] sm:$0xff] %v2972_v55  ;;  %v2997_v55 = vld [vmem:[%s3934_s11 + $0xb8] sm:$0xff] }
  0x92   :  { %4201 = vst [vmem:[#allocation154_spill] sm:$0xff] %v2977_v58  ;;  %v3002_v58 = vld [vmem:[%s3934_s11 + $0xc0] sm:$0xff] }
  0x93   :  { %4202 = vst [vmem:[#allocation155_spill] sm:$0xff] %v2982_v25  ;;  %v3007_v25 = vld [vmem:[%s3934_s11 + $0xc8] sm:$0xff] }
  0x94   :  { %4203 = vst [vmem:[#allocation156_spill] sm:$0xff] %v2987_v24  ;;  %v3012_v24 = vld [vmem:[%s3934_s11 + $0xd0] sm:$0xff] }
  0x95   :  { %4204 = vst [vmem:[#allocation157_spill] sm:$0xff] %v2992_v41  ;;  %v3017_v41 = vld [vmem:[%s3934_s11 + $0xd8] sm:$0xff] }
  0x96   :  { %4205 = vst [vmem:[#allocation158_spill] sm:$0xff] %v2997_v55  ;;  %v3022_v55 = vld [vmem:[%s3934_s11 + $0xe0] sm:$0xff] }
  0x97   :  { %4206 = vst [vmem:[#allocation159_spill] sm:$0xff] %v3002_v58  ;;  %v3037_v58 = vld [vmem:[%s3934_s11 + $0xf8] sm:$0xff] }
  0x98   :  { %4207 = vst [vmem:[#allocation160_spill] sm:$0xff] %v3007_v25  ;;  %v3027_v25 = vld [vmem:[%s3934_s11 + $0xe8] sm:$0xff] }
  0x99   :  { %4208 = vst [vmem:[#allocation161_spill] sm:$0xff] %v3012_v24  ;;  %v3032_v24 = vld [vmem:[%s3934_s11 + $0xf0] sm:$0xff] }
  0x9a   :  { %4209 = vst [vmem:[#allocation162_spill] sm:$0xff] %v3017_v41  ;;  %v232_v41 = vld [vmem:[%s3923_s0] sm:$0xff] }
  0x9b   :  { %4210 = vst [vmem:[#allocation163_spill] sm:$0xff] %v3022_v55  ;;  %1862 = vmatmul.msk.f32.vlgmr.msra.gmra.mxu0 %vm245_vm0, %v232_v41  ;;  %v414_v55 = vld [vmem:[%s3935_s12 + $0xc8] sm:$0xff] }
  0x9c   :  { %4211 = vst [vmem:[#allocation164_spill] sm:$0xff] %v3027_v25  ;;  %v236_v25 = vld [vmem:[%s3923_s0 + $0x20] sm:$0xff] }
  0x9d   :  { %4212 = vst [vmem:[#allocation165_spill] sm:$0xff] %v3032_v24  ;;  %1866 = vmatmul.msk.f32.vlgmr.msra.gmra.mxu2 %vm245_vm0, %v236_v25  ;;  %v48_v24 = vld [vmem:[%s3925_s2 + $0x8] sm:$0xff] }
  0x9e   :  { %4213 = vst [vmem:[#allocation166_spill] sm:$0xff] %v3037_v58  ;;  %v413_v58 = vld [vmem:[%s3935_s12 + $0xc0] sm:$0xff]  ;;  %326 = vmatpush.msra.mxu1 %v48_v24  ;;  %1981 = vmatpush.msra.mxu3 %v48_v24 }
  0x9f   :  { %1870 = vmatmul.msk.f32.vlgmr.msra.gmra.mxu1 %vm245_vm0, %v232_v41  ;;  %1874 = vmatmul.msk.f32.vlgmr.msra.gmra.mxu3 %vm245_vm0, %v236_v25  ;;  %v405_v24 = vld [vmem:[%s3935_s12 + $0x80] sm:$0xff]  ;;  %v408_v41 = vld [vmem:[%s3935_s12 + $0x98] sm:$0xff]  ;;  %v407_v25 = vld [vmem:[%s3935_s12 + $0x90] sm:$0xff] }
  0xa0   :  { %457 = vmatpush.msrb.mxu2 %v413_v58  ;;  %498 = vmatpush.msrb.mxu3 %v414_v55  ;;  %v398_v55 = vld [vmem:[%s3935_s12 + $0x48] sm:$0xff]  ;;  %v389_v58 = vld [vmem:[%s3935_s12] sm:$0xff] }
  0xa1   :  { %580 = vmatpush.msrb.mxu1 %v416_v22  ;;  %v399_v22 = vld [vmem:[%s3935_s12 + $0x50] sm:$0xff]  ;;  %540 = vmatpush.msrb.mxu0 %v407_v25  ;;  %v392_v25 = vld [vmem:[%s3935_s12 + $0x18] sm:$0xff] }
  0xa2   :  { %458 = vmatpush.msrb.mxu2 %v405_v24  ;;  %499 = vmatpush.msrb.mxu3 %v406_v59  ;;  %v390_v59 = vld [vmem:[%s3935_s12 + $0x8] sm:$0xff]  ;;  %v238_v24 = vld [vmem:[%s3923_s0 + $0x30] sm:$0xff] }
  0xa3   :  { %1863 = vmatmul.msk.f32.gmra.mxu0 %vm245_vm0, %v233_v26  ;;  %581 = vmatpush.msrb.mxu1 %v408_v41  ;;  %v391_v41 = vld [vmem:[%s3935_s12 + $0x10] sm:$0xff] }
  0xa4   :  { %459 = vmatpush.msrb.mxu2 %v397_v43  ;;  %500 = vmatpush.msrb.mxu3 %v398_v55  ;;  %v234_v43 = vld [vmem:[%s3923_s0 + $0x10] sm:$0xff]  ;;  %v417_v55 = vld [vmem:[%s3935_s12 + $0xe0] sm:$0xff] }
  0xa5   :  { %1867 = vmatmul.msk.f32.gmra.mxu2 %vm245_vm0, %v237_v39  ;;  %541 = vmatpush.msrb.mxu0 %v399_v22  ;;  %v418_v22 = vld [vmem:[%s3935_s12 + $0xe8] sm:$0xff] }
  0xa6   :  { %582 = vmatpush.msrb.mxu1 %v400_v42  ;;  %460 = vmatpush.msrb.mxu2 %v389_v58  ;;  %v419_v42 = vld [vmem:[%s3935_s12 + $0xf0] sm:$0xff]  ;;  %v420_v58 = vld [vmem:[%s3935_s12 + $0xf8] sm:$0xff] }
  0xa7   :  { %1871 = vmatmul.msk.f32.gmra.mxu1 %vm245_vm0, %v233_v26  ;;  %1875 = vmatmul.msk.f32.gmra.mxu3 %vm245_vm0, %v237_v39  ;;  %v235_v26 = vld [vmem:[%s3923_s0 + $0x18] sm:$0xff] }
  0xa8   :  { %501 = vmatpush.msrb.mxu3 %v390_v59  ;;  %v239_v39 = vld [vmem:[%s3923_s0 + $0x38] sm:$0xff]  ;;  %542 = vmatpush.msrb.mxu0 %v391_v41  ;;  %v409_v59 = vld [vmem:[%s3935_s12 + $0xa0] sm:$0xff] }
  0xa9   :  { %583 = vmatpush.msrb.mxu1 %v392_v25  ;;  %621 = vmatpush.msra.mxu2 %v417_v55  ;;  %v412_v41 = vld [vmem:[%s3935_s12 + $0xb8] sm:$0xff]  ;;  %v230_v25 = vld [vmem:[%s3931_s8] sm:$0x1] }
  0xaa   :  { %662 = vmatpush.msra.mxu3 %v418_v22  ;;  %703 = vmatpush.msra.mxu0 %v419_v42  ;;  %v3166_v42 = vperm.slane %v230_v25, 0 }
  0xab   :  { %1864 = vmatmul.msk.f32.gmra.mxu0 %vm245_vm0, %v234_v43  ;;  %744 = vmatpush.msra.mxu1 %v420_v58  ;;  %v3171_v58 = vld [vmem:[%s3932_s9] ss:$0 sm:$0xff] }
  0xac   :  { %622 = vmatpush.msra.mxu2 %v409_v59 }
  0xad   :  { %1868 = vmatmul.msk.f32.gmra.mxu2 %vm245_vm0, %v238_v24  ;;  %745 = vmatpush.msra.mxu1 %v412_v41 }
  0xaf   :  { %1872 = vmatmul.msk.f32.gmra.mxu1 %vm245_vm0, %v234_v43  ;;  %1876 = vmatmul.msk.f32.gmra.mxu3 %vm245_vm0, %v238_v24  ;;  %v410_v43 = vld [vmem:[%s3935_s12 + $0xa8] sm:$0xff]  ;;  %v3151_v24 = vld [vmem:[%s3926_s3] sm:$0x3] }
  0xb0   :  { %663 = vmatpush.msra.mxu3 %v410_v43  ;;  %746 = vmatpush.msra.mxu1 %v404_v44 }
  0xb2   :  { %747 = vmatpush.msra.mxu1 %v396_v56 }
  0xb3   :  { %1865 = vmatmul.msk.f32.gmra.mxu0 %vm245_vm0, %v235_v26 }
  0xb5   :  { %1869 = vmatmul.msk.f32.gmra.mxu2 %vm245_vm0, %v239_v39 }
  0xb7   :  { %1873 = vmatmul.msk.f32.gmra.mxu1 %vm245_vm0, %v235_v26  ;;  %1877 = vmatmul.msk.f32.gmra.mxu3 %vm245_vm0, %v239_v39  ;;  %v3154_v26 = vperm.slane %v3151_v24, 0  ;;  %v411_v39 = vld [vmem:[%s3935_s12 + $0xb0] sm:$0xff] }
  0xb8   :  { %704 = vmatpush.msra.mxu0 %v411_v39 }
 0x118   :  { %v287_v55 = vpop.f32.mrf.mxu0 }
 0x119   :  { %v288_v22 = vadd.f32 %v287_v55, %v3154_v26 }
 0x11b   :  { %v352_v59 = vmax.f32 %v288_v22, 0.0  ;;  %v401_v22 = vld [vmem:[%s3935_s12 + $0x60] sm:$0xff] }
 0x11c   :  { %623 = vmatpush.msra.mxu2 %v401_v22 }
 0x11d   :  { %361 = vst.msk [vmem:[#allocation2] sm:$0xff] %vm360_vm1, %v352_v59  ;;  %v3175_v43 = vmul.f32 %v3166_v42, %v352_v59  ;;  %v840_v39 = vmul.f32 %v3171_v58, %v352_v59  ;;  %v402_v59 = vld [vmem:[%s3935_s12 + $0x68] sm:$0xff] }
 0x11e   :  { %664 = vmatpush.msra.mxu3 %v402_v59 }
 0x11f   :  { %1878 = vmatmul.msk.f32.vlgmr.msrb.gmra.mxu2 %vm360_vm1, %v3175_v43  ;;  %1886 = vmatmul.msk.f32.vlgmr.msrb.gmra.mxu3 %vm360_vm1, %v3175_v43  ;;  %v848_v41 = vsel %vm360_vm1, %v840_v39, 0.0  ;;  %v403_v39 = vld [vmem:[%s3935_s12 + $0x70] sm:$0xff] }
 0x120   :  { %1894 = vmatmul.msk.f32.vlgmr.msrb.gmra.mxu0 %vm360_vm1, %v3175_v43  ;;  %1902 = vmatmul.msk.f32.vlgmr.msrb.gmra.mxu1 %vm360_vm1, %v3175_v43  ;;  %v290_v25 = vpop.f32.mrf.mxu0  ;;  %v299_v55 = vpop.f32.mrf.mxu2 }
 0x121   :  { %v291_v60 = vadd.f32 %v290_v25, %v3154_v26  ;;  %849 = vadd.xlane.f32.xlu0 %v848_v41  ;;  %v300_v27 = vadd.f32 %v299_v55, %v3154_v26  ;;  %705 = vmatpush.msra.mxu0 %v403_v39 }
 0x123   :  { %v353_v21 = vmax.f32 %v291_v60, 0.0  ;;  %v3201_v61 = vmax.f32 %v300_v27, 0.0 }
 0x125   :  { %362 = vst.msk [vmem:[#allocation2 + $0x8] sm:$0xff] %vm360_vm1, %v353_v21  ;;  %v3205_v28 = vmul.f32 %v3166_v42, %v353_v21  ;;  %v841_v41 = vmul.f32 %v3171_v58, %v353_v21  ;;  %v844_v25 = vmul.f32 %v3171_v58, %v3201_v61 }
 0x126   :  { %365 = vst.msk [vmem:[#allocation2 + $0x20] sm:$0xff] %vm360_vm1, %v3201_v61 }
 0x127   :  { %1879 = vmatmul.msk.f32.gmra.mxu2 %vm360_vm1, %v3205_v28  ;;  %1887 = vmatmul.msk.f32.gmra.mxu3 %vm360_vm1, %v3205_v28  ;;  %v851_v27 = vsel %vm360_vm1, %v841_v41, 0.0  ;;  %v860_v44 = vsel %vm360_vm1, %v844_v25, 0.0 }
 0x128   :  { %1895 = vmatmul.msk.f32.gmra.mxu0 %vm360_vm1, %v3205_v28  ;;  %1903 = vmatmul.msk.f32.gmra.mxu1 %vm360_vm1, %v3205_v28  ;;  %v293_v21 = vpop.f32.mrf.mxu0  ;;  %v302_v60 = vpop.f32.mrf.mxu2 }
 0x129   :  { %v294_v55 = vadd.f32 %v293_v21, %v3154_v26  ;;  %852 = vadd.xlane.f32.xlu0 %v851_v27  ;;  %v303_v22 = vadd.f32 %v302_v60, %v3154_v26  ;;  %861 = vadd.xlane.f32.xlu2 %v860_v44 }
 0x12b   :  { %v354_v59 = vmax.f32 %v294_v55, 0.0  ;;  %v357_v39 = vmax.f32 %v303_v22, 0.0  ;;  %v393_v55 = vld [vmem:[%s3935_s12 + $0x20] sm:$0xff]  ;;  %v394_v22 = vld [vmem:[%s3935_s12 + $0x28] sm:$0xff] }
 0x12c   :  { %624 = vmatpush.msra.mxu2 %v393_v55  ;;  %665 = vmatpush.msra.mxu3 %v394_v22  ;;  %v3275_v55 = vmul.f32 %v3166_v42, %v3201_v61 }
 0x12d   :  { %363 = vst.msk [vmem:[#allocation2 + $0x10] sm:$0xff] %vm360_vm1, %v354_v59  ;;  %v3226_v41 = vmul.f32 %v3166_v42, %v354_v59  ;;  %v842_v25 = vmul.f32 %v3171_v58, %v354_v59  ;;  %v845_v45 = vmul.f32 %v3171_v58, %v357_v39  ;;  %v3289_v61 = vmul.f32 %v3166_v42, %v357_v39 }
 0x12e   :  { %366 = vst.msk [vmem:[#allocation2 + $0x28] sm:$0xff] %vm360_vm1, %v357_v39  ;;  %v328_v39 = vpop.f32.mrf.mxu1 }
 0x12f   :  { %1880 = vmatmul.msk.f32.gmra.mxu2 %vm360_vm1, %v3226_v41  ;;  %1888 = vmatmul.msk.f32.gmra.mxu3 %vm360_vm1, %v3226_v41  ;;  %v854_v27 = vsel %vm360_vm1, %v842_v25, 0.0  ;;  %v863_v44 = vsel %vm360_vm1, %v845_v45, 0.0  ;;  %v395_v45 = vld [vmem:[%s3935_s12 + $0x30] sm:$0xff] }
 0x130   :  { %1896 = vmatmul.msk.f32.gmra.mxu0 %vm360_vm1, %v3226_v41  ;;  %1904 = vmatmul.msk.f32.gmra.mxu1 %vm360_vm1, %v3226_v41  ;;  %v296_v21 = vpop.f32.mrf.mxu0  ;;  %v305_v60 = vpop.f32.mrf.mxu2 }
 0x131   :  { %v297_v59 = vadd.f32 %v296_v21, %v3154_v26  ;;  %855 = vadd.xlane.f32.xlu1 %v854_v27  ;;  %v306_v25 = vadd.f32 %v305_v60, %v3154_v26  ;;  %864 = vadd.xlane.f32.xlu2 %v863_v44 }
 0x132   :  { %706 = vmatpush.msra.mxu0 %v395_v45 }
 0x133   :  { %v355_v62 = vmax.f32 %v297_v59, 0.0  ;;  %v358_v29 = vmax.f32 %v306_v25, 0.0 }
 0x135   :  { %364 = vst.msk [vmem:[#allocation2 + $0x18] sm:$0xff] %vm360_vm1, %v355_v62  ;;  %v3257_v46 = vmul.f32 %v3166_v42, %v355_v62  ;;  %v843_v27 = vmul.f32 %v3171_v58, %v355_v62  ;;  %v846_v21 = vmul.f32 %v3171_v58, %v358_v29 }
 0x136   :  { %367 = vst.msk [vmem:[#allocation2 + $0x30] sm:$0xff] %vm360_vm1, %v358_v29 }
 0x137   :  { %1881 = vmatmul.msk.f32.gmra.mxu2 %vm360_vm1, %v3257_v46  ;;  %1889 = vmatmul.msk.f32.gmra.mxu3 %vm360_vm1, %v3257_v46  ;;  %v857_v44 = vsel %vm360_vm1, %v843_v27, 0.0  ;;  %v866_v56 = vsel %vm360_vm1, %v846_v21, 0.0  ;;  %v331_v27 = vpop.f32.mrf.mxu1 }
 0x138   :  { %1897 = vmatmul.msk.f32.gmra.mxu0 %vm360_vm1, %v3257_v46  ;;  %1905 = vmatmul.msk.f32.gmra.mxu1 %vm360_vm1, %v3257_v46  ;;  %v308_v62 = vpop.f32.mrf.mxu2 }
 0x139   :  { %858 = vadd.xlane.f32.xlu1 %v857_v44  ;;  %v309_v60 = vadd.f32 %v308_v62, %v3154_v26  ;;  %867 = vadd.xlane.f32.xlu0 %v866_v56  ;;  %v3300_v26 = vmul.f32 %v3166_v42, %v358_v29  ;;  %v242_v29 = vperm.slane %v3151_v24, 1 }
 0x13b   :  { %v359_v22 = vmax.f32 %v309_v60, 0.0  ;;  %v329_v25 = vadd.f32 %v328_v39, %v242_v29  ;;  %v332_v21 = vadd.f32 %v331_v27, %v242_v29 }
 0x13d   :  { %368 = vst.msk [vmem:[#allocation2 + $0x38] sm:$0xff] %vm360_vm1, %v359_v22  ;;  %v847_v45 = vmul.f32 %v3171_v58, %v359_v22  ;;  %v3311_v58 = vmul.f32 %v3166_v42, %v359_v22  ;;  %v340_v42 = vpop.f32.mrf.mxu3 }
 0x13e   :  { %370 = vst.msk [vmem:[#allocation4] sm:$0xff] %vm369_vm2, %v329_v25  ;;  %v341_v24 = vadd.f32 %v340_v42, %v242_v29 }
 0x13f   :  { %1882 = vmatmul.msk.f32.gmra.mxu2 %vm360_vm1, %v3275_v55  ;;  %1890 = vmatmul.msk.f32.gmra.mxu3 %vm360_vm1, %v3275_v55  ;;  %v869_v59 = vsel %vm360_vm1, %v847_v45, 0.0  ;;  %371 = vst.msk [vmem:[#allocation4 + $0x8] sm:$0xff] %vm369_vm2, %v332_v21  ;;  %v334_v44 = vpop.f32.mrf.mxu1 }
 0x140   :  { %1898 = vmatmul.msk.f32.gmra.mxu0 %vm360_vm1, %v3275_v55  ;;  %1906 = vmatmul.msk.f32.gmra.mxu1 %vm360_vm1, %v3275_v55  ;;  %374 = vst.msk [vmem:[#allocation4 + $0x20] sm:$0xff] %vm369_vm2, %v341_v24  ;;  %v335_v62 = vadd.f32 %v334_v44, %v242_v29 }
 0x141   :  { %870 = vadd.xlane.f32.xlu1 %v869_v59 }
 0x142   :  { %372 = vst.msk [vmem:[#allocation4 + $0x10] sm:$0xff] %vm369_vm2, %v335_v62 }
 0x147   :  { %1883 = vmatmul.msk.f32.gmra.mxu2 %vm360_vm1, %v3289_v61  ;;  %1891 = vmatmul.msk.f32.gmra.mxu3 %vm360_vm1, %v3289_v61  ;;  %v337_v22 = vpop.f32.mrf.mxu1 }
 0x148   :  { %1899 = vmatmul.msk.f32.gmra.mxu0 %vm360_vm1, %v3289_v61  ;;  %1907 = vmatmul.msk.f32.gmra.mxu1 %vm360_vm1, %v3289_v61  ;;  %v338_v45 = vadd.f32 %v337_v22, %v242_v29 }
 0x14a   :  { %373 = vst.msk [vmem:[#allocation4 + $0x18] sm:$0xff] %vm369_vm2, %v338_v45 }
 0x14f   :  { %1884 = vmatmul.msk.f32.gmra.mxu2 %vm360_vm1, %v3300_v26  ;;  %1892 = vmatmul.msk.f32.gmra.mxu3 %vm360_vm1, %v3300_v26 }
 0x150   :  { %1900 = vmatmul.msk.f32.gmra.mxu0 %vm360_vm1, %v3300_v26  ;;  %1908 = vmatmul.msk.f32.gmra.mxu1 %vm360_vm1, %v3300_v26 }
 0x157   :  { %1885 = vmatmul.msk.f32.gmra.mxu2 %vm360_vm1, %v3311_v58  ;;  %1893 = vmatmul.msk.f32.gmra.mxu3 %vm360_vm1, %v3311_v58 }
 0x158   :  { %1901 = vmatmul.msk.f32.gmra.mxu0 %vm360_vm1, %v3311_v58  ;;  %1909 = vmatmul.msk.f32.gmra.mxu1 %vm360_vm1, %v3311_v58 }
 0x15f   :  { %1910 = vmatmul.msk.f32.vlgmr.msra.gmra.mxu2 %vm360_vm1, %v3175_v43  ;;  %1918 = vmatmul.msk.f32.vlgmr.msra.gmra.mxu3 %vm360_vm1, %v3175_v43 }
 0x160   :  { %1926 = vmatmul.msk.f32.vlgmr.msra.gmra.mxu0 %vm360_vm1, %v3175_v43  ;;  %1934 = vmatmul.msk.f32.vlgmr.msra.gmra.mxu1 %vm360_vm1, %v3175_v43  ;;  %v343_v43 = vpop.f32.mrf.mxu3 }
 0x161   :  { %v344_v56 = vadd.f32 %v343_v43, %v242_v29 }
 0x163   :  { %375 = vst.msk [vmem:[#allocation4 + $0x28] sm:$0xff] %vm369_vm2, %v344_v56 }
 0x167   :  { %1911 = vmatmul.msk.f32.gmra.mxu2 %vm360_vm1, %v3205_v28  ;;  %1919 = vmatmul.msk.f32.gmra.mxu3 %vm360_vm1, %v3205_v28 }
 0x168   :  { %1927 = vmatmul.msk.f32.gmra.mxu0 %vm360_vm1, %v3205_v28  ;;  %1935 = vmatmul.msk.f32.gmra.mxu1 %vm360_vm1, %v3205_v28  ;;  %v346_v28 = vpop.f32.mrf.mxu3 }
 0x169   :  { %v347_v60 = vadd.f32 %v346_v28, %v242_v29 }
 0x16b   :  { %376 = vst.msk [vmem:[#allocation4 + $0x30] sm:$0xff] %vm369_vm2, %v347_v60 }
 0x16f   :  { %1912 = vmatmul.msk.f32.gmra.mxu2 %vm360_vm1, %v3226_v41  ;;  %1920 = vmatmul.msk.f32.gmra.mxu3 %vm360_vm1, %v3226_v41 }
 0x170   :  { %1928 = vmatmul.msk.f32.gmra.mxu0 %vm360_vm1, %v3226_v41  ;;  %1936 = vmatmul.msk.f32.gmra.mxu1 %vm360_vm1, %v3226_v41  ;;  %v349_v41 = vpop.f32.mrf.mxu3 }
 0x171   :  { %v350_v59 = vadd.f32 %v349_v41, %v242_v29 }
 0x173   :  { %377 = vst.msk [vmem:[#allocation4 + $0x38] sm:$0xff] %vm369_vm2, %v350_v59 }
 0x177   :  { %1913 = vmatmul.msk.f32.gmra.mxu2 %vm360_vm1, %v3257_v46  ;;  %1921 = vmatmul.msk.f32.gmra.mxu3 %vm360_vm1, %v3257_v46 }
 0x178   :  { %1929 = vmatmul.msk.f32.gmra.mxu0 %vm360_vm1, %v3257_v46  ;;  %1937 = vmatmul.msk.f32.gmra.mxu1 %vm360_vm1, %v3257_v46 }
 0x17f   :  { %1914 = vmatmul.msk.f32.gmra.mxu2 %vm360_vm1, %v3275_v55  ;;  %1922 = vmatmul.msk.f32.gmra.mxu3 %vm360_vm1, %v3275_v55 }
 0x180   :  { %1930 = vmatmul.msk.f32.gmra.mxu0 %vm360_vm1, %v3275_v55  ;;  %1938 = vmatmul.msk.f32.gmra.mxu1 %vm360_vm1, %v3275_v55 }
 0x187   :  { %1915 = vmatmul.msk.f32.gmra.mxu2 %vm360_vm1, %v3289_v61  ;;  %1923 = vmatmul.msk.f32.gmra.mxu3 %vm360_vm1, %v3289_v61 }
 0x188   :  { %1931 = vmatmul.msk.f32.gmra.mxu0 %vm360_vm1, %v3289_v61  ;;  %1939 = vmatmul.msk.f32.gmra.mxu1 %vm360_vm1, %v3289_v61 }
 0x18f   :  { %1916 = vmatmul.msk.f32.gmra.mxu2 %vm360_vm1, %v3300_v26  ;;  %1924 = vmatmul.msk.f32.gmra.mxu3 %vm360_vm1, %v3300_v26 }
 0x190   :  { %1932 = vmatmul.msk.f32.gmra.mxu0 %vm360_vm1, %v3300_v26  ;;  %1940 = vmatmul.msk.f32.gmra.mxu1 %vm360_vm1, %v3300_v26 }
 0x194   :  { %v850_v46 = vpop.xlane.xlu0 %849 }
 0x195   :  { %873 = vst.msk [vmem:[#allocation5] sm:$0xff] %vm872_vm3, %v850_v46 }
 0x197   :  { %1917 = vmatmul.msk.f32.gmra.mxu2 %vm360_vm1, %v3311_v58  ;;  %1925 = vmatmul.msk.f32.gmra.mxu3 %vm360_vm1, %v3311_v58 }
 0x198   :  { %1933 = vmatmul.msk.f32.gmra.mxu0 %vm360_vm1, %v3311_v58  ;;  %1941 = vmatmul.msk.f32.gmra.mxu1 %vm360_vm1, %v3311_v58 }
 0x19c   :  { %v853_v55 = vpop.xlane.xlu0 %852  ;;  %v862_v61 = vpop.xlane.xlu2 %861 }
 0x19d   :  { %874 = vst.msk [vmem:[#allocation5 + $0x8] sm:$0xff] %vm872_vm3, %v853_v55  ;;  %v544_v26 = vpop.f32.mrf.mxu0  ;;  %v585_v29 = vpop.f32.mrf.mxu1 }
 0x19e   :  { %775 = vst [vmem:[#allocation3 + $0x10] sm:$0xff] %v544_v26 }
 0x19f   :  { %776 = vst [vmem:[#allocation3 + $0x18] sm:$0xff] %v585_v29 }
 0x1a0   :  { %877 = vst.msk [vmem:[#allocation5 + $0x20] sm:$0xff] %vm872_vm3, %v862_v61 }
 0x1a2   :  { %v462_v39 = vpop.f32.mrf.mxu2  ;;  %v503_v25 = vpop.f32.mrf.mxu3 }
 0x1a3   :  { %773 = vst [vmem:[#allocation3] sm:$0xff] %v462_v39 }
 0x1a4   :  { %774 = vst [vmem:[#allocation3 + $0x8] sm:$0xff] %v503_v25  ;;  %v856_v42 = vpop.xlane.xlu1 %855  ;;  %v865_v27 = vpop.xlane.xlu2 %864 }
 0x1a5   :  { %875 = vst.msk [vmem:[#allocation5 + $0x10] sm:$0xff] %vm872_vm3, %v856_v42  ;;  %v547_v24 = vpop.f32.mrf.mxu0  ;;  %v588_v58 = vpop.f32.mrf.mxu1 }
 0x1a6   :  { %783 = vst [vmem:[#allocation3 + $0x50] sm:$0xff] %v547_v24 }
 0x1a7   :  { %784 = vst [vmem:[#allocation3 + $0x58] sm:$0xff] %v588_v58 }
 0x1a8   :  { %878 = vst.msk [vmem:[#allocation5 + $0x28] sm:$0xff] %vm872_vm3, %v865_v27 }
 0x1aa   :  { %v465_v21 = vpop.f32.mrf.mxu2  ;;  %v506_v43 = vpop.f32.mrf.mxu3 }
 0x1ab   :  { %781 = vst [vmem:[#allocation3 + $0x40] sm:$0xff] %v465_v21 }
 0x1ac   :  { %782 = vst [vmem:[#allocation3 + $0x48] sm:$0xff] %v506_v43  ;;  %v859_v44 = vpop.xlane.xlu1 %858  ;;  %v868_v56 = vpop.xlane.xlu0 %867 }
 0x1ad   :  { %876 = vst.msk [vmem:[#allocation5 + $0x18] sm:$0xff] %vm872_vm3, %v859_v44  ;;  %v550_v62 = vpop.f32.mrf.mxu0  ;;  %v591_v28 = vpop.f32.mrf.mxu1 }
 0x1ae   :  { %791 = vst [vmem:[#allocation3 + $0x90] sm:$0xff] %v550_v62 }
 0x1af   :  { %792 = vst [vmem:[#allocation3 + $0x98] sm:$0xff] %v591_v28 }
 0x1b0   :  { %879 = vst.msk [vmem:[#allocation5 + $0x30] sm:$0xff] %vm872_vm3, %v868_v56 }
 0x1b2   :  { %v468_v60 = vpop.f32.mrf.mxu2  ;;  %v509_v22 = vpop.f32.mrf.mxu3 }
 0x1b3   :  { %789 = vst [vmem:[#allocation3 + $0x80] sm:$0xff] %v468_v60 }
 0x1b4   :  { %790 = vst [vmem:[#allocation3 + $0x88] sm:$0xff] %v509_v22  ;;  %v871_v45 = vpop.xlane.xlu1 %870 }
 0x1b5   :  { %v553_v41 = vpop.f32.mrf.mxu0  ;;  %v594_v59 = vpop.f32.mrf.mxu1  ;;  %880 = vst.msk [vmem:[#allocation5 + $0x38] sm:$0xff] %vm872_vm3, %v871_v45 }
 0x1b6   :  { %799 = vst [vmem:[#allocation3 + $0xd0] sm:$0xff] %v553_v41 }
 0x1b7   :  { %800 = vst [vmem:[#allocation3 + $0xd8] sm:$0xff] %v594_v59 }
 0x1ba   :  { %v471_v46 = vpop.f32.mrf.mxu2  ;;  %v512_v55 = vpop.f32.mrf.mxu3 }
 0x1bb   :  { %797 = vst [vmem:[#allocation3 + $0xc0] sm:$0xff] %v471_v46 }
 0x1bc   :  { %798 = vst [vmem:[#allocation3 + $0xc8] sm:$0xff] %v512_v55 }
 0x1bd   :  { %v556_v61 = vpop.f32.mrf.mxu0  ;;  %v597_v26 = vpop.f32.mrf.mxu1 }
 0x1be   :  { %807 = vst [vmem:[#allocation3 + $0x110] sm:$0xff] %v556_v61 }
 0x1bf   :  { %808 = vst [vmem:[#allocation3 + $0x118] sm:$0xff] %v597_v26 }
 0x1c2   :  { %v474_v29 = vpop.f32.mrf.mxu2  ;;  %v515_v39 = vpop.f32.mrf.mxu3 }
 0x1c3   :  { %805 = vst [vmem:[#allocation3 + $0x100] sm:$0xff] %v474_v29 }
 0x1c4   :  { %806 = vst [vmem:[#allocation3 + $0x108] sm:$0xff] %v515_v39 }
 0x1c5   :  { %v559_v25 = vpop.f32.mrf.mxu0  ;;  %v600_v42 = vpop.f32.mrf.mxu1 }
 0x1c6   :  { %815 = vst [vmem:[#allocation3 + $0x150] sm:$0xff] %v559_v25 }
 0x1c7   :  { %816 = vst [vmem:[#allocation3 + $0x158] sm:$0xff] %v600_v42 }
 0x1ca   :  { %v477_v27 = vpop.f32.mrf.mxu2  ;;  %v518_v24 = vpop.f32.mrf.mxu3 }
 0x1cb   :  { %813 = vst [vmem:[#allocation3 + $0x140] sm:$0xff] %v477_v27 }
 0x1cc   :  { %814 = vst [vmem:[#allocation3 + $0x148] sm:$0xff] %v518_v24 }
 0x1cd   :  { %v562_v58 = vpop.f32.mrf.mxu0  ;;  %v603_v21 = vpop.f32.mrf.mxu1 }
 0x1ce   :  { %823 = vst [vmem:[#allocation3 + $0x190] sm:$0xff] %v562_v58 }
 0x1cf   :  { %824 = vst [vmem:[#allocation3 + $0x198] sm:$0xff] %v603_v21 }
 0x1d2   :  { %v480_v43 = vpop.f32.mrf.mxu2  ;;  %v521_v44 = vpop.f32.mrf.mxu3 }
 0x1d3   :  { %821 = vst [vmem:[#allocation3 + $0x180] sm:$0xff] %v480_v43  ;;  %v881_v43 = vld [vmem:[%s3924_s1] sm:$0xff]   ;;  %s3407_s1 = smov 0  }
 0x1d4   :  { %822 = vst [vmem:[#allocation3 + $0x188] sm:$0xff] %v521_v44 }
 0x1d5   :  { %v565_v56 = vpop.f32.mrf.mxu0  ;;  %v606_v62 = vpop.f32.mrf.mxu1 }
 0x1d6   :  { %831 = vst [vmem:[#allocation3 + $0x1d0] sm:$0xff] %v565_v56 }
 0x1d7   :  { %832 = vst [vmem:[#allocation3 + $0x1d8] sm:$0xff] %v606_v62 }
 0x1da   :  { %v483_v28 = vpop.f32.mrf.mxu2  ;;  %v524_v60 = vpop.f32.mrf.mxu3 }
 0x1db   :  { %829 = vst [vmem:[#allocation3 + $0x1c0] sm:$0xff] %v483_v28 }
 0x1dc   :  { %830 = vst [vmem:[#allocation3 + $0x1c8] sm:$0xff] %v524_v60 }
 0x1dd   :  { %v708_v22 = vpop.f32.mrf.mxu0  ;;  %v749_v45 = vpop.f32.mrf.mxu1 }
 0x1de   :  { %779 = vst [vmem:[#allocation3 + $0x30] sm:$0xff] %v708_v22 }
 0x1df   :  { %780 = vst [vmem:[#allocation3 + $0x38] sm:$0xff] %v749_v45 }
 0x1e2   :  { %v626_v41 = vpop.f32.mrf.mxu2  ;;  %v667_v59 = vpop.f32.mrf.mxu3 }
 0x1e3   :  { %777 = vst [vmem:[#allocation3 + $0x20] sm:$0xff] %v626_v41 }
 0x1e4   :  { %778 = vst [vmem:[#allocation3 + $0x28] sm:$0xff] %v667_v59 }
 0x1e5   :  { %v711_v46 = vpop.f32.mrf.mxu0  ;;  %v752_v55 = vpop.f32.mrf.mxu1 }
 0x1e6   :  { %787 = vst [vmem:[#allocation3 + $0x70] sm:$0xff] %v711_v46 }
 0x1e7   :  { %788 = vst [vmem:[#allocation3 + $0x78] sm:$0xff] %v752_v55 }
 0x1ea   :  { %v629_v61 = vpop.f32.mrf.mxu2  ;;  %v670_v26 = vpop.f32.mrf.mxu3 }
 0x1eb   :  { %785 = vst [vmem:[#allocation3 + $0x60] sm:$0xff] %v629_v61 }
 0x1ec   :  { %786 = vst [vmem:[#allocation3 + $0x68] sm:$0xff] %v670_v26 }
 0x1ed   :  { %v714_v29 = vpop.f32.mrf.mxu0  ;;  %v755_v39 = vpop.f32.mrf.mxu1 }
 0x1ee   :  { %795 = vst [vmem:[#allocation3 + $0xb0] sm:$0xff] %v714_v29 }
 0x1ef   :  { %796 = vst [vmem:[#allocation3 + $0xb8] sm:$0xff] %v755_v39 }
 0x1f2   :  { %v632_v25 = vpop.f32.mrf.mxu2  ;;  %v673_v42 = vpop.f32.mrf.mxu3 }
 0x1f3   :  { %793 = vst [vmem:[#allocation3 + $0xa0] sm:$0xff] %v632_v25 }
 0x1f4   :  { %794 = vst [vmem:[#allocation3 + $0xa8] sm:$0xff] %v673_v42 }
 0x1f5   :  { %v717_v27 = vpop.f32.mrf.mxu0  ;;  %v758_v24 = vpop.f32.mrf.mxu1 }
 0x1f6   :  { %803 = vst [vmem:[#allocation3 + $0xf0] sm:$0xff] %v717_v27 }
 0x1f7   :  { %804 = vst [vmem:[#allocation3 + $0xf8] sm:$0xff] %v758_v24 }
 0x1fa   :  { %v635_v58 = vpop.f32.mrf.mxu2  ;;  %v676_v21 = vpop.f32.mrf.mxu3 }
 0x1fb   :  { %801 = vst [vmem:[#allocation3 + $0xe0] sm:$0xff] %v635_v58 }
 0x1fc   :  { %802 = vst [vmem:[#allocation3 + $0xe8] sm:$0xff] %v676_v21 }
 0x1fd   :  { %v720_v44 = vpop.f32.mrf.mxu0  ;;  %v761_v56 = vpop.f32.mrf.mxu1 }
 0x1fe   :  { %811 = vst [vmem:[#allocation3 + $0x130] sm:$0xff] %v720_v44 }
 0x1ff   :  { %812 = vst [vmem:[#allocation3 + $0x138] sm:$0xff] %v761_v56 }
 0x202   :  { %v638_v62 = vpop.f32.mrf.mxu2  ;;  %v679_v28 = vpop.f32.mrf.mxu3 }
 0x203   :  { %809 = vst [vmem:[#allocation3 + $0x120] sm:$0xff] %v638_v62 }
 0x204   :  { %810 = vst [vmem:[#allocation3 + $0x128] sm:$0xff] %v679_v28 }
 0x205   :  { %v723_v60 = vpop.f32.mrf.mxu0  ;;  %v764_v22 = vpop.f32.mrf.mxu1 }
 0x206   :  { %819 = vst [vmem:[#allocation3 + $0x170] sm:$0xff] %v723_v60 }
 0x207   :  { %820 = vst [vmem:[#allocation3 + $0x178] sm:$0xff] %v764_v22 }
 0x20a   :  { %v641_v45 = vpop.f32.mrf.mxu2  ;;  %v682_v41 = vpop.f32.mrf.mxu3 }
 0x20b   :  { %817 = vst [vmem:[#allocation3 + $0x160] sm:$0xff] %v641_v45 }
 0x20c   :  { %818 = vst [vmem:[#allocation3 + $0x168] sm:$0xff] %v682_v41 }
 0x20d   :  { %v726_v59 = vpop.f32.mrf.mxu0  ;;  %v767_v46 = vpop.f32.mrf.mxu1 }
 0x20e   :  { %827 = vst [vmem:[#allocation3 + $0x1b0] sm:$0xff] %v726_v59 }
 0x20f   :  { %828 = vst [vmem:[#allocation3 + $0x1b8] sm:$0xff] %v767_v46 }
 0x212   :  { %v644_v55 = vpop.f32.mrf.mxu2  ;;  %v685_v61 = vpop.f32.mrf.mxu3 }
 0x213   :  { %825 = vst [vmem:[#allocation3 + $0x1a0] sm:$0xff] %v644_v55 }
 0x214   :  { %826 = vst [vmem:[#allocation3 + $0x1a8] sm:$0xff] %v685_v61 }
 0x215   :  { %v729_v26 = vpop.f32.mrf.mxu0  ;;  %v770_v29 = vpop.f32.mrf.mxu1 }
 0x216   :  { %835 = vst [vmem:[#allocation3 + $0x1f0] sm:$0xff] %v729_v26 }
 0x217   :  { %836 = vst [vmem:[#allocation3 + $0x1f8] sm:$0xff] %v770_v29 }
 0x21a   :  { %v647_v39 = vpop.f32.mrf.mxu2  ;;  %v688_v25 = vpop.f32.mrf.mxu3 }
 0x21b   :  { %833 = vst [vmem:[#allocation3 + $0x1e0] sm:$0xff] %v647_v39 }
 0x21c   :  { %834 = vst [vmem:[#allocation3 + $0x1e8] sm:$0xff] %v688_v25 }
 0x21d LB: > { %v4214_v20 = vld [vmem:[#allocation29_spill] sm:$0xff]  ;;  %v4215_v18 = vld [vmem:[#allocation27_spill] sm:$0xff]  ;;  %v4216_v9 = vld [vmem:[#allocation18_spill] sm:$0xff]  ;;  %s3433_s16 = sshll.u32 %s2057_s1, 3  ;;  %v954_v21 = vmul.f32 0.0, %v2053_v43  ;;  %s887_s1 = sadd.s32 1, %s2057_s1   ;;  %v2053_v43 = vphi %v881_v43, %v4479_v43   ;;  %s2057_s1 = sphi %s3407_s1, %s887_s1  }
 0x21e   : > { %946 = vmatpush.msra.mxu0 %v4215_v18  ;;  %v4217_v10 = vld [vmem:[#allocation19_spill] sm:$0xff]  ;;  %v4218_v11 = vld [vmem:[#allocation20_spill] sm:$0xff]  ;;  %v4219_v12 = vld [vmem:[#allocation21_spill] sm:$0xff]  ;;  %v4044_v42 = vperm.slane %v4214_v20, 0  ;;  %s905_s10 = scalar_lea.vmem [#allocation4], %s3433_s16  ;;  %s892_s17 = sshra.s32 %s3433_s16, 3 }
 0x21f   : > { %973 = vmatpush.msra.mxu1 %v4217_v10  ;;  %993 = vmatpush.msra.mxu2 %v4218_v11  ;;  %v4220_v1 = vld [vmem:[#allocation10_spill] sm:$0xff]  ;;  %v4221_v2 = vld [vmem:[#allocation11_spill] sm:$0xff]  ;;  %v4223_v3 = vld [vmem:[#allocation12_spill] sm:$0xff]  ;;  %s1979_s18 = sshll.u32 %s892_s17, 6  ;;  %s907_s19 = scalar_lea.vmem [#allocation5], %s3433_s16 }
 0x220   : > { %1013 = vmatpush.msra.mxu3 %v4219_v12  ;;  %947 = vmatpush.msra.mxu0 %v4216_v9  ;;  %v4222_v13 = vld [vmem:[#allocation22_spill] sm:$0xff]  ;;  %v4224_v14 = vld [vmem:[#allocation23_spill] sm:$0xff]  ;;  %v4225_v15 = vld [vmem:[#allocation24_spill] sm:$0xff]  ;;  %s3838_s20 = scalar_lea.vmem [#allocation3], %s1979_s18  ;;  %s890_s3 = scalar_lea.vmem [#allocation2], %s3433_s16 }
 0x221   : > { %974 = vmatpush.msra.mxu1 %v4220_v1  ;;  %1945 = vmatmul.msk.f32.vlgmr.msra.gmra.mxu0 %vm369_vm2, %v2053_v43  ;;  %v4226_v4 = vld [vmem:[#allocation13_spill] sm:$0xff]  ;;  %v4228_v17 = vld [vmem:[#allocation26_spill] sm:$0xff]  ;;  %v4230_v6 = vld [vmem:[#allocation15_spill] sm:$0xff]  ;;  %s1732_s21 = scalar_lea.vmem [#allocation6], %s3433_s16  ;;  %p884_p0 = scmp.ge.s32.totalorder %s887_s1, 8  }
 0x222   : > { %994 = vmatpush.msra.mxu2 %v4221_v2  ;;  %1033 = vmatpush.msrb.mxu0 %v4222_v13  ;;  %v4227_v16 = vld [vmem:[#allocation25_spill] sm:$0xff]  ;;  %v4229_v5 = vld [vmem:[#allocation14_spill] sm:$0xff]  ;;  %v4231_v7 = vld [vmem:[#allocation16_spill] sm:$0xff]  ;;  %s1833_s27 = sshll.u32 (%p884_p0), %s3937_s14, 4  ;;  %s1834_s27 = int_to_ptr.hbm [resolvable:$true] %s1833_s27 }
 0x223   : > { %1014 = vmatpush.msra.mxu3 %v4223_v3  ;;  %1053 = vmatpush.msrb.mxu1 %v4224_v14  ;;  %v4232_v8 = vld [vmem:[#allocation17_spill] sm:$0xff]  ;;  %v4233_v43 = vld [vmem:[#allocation48_spill] sm:$0xff]  ;;  %v4235_v60 = vld [vmem:[#allocation38_spill] sm:$0xff] }
 0x224   : > { %1073 = vmatpush.msrb.mxu2 %v4225_v15  ;;  %1034 = vmatpush.msrb.mxu0 %v4226_v4  ;;  %v3437_v27 = vld [vmem:[%s905_s10] sm:$0xff]  ;;  %v4234_v28 = vmov %v4233_v43  ;;  %v4236_v22 = vld [vmem:[#allocation58_spill] sm:$0xff]  ;;  %v4238_v41 = vld [vmem:[#allocation47_spill] sm:$0xff] }
 0x225   : > { %1093 = vmatpush.msrb.mxu3 %v4227_v16  ;;  %1054 = vmatpush.msrb.mxu1 %v4229_v5  ;;  %v4237_v45 = vld [vmem:[#allocation70_spill] sm:$0xff]  ;;  %v4239_v59 = vld [vmem:[#allocation37_spill] sm:$0xff]  ;;  %v4243_v26 = vld [vmem:[#allocation36_spill] sm:$0xff] }
 0x226   : > { %1113 = vmatpush.msra.mxu0 %v4228_v17  ;;  %1074 = vmatpush.msrb.mxu2 %v4230_v6  ;;  %v4240_v46 = vld [vmem:[#allocation57_spill] sm:$0xff]  ;;  %v4242_v61 = vld [vmem:[#allocation46_spill] sm:$0xff]  ;;  %v4244_v29 = vld [vmem:[#allocation56_spill] sm:$0xff] }
 0x227   : > { %1094 = vmatpush.msrb.mxu3 %v4231_v7  ;;  %v4241_v55 = vld [vmem:[#allocation69_spill] sm:$0xff]  ;;  %v4245_v39 = vld [vmem:[#allocation68_spill] sm:$0xff]  ;;  %v4253_v1 = vld [vmem:[#allocation66_spill] sm:$0xff] }
 0x228   : > { %1114 = vmatpush.msra.mxu0 %v4232_v8  ;;  %v4246_v25 = vld [vmem:[#allocation45_spill] sm:$0xff]  ;;  %v4254_v2 = vld [vmem:[#allocation43_spill] sm:$0xff]  ;;  %v4258_v6 = vld [vmem:[#allocation42_spill] sm:$0xff] }
 0x229   : > { %v4255_v3 = vld [vmem:[#allocation33_spill] sm:$0xff]  ;;  %v4259_v7 = vld [vmem:[#allocation32_spill] sm:$0xff]  ;;  %v4264_v12 = vld [vmem:[#allocation51_spill] sm:$0xff] }
 0x22a   : > { %v4256_v4 = vld [vmem:[#allocation53_spill] sm:$0xff]  ;;  %v4260_v8 = vld [vmem:[#allocation52_spill] sm:$0xff]  ;;  %v4265_v13 = vld [vmem:[#allocation63_spill] sm:$0xff] }
 0x22b   : > { %v4257_v5 = vld [vmem:[#allocation65_spill] sm:$0xff]  ;;  %v4266_v14 = vld [vmem:[#allocation40_spill] sm:$0xff]  ;;  %v4267_v15 = vld [vmem:[#allocation30_spill] sm:$0xff] }
 0x22c   : > { %v4262_v10 = vld [vmem:[#allocation41_spill] sm:$0xff]  ;;  %v4268_v16 = vld [vmem:[#allocation50_spill] sm:$0xff] }
 0x22d   : > { %v4269_v17 = vld [vmem:[#allocation62_spill] sm:$0xff]  ;;  %v4273_v11 = vld [vmem:[#allocation61_spill] sm:$0xff] }
 0x29e   : > { %v949_v24 = vpop.f32.mrf.mxu0 }
 0x29f   : > { %v950_v58 = vadd.f32 %v949_v24, %v4044_v42  ;;  %v4247_v24 = vld [vmem:[#allocation35_spill] sm:$0xff] }
 0x2a1   : > { %v952_v44 = vadd.f32 %v950_v58, %v3437_v27  ;;  %v4248_v58 = vld [vmem:[#allocation55_spill] sm:$0xff] }
 0x2a3   : > { %v953_v56 = vmax.f32 %v952_v44, 0.0  ;;  %v4250_v44 = vld [vmem:[#allocation44_spill] sm:$0xff] }
 0x2a5   : > { %v3442_v62 = vadd.f32 %v954_v21, %v953_v56  ;;  %v4249_v21 = vld [vmem:[#allocation67_spill] sm:$0xff]  ;;  %v4251_v56 = vld [vmem:[#allocation34_spill] sm:$0xff] }
 0x2a7   : > { %1946 = vmatmul.msk.f32.vlgmr.msra.gmra.mxu1 %vm369_vm2, %v3442_v62  ;;  %1947 = vmatmul.msk.f32.vlgmr.msra.gmra.mxu2 %vm369_vm2, %v3442_v62 }
 0x2a8   : > { %1948 = vmatmul.msk.f32.vlgmr.msra.gmra.mxu3 %vm369_vm2, %v3442_v62  ;;  %1949 = vmatmul.msk.f32.vlgmr.msrb.gmra.mxu0 %vm369_vm2, %v3442_v62 }
 0x2a9   : > { %1133 = vmatpush.msra.mxu1 %v4215_v18  ;;  %1151 = vmatpush.msra.mxu2 %v2317_v36  ;;  %v4270_v18 = vld [vmem:[#allocation86_spill] sm:$0xff] }
 0x2aa   : > { %1174 = vmatpush.msra.mxu3 %v2397_v52  ;;  %1197 = vmatpush.msrb.mxu0 %v2477_v54 }
 0x2ab   : > { %1134 = vmatpush.msra.mxu1 %v4216_v9  ;;  %1152 = vmatpush.msra.mxu2 %v2312_v35  ;;  %v4261_v9 = vld [vmem:[#allocation64_spill] sm:$0xff] }
 0x2ac   : > { %1175 = vmatpush.msra.mxu3 %v2392_v51  ;;  %1198 = vmatpush.msrb.mxu0 %v2472_v37 }
 0x2ad   : > { %1153 = vmatpush.msra.mxu2 %v2307_v34 }
 0x2ae   : > { %1176 = vmatpush.msra.mxu3 %v2387_v50  ;;  %1199 = vmatpush.msrb.mxu0 %v2467_v53 }
 0x2af   : > { %1950 = vmatmul.msk.f32.vlgmr.msrb.gmra.mxu1 %vm369_vm2, %v3442_v62  ;;  %1951 = vmatmul.msk.f32.vlgmr.msrb.gmra.mxu2 %vm369_vm2, %v3442_v62 }
 0x2b0   : > { %1952 = vmatmul.msk.f32.vlgmr.msrb.gmra.mxu3 %vm369_vm2, %v3442_v62  ;;  %1953 = vmatmul.msk.f32.vlgmr.msra.gmra.mxu0 %vm369_vm2, %v3442_v62 }
 0x2b1   : > { %1220 = vmatpush.msrb.mxu1 %v2557_v57  ;;  %1154 = vmatpush.msra.mxu2 %v2302_v33 }
 0x2b2   : > { %1177 = vmatpush.msra.mxu3 %v2382_v49  ;;  %1200 = vmatpush.msrb.mxu0 %v2462_v19 }
 0x2b3   : > { %1221 = vmatpush.msrb.mxu1 %v2552_v38  ;;  %1155 = vmatpush.msra.mxu2 %v2297_v32 }
 0x2b4   : > { %1178 = vmatpush.msra.mxu3 %v2377_v48  ;;  %1201 = vmatpush.msrb.mxu0 %v2457_v0 }
 0x2b5   : > { %1222 = vmatpush.msrb.mxu1 %v2547_v40  ;;  %1156 = vmatpush.msra.mxu2 %v2292_v31 }
 0x2b6   : > { %1179 = vmatpush.msra.mxu3 %v2372_v47  ;;  %1202 = vmatpush.msrb.mxu0 %v2452_v63 }
 0x2b7   : > { %1954 = vmatmul.msk.f32.vlgmr.msra.gmra.mxu1 %vm369_vm2, %v3442_v62  ;;  %1157 = vmatpush.msra.mxu2 %v2287_v30 }
 0x2b8   : > { %1223 = vmatpush.msrb.mxu1 %v2542_v23  ;;  %1180 = vmatpush.msra.mxu3 %v4233_v43  ;;  %v4252_v43 = vld [vmem:[#allocation54_spill] sm:$0xff] }
 0x2b9   : > { %1158 = vmatpush.msra.mxu2 %v4235_v60  ;;  %1203 = vmatpush.msrb.mxu0 %v4236_v22 }
 0x2ba   : > { %1224 = vmatpush.msrb.mxu1 %v4237_v45  ;;  %1181 = vmatpush.msra.mxu3 %v4238_v41 }
 0x2bb   : > { %1159 = vmatpush.msra.mxu2 %v4239_v59  ;;  %1204 = vmatpush.msrb.mxu0 %v4240_v46 }
 0x2bc   : > { %1225 = vmatpush.msrb.mxu1 %v4241_v55  ;;  %1182 = vmatpush.msra.mxu3 %v4242_v61 }
 0x2bd   : > { %1160 = vmatpush.msra.mxu2 %v4243_v26  ;;  %1205 = vmatpush.msrb.mxu0 %v4244_v29 }
 0x2be   : > { %1226 = vmatpush.msrb.mxu1 %v4245_v39  ;;  %1183 = vmatpush.msra.mxu3 %v4246_v25 }
 0x2bf   : > { %1161 = vmatpush.msra.mxu2 %v4247_v24  ;;  %1206 = vmatpush.msrb.mxu0 %v4248_v58 }
 0x2c0   : > { %1227 = vmatpush.msrb.mxu1 %v4249_v21  ;;  %1184 = vmatpush.msra.mxu3 %v4250_v44 }
 0x2c1   : > { %1162 = vmatpush.msra.mxu2 %v4251_v56  ;;  %1207 = vmatpush.msrb.mxu0 %v4252_v43  ;;  %v4263_v43 = vld [vmem:[#allocation31_spill] sm:$0xff] }
 0x2c2   : > { %1228 = vmatpush.msrb.mxu1 %v4253_v1  ;;  %1185 = vmatpush.msra.mxu3 %v4254_v2  ;;  %v4348_v56 = vld [vmem:[#allocation143_spill] sm:$0xff] }
 0x2c3   : > { %1163 = vmatpush.msra.mxu2 %v4255_v3  ;;  %1208 = vmatpush.msrb.mxu0 %v4256_v4  ;;  %v4276_v3 = vld [vmem:[#allocation118_spill] sm:$0xff] }
 0x2c4   : > { %1229 = vmatpush.msrb.mxu1 %v4257_v5  ;;  %1186 = vmatpush.msra.mxu3 %v4258_v6  ;;  %v4272_v6 = vld [vmem:[#allocation49_spill] sm:$0xff] }
 0x2c5   : > { %1164 = vmatpush.msra.mxu2 %v4259_v7  ;;  %1209 = vmatpush.msrb.mxu0 %v4260_v8  ;;  %v4271_v7 = vld [vmem:[#allocation39_spill] sm:$0xff] }
 0x2c6   : > { %1230 = vmatpush.msrb.mxu1 %v4261_v9  ;;  %1187 = vmatpush.msra.mxu3 %v4262_v10  ;;  %v4284_v10 = vld [vmem:[#allocation100_spill] sm:$0xff] }
 0x2c7   : > { %1165 = vmatpush.msra.mxu2 %v4263_v43  ;;  %1210 = vmatpush.msrb.mxu0 %v4264_v12  ;;  %v4274_v43 = vld [vmem:[#allocation85_spill] sm:$0xff]  ;;  %v4275_v12 = vld [vmem:[#allocation102_spill] sm:$0xff] }
 0x2c8   : > { %1231 = vmatpush.msrb.mxu1 %v4265_v13  ;;  %1188 = vmatpush.msra.mxu3 %v4266_v14  ;;  %v4277_v14 = vld [vmem:[#allocation60_spill] sm:$0xff]  ;;  %v4349_v13 = vld [vmem:[#allocation146_spill] sm:$0xff] }
 0x2c9   : > { %1166 = vmatpush.msra.mxu2 %v4267_v15  ;;  %1211 = vmatpush.msrb.mxu0 %v4268_v16  ;;  %v4278_v15 = vld [vmem:[#allocation84_spill] sm:$0xff]  ;;  %v4279_v16 = vld [vmem:[#allocation101_spill] sm:$0xff] }
 0x2ca   : > { %1232 = vmatpush.msrb.mxu1 %v4269_v17  ;;  %1189 = vmatpush.msra.mxu3 %v4271_v7  ;;  %v4280_v17 = vld [vmem:[#allocation117_spill] sm:$0xff]  ;;  %v4282_v7 = vld [vmem:[#allocation83_spill] sm:$0xff] }
 0x2cb   : > { %1243 = vmatpush.msrb.mxu2 %v4270_v18  ;;  %1212 = vmatpush.msrb.mxu0 %v4272_v6  ;;  %v4281_v18 = vld [vmem:[#allocation59_spill] sm:$0xff]  ;;  %v4283_v6 = vld [vmem:[#allocation134_spill] sm:$0xff] }
 0x2cc   : > { %1233 = vmatpush.msrb.mxu1 %v4273_v11  ;;  %1266 = vmatpush.msrb.mxu3 %v4275_v12  ;;  %v4286_v12 = vld [vmem:[#allocation116_spill] sm:$0xff]  ;;  %v4295_v11 = vld [vmem:[#allocation131_spill] sm:$0xff] }
 0x2cd   : > { %1244 = vmatpush.msrb.mxu2 %v4274_v43  ;;  %1289 = vmatpush.msra.mxu0 %v4276_v3  ;;  %v4285_v43 = vld [vmem:[#allocation82_spill] sm:$0xff]  ;;  %v4287_v3 = vld [vmem:[#allocation133_spill] sm:$0xff] }
 0x2ce   : > { %1234 = vmatpush.msrb.mxu1 %v4277_v14  ;;  %1267 = vmatpush.msrb.mxu3 %v4279_v16  ;;  %v4288_v14 = vld [vmem:[#allocation99_spill] sm:$0xff] }
 0x2cf   : > { %1245 = vmatpush.msrb.mxu2 %v4278_v15  ;;  %1290 = vmatpush.msra.mxu0 %v4280_v17  ;;  %v4289_v15 = vld [vmem:[#allocation81_spill] sm:$0xff]  ;;  %v4290_v16 = vld [vmem:[#allocation115_spill] sm:$0xff]  ;;  %v4291_v17 = vld [vmem:[#allocation132_spill] sm:$0xff] }
 0x2d0   : > { %1235 = vmatpush.msrb.mxu1 %v4281_v18  ;;  %1268 = vmatpush.msrb.mxu3 %v4284_v10  ;;  %v4292_v18 = vld [vmem:[#allocation98_spill] sm:$0xff]  ;;  %v4306_v10 = vld [vmem:[#allocation111_spill] sm:$0xff] }
 0x2d1   : > { %1246 = vmatpush.msrb.mxu2 %v4282_v7  ;;  %1291 = vmatpush.msra.mxu0 %v4286_v12  ;;  %v4293_v7 = vld [vmem:[#allocation80_spill] sm:$0xff]  ;;  %v4297_v12 = vld [vmem:[#allocation79_spill] sm:$0xff] }
 0x2d2   : > { %1312 = vmatpush.msra.mxu1 %v4283_v6  ;;  %1269 = vmatpush.msrb.mxu3 %v4288_v14  ;;  %v4294_v6 = vld [vmem:[#allocation114_spill] sm:$0xff] }
 0x2d3   : > { %1247 = vmatpush.msrb.mxu2 %v4285_v43  ;;  %1292 = vmatpush.msra.mxu0 %v4290_v16  ;;  %v4296_v43 = vld [vmem:[#allocation97_spill] sm:$0xff]  ;;  %v4299_v14 = vld [vmem:[#allocation130_spill] sm:$0xff] }
 0x2d4   : > { %1313 = vmatpush.msra.mxu1 %v4287_v3  ;;  %1270 = vmatpush.msrb.mxu3 %v4292_v18  ;;  %v4298_v3 = vld [vmem:[#allocation113_spill] sm:$0xff]  ;;  %v4301_v16 = vld [vmem:[#allocation78_spill] sm:$0xff] }
 0x2d5   : > { %1248 = vmatpush.msrb.mxu2 %v4289_v15  ;;  %1293 = vmatpush.msra.mxu0 %v4294_v6  ;;  %v4300_v15 = vld [vmem:[#allocation96_spill] sm:$0xff]  ;;  %v4303_v18 = vld [vmem:[#allocation129_spill] sm:$0xff] }
 0x2d6   : > { %1314 = vmatpush.msra.mxu1 %v4291_v17  ;;  %1271 = vmatpush.msrb.mxu3 %v4296_v43  ;;  %v4302_v17 = vld [vmem:[#allocation112_spill] sm:$0xff]  ;;  %v4305_v6 = vld [vmem:[#allocation77_spill] sm:$0xff] }
 0x2d7   : > { %1249 = vmatpush.msrb.mxu2 %v4293_v7  ;;  %1294 = vmatpush.msra.mxu0 %v4298_v3  ;;  %v4304_v7 = vld [vmem:[#allocation95_spill] sm:$0xff]  ;;  %v4307_v43 = vld [vmem:[#allocation128_spill] sm:$0xff] }
 0x2d8   : > { %1315 = vmatpush.msra.mxu1 %v4295_v11  ;;  %1272 = vmatpush.msrb.mxu3 %v4300_v15  ;;  %v4309_v3 = vld [vmem:[#allocation76_spill] sm:$0xff]  ;;  %v4311_v15 = vld [vmem:[#allocation127_spill] sm:$0xff] }
 0x2d9   : > { %1250 = vmatpush.msrb.mxu2 %v4297_v12  ;;  %1295 = vmatpush.msra.mxu0 %v4302_v17  ;;  %v4308_v12 = vld [vmem:[#allocation94_spill] sm:$0xff]  ;;  %v4313_v17 = vld [vmem:[#allocation75_spill] sm:$0xff]  ;;  %v4339_v11 = vld [vmem:[#allocation28_spill] sm:$0xff] }
 0x2da   : > { %1316 = vmatpush.msra.mxu1 %v4299_v14  ;;  %1273 = vmatpush.msrb.mxu3 %v4304_v7  ;;  %v4310_v14 = vld [vmem:[#allocation110_spill] sm:$0xff] }
 0x2db   : > { %1251 = vmatpush.msrb.mxu2 %v4301_v16  ;;  %1296 = vmatpush.msra.mxu0 %v4306_v10  ;;  %v4312_v16 = vld [vmem:[#allocation93_spill] sm:$0xff]  ;;  %v4315_v7 = vld [vmem:[#allocation126_spill] sm:$0xff] }
 0x2dc   : > { %1317 = vmatpush.msra.mxu1 %v4303_v18  ;;  %1274 = vmatpush.msrb.mxu3 %v4308_v12  ;;  %v4314_v18 = vld [vmem:[#allocation109_spill] sm:$0xff]  ;;  %v4317_v10 = vld [vmem:[#allocation74_spill] sm:$0xff] }
 0x2dd   : > { %1252 = vmatpush.msrb.mxu2 %v4305_v6  ;;  %1297 = vmatpush.msra.mxu0 %v4310_v14  ;;  %v4316_v6 = vld [vmem:[#allocation92_spill] sm:$0xff]  ;;  %v4319_v12 = vld [vmem:[#allocation125_spill] sm:$0xff] }
 0x2de   : > { %1318 = vmatpush.msra.mxu1 %v4307_v43  ;;  %1275 = vmatpush.msrb.mxu3 %v4312_v16  ;;  %v4318_v43 = vld [vmem:[#allocation108_spill] sm:$0xff]  ;;  %v4321_v14 = vld [vmem:[#allocation73_spill] sm:$0xff] }
 0x2df   : > { %1253 = vmatpush.msrb.mxu2 %v4309_v3  ;;  %1298 = vmatpush.msra.mxu0 %v4314_v18  ;;  %v4320_v3 = vld [vmem:[#allocation91_spill] sm:$0xff]  ;;  %v4323_v16 = vld [vmem:[#allocation124_spill] sm:$0xff] }
 0x2e0   : > { %1319 = vmatpush.msra.mxu1 %v4311_v15  ;;  %1276 = vmatpush.msrb.mxu3 %v4316_v6  ;;  %v4322_v15 = vld [vmem:[#allocation107_spill] sm:$0xff]  ;;  %v4325_v18 = vld [vmem:[#allocation72_spill] sm:$0xff] }
 0x2e1   : > { %1254 = vmatpush.msrb.mxu2 %v4313_v17  ;;  %1299 = vmatpush.msra.mxu0 %v4318_v43  ;;  %v4324_v17 = vld [vmem:[#allocation90_spill] sm:$0xff]  ;;  %v4327_v6 = vld [vmem:[#allocation123_spill] sm:$0xff] }
 0x2e2   : > { %1320 = vmatpush.msra.mxu1 %v4315_v7  ;;  %1277 = vmatpush.msrb.mxu3 %v4320_v3  ;;  %v4326_v7 = vld [vmem:[#allocation106_spill] sm:$0xff]  ;;  %v4329_v43 = vld [vmem:[#allocation71_spill] sm:$0xff] }
 0x2e3   : > { %1255 = vmatpush.msrb.mxu2 %v4317_v10  ;;  %1300 = vmatpush.msra.mxu0 %v4322_v15  ;;  %v4328_v10 = vld [vmem:[#allocation89_spill] sm:$0xff]  ;;  %v4331_v3 = vld [vmem:[#allocation122_spill] sm:$0xff]  ;;  %v4333_v15 = vld [vmem:[#allocation104_spill] sm:$0xff] }
 0x2e4   : > { %1321 = vmatpush.msra.mxu1 %v4319_v12  ;;  %1278 = vmatpush.msrb.mxu3 %v4324_v17  ;;  %v4330_v12 = vld [vmem:[#allocation105_spill] sm:$0xff]  ;;  %v4335_v17 = vld [vmem:[#allocation87_spill] sm:$0xff] }
 0x2e5   : > { %1256 = vmatpush.msrb.mxu2 %v4321_v14  ;;  %1301 = vmatpush.msra.mxu0 %v4326_v7  ;;  %v4332_v14 = vld [vmem:[#allocation88_spill] sm:$0xff] }
 0x2e6   : > { %1322 = vmatpush.msra.mxu1 %v4323_v16  ;;  %1279 = vmatpush.msrb.mxu3 %v4328_v10  ;;  %v4334_v16 = vld [vmem:[#allocation121_spill] sm:$0xff]  ;;  %v4337_v7 = vld [vmem:[#allocation120_spill] sm:$0xff]  ;;  %v914_v10 = vperm.slane %v4339_v11, 3 }
 0x2e7   : > { %1257 = vmatpush.msrb.mxu2 %v4325_v18  ;;  %1302 = vmatpush.msra.mxu0 %v4330_v12  ;;  %v4336_v18 = vld [vmem:[#allocation103_spill] sm:$0xff] }
 0x2e8   : > { %1323 = vmatpush.msra.mxu1 %v4327_v6  ;;  %1280 = vmatpush.msrb.mxu3 %v4332_v14  ;;  %v4338_v6 = vld [vmem:[#allocation119_spill] sm:$0xff] }
 0x2e9   : > { %1258 = vmatpush.msrb.mxu2 %v4329_v43  ;;  %1303 = vmatpush.msra.mxu0 %v4333_v15  ;;  %v911_v43 = vperm.slane %v4339_v11, 0 }
 0x2ea   : > { %1324 = vmatpush.msra.mxu1 %v4331_v3  ;;  %1281 = vmatpush.msrb.mxu3 %v4335_v17  ;;  %v912_v17 = vperm.slane %v4339_v11, 1 }
 0x2eb   : > { %1304 = vmatpush.msra.mxu0 %v4336_v18  ;;  %v913_v18 = vperm.slane %v4339_v11, 2 }
 0x2ec   : > { %1325 = vmatpush.msra.mxu1 %v4334_v16  ;;  %v4344_v16 = vld [vmem:[#allocation151_spill] sm:$0xff] }
 0x2ee   : > { %1326 = vmatpush.msra.mxu1 %v4337_v7  ;;  %v4342_v7 = vld [vmem:[#allocation159_spill] sm:$0xff] }
 0x2f0   : > { %1327 = vmatpush.msra.mxu1 %v4338_v6  ;;  %v4343_v6 = vld [vmem:[#allocation162_spill] sm:$0xff] }
 0x324   : > { %v976_v12 = vpop.f32.mrf.mxu1 }
 0x325   : > { %v3594_v3 = vadd.f32 %v976_v12, %v911_v43  ;;  %v1036_v14 = vpop.f32.mrf.mxu0 }
 0x326   : > { %v3596_v8 = vadd.f32 %v1036_v14, %v914_v10  ;;  %v4346_v10 = vld [vmem:[#allocation154_spill] sm:$0xff] }
 0x327   : > { %4340 = vst [vmem:[#allocation167_spill] sm:$0xff] %v3594_v3  ;;  %1167 = vmatmul.f32.vlgmr.msra.gmra.mxu2 %v3594_v3 }
 0x328   : > { %4341 = vst [vmem:[#allocation168_spill] sm:$0xff] %v3596_v8  ;;  %1236 = vmatmul.f32.vlgmr.msrb.gmra.mxu1 %v3596_v8  ;;  %1369 = vmatpush.msra.mxu2 %v4342_v7  ;;  %v1143_v7 = vmul.f32 %v3594_v3, %v3594_v3  ;;  %v4356_v3 = vld [vmem:[#allocation138_spill] sm:$0xff] }
 0x329   : > { %1438 = vmatpush.msrb.mxu1 %v4343_v6  ;;  %v1146_v6 = vmul.f32 %v3596_v8, %v3596_v8 }
 0x32a   : > { %v996_v15 = vpop.f32.mrf.mxu2  ;;  %1370 = vmatpush.msra.mxu2 %v4344_v16  ;;  %v4351_v16 = vld [vmem:[#allocation161_spill] sm:$0xff] }
 0x32b   : > { %v3605_v12 = vadd.f32 %v996_v15, %v912_v17  ;;  %v1016_v43 = vpop.f32.mrf.mxu3  ;;  %1439 = vmatpush.msrb.mxu1 %v4346_v10  ;;  %v4350_v15 = vld [vmem:[#allocation160_spill] sm:$0xff] }
 0x32c   : > { %v3608_v14 = vadd.f32 %v1016_v43, %v913_v18  ;;  %v1056_v2 = vpop.f32.mrf.mxu1  ;;  %1371 = vmatpush.msra.mxu2 %v4348_v56  ;;  %v4352_v17 = vld [vmem:[#allocation152_spill] sm:$0xff]  ;;  %v915_v18 = vperm.slane %v4339_v11, 4  ;;  %v4353_v56 = vld [vmem:[#allocation153_spill] sm:$0xff]  ;;  %v4354_v43 = vld [vmem:[#allocation135_spill] sm:$0xff] }
 0x32d   : > { %4345 = vst [vmem:[#allocation169_spill] sm:$0xff] %v3605_v12  ;;  %1190 = vmatmul.f32.vlgmr.msra.gmra.mxu3 %v3605_v12  ;;  %1440 = vmatpush.msrb.mxu1 %v4349_v13  ;;  %v918_v13 = vperm.slane %v4339_v11, 7  ;;  %v4355_v10 = vld [vmem:[#allocation144_spill] sm:$0xff]  ;;  %v1116_v8 = vpop.f32.mrf.mxu0 }
 0x32e   : > { %4347 = vst [vmem:[#allocation170_spill] sm:$0xff] %v3608_v14  ;;  %1213 = vmatmul.f32.vlgmr.msrb.gmra.mxu0 %v3608_v14  ;;  %1392 = vmatpush.msra.mxu3 %v4350_v15  ;;  %v4357_v15 = vld [vmem:[#allocation145_spill] sm:$0xff] }
 0x32f   : > { %1170 = vmatmul.f32.gmra.mxu2 %v1143_v7  ;;  %1415 = vmatpush.msrb.mxu0 %v4351_v16  ;;  %v1144_v7 = vmul.f32 %v3605_v12, %v3605_v12  ;;  %v1145_v16 = vmul.f32 %v3608_v14, %v3608_v14  ;;  %v916_v12 = vperm.slane %v4339_v11, 5 }
 0x330   : > { %1239 = vmatmul.f32.gmra.mxu1 %v1146_v6  ;;  %1393 = vmatpush.msra.mxu3 %v4352_v17  ;;  %v4358_v17 = vld [vmem:[#allocation136_spill] sm:$0xff] }
 0x331   : > { %1416 = vmatpush.msrb.mxu0 %v4353_v56  ;;  %1372 = vmatpush.msra.mxu2 %v4354_v43  ;;  %v3633_v56 = vadd.f32 %v1056_v2, %v915_v18  ;;  %v4360_v43 = vperm.slane %v4214_v20, 0  ;;  %v4363_v2 = vld [vmem:[#allocation163_spill] sm:$0xff] }
 0x332   : > { %1394 = vmatpush.msra.mxu3 %v4355_v10  ;;  %1441 = vmatpush.msrb.mxu1 %v4356_v3  ;;  %v4361_v10 = vld [vmem:[#allocation137_spill] sm:$0xff]  ;;  %v3638_v3 = vadd.f32 %v1116_v8, %v918_v13  ;;  %v1076_v14 = vpop.f32.mrf.mxu2  ;;  %v4364_v8 = vld [vmem:[#allocation166_spill] sm:$0xff]  ;;  %v4365_v13 = vld [vmem:[#allocation155_spill] sm:$0xff] }
 0x333   : > { %1417 = vmatpush.msrb.mxu0 %v4357_v15  ;;  %4359 = vst [vmem:[#allocation171_spill] sm:$0xff] %v3633_v56  ;;  %v1096_v18 = vpop.f32.mrf.mxu3 }
 0x334   : > { %v1136_v6 = vpop.f32.mrf.mxu1  ;;  %1395 = vmatpush.msra.mxu3 %v4358_v17  ;;  %4362 = vst [vmem:[#allocation172_spill] sm:$0xff] %v3638_v3  ;;  %v917_v17 = vperm.slane %v4339_v11, 6  ;;  %v4370_v11 = vld [vmem:[#allocation147_spill] sm:$0xff] }
 0x335   : > { %v1137_v4 = vadd.f32 %v1136_v6, %v4360_v43  ;;  %1193 = vmatmul.f32.gmra.mxu3 %v1144_v7  ;;  %1418 = vmatpush.msrb.mxu0 %v4361_v10  ;;  %v1141_v6 = vmul.f32 0.0, %v3442_v62  ;;  %v4371_v62 = vld [vmem:[#allocation150_spill] sm:$0xff] }
 0x336   : > { %1216 = vmatmul.f32.gmra.mxu0 %v1145_v16  ;;  %v3649_v16 = vadd.f32 %v1076_v14, %v916_v12  ;;  %v3654_v10 = vadd.f32 %v1096_v18, %v917_v17  ;;  %v1150_v12 = vmul.f32 %v3638_v3, %v3638_v3  ;;  %v4372_v14 = vld [vmem:[#allocation164_spill] sm:$0xff] }
 0x337   : > { %v1139_v15 = vadd.f32 %v1137_v4, %v3437_v27  ;;  %1259 = vmatmul.f32.vlgmr.msrb.gmra.mxu2 %v3633_v56  ;;  %v4368_v27 = vld [vmem:[#allocation158_spill] sm:$0xff]  ;;  %v4374_v17 = vld [vmem:[#allocation156_spill] sm:$0xff] }
 0x338   : > { %1328 = vmatmul.f32.vlgmr.msra.gmra.mxu1 %v3638_v3  ;;  %1461 = vmatpush.msrb.mxu2 %v4363_v2  ;;  %4366 = vst [vmem:[#allocation173_spill] sm:$0xff] %v3649_v16  ;;  %v4376_v2 = vld [vmem:[#allocation139_spill] sm:$0xff]  ;;  %v4377_v18 = vld [vmem:[#allocation148_spill] sm:$0xff] }
 0x339   : > { %v1140_v7 = vmax.f32 %v1139_v15, 0.0  ;;  %1530 = vmatpush.msra.mxu1 %v4364_v8  ;;  %4369 = vst [vmem:[#allocation175_spill] sm:$0xff] %v3654_v10  ;;  %v1147_v15 = vmul.f32 %v3633_v56, %v3633_v56  ;;  %v4379_v8 = vld [vmem:[#allocation149_spill] sm:$0xff] }
 0x33a   : > { %1462 = vmatpush.msrb.mxu2 %v4365_v13  ;;  %v1149_v13 = vmul.f32 %v3654_v10, %v3654_v10 }
 0x33b   : > { %v3651_v43 = vadd.f32 %v1141_v6, %v1140_v7   ;;  %1531 = vmatpush.msra.mxu1 %v4368_v27  ;;  %v4378_v7 = vld [vmem:[#allocation142_spill] sm:$0xff]  ;;  %v1148_v6 = vmul.f32 %v3649_v16, %v3649_v16  ;;  %v4380_v27 = vld [vmem:[#allocation140_spill] sm:$0xff] }
 0x33c   : > { %1463 = vmatpush.msrb.mxu2 %v4370_v11  ;;  %v4375_v11 = vld [vmem:[#allocation157_spill] sm:$0xff] }
 0x33d   : > { %4367 = vst [vmem:[#allocation174_spill] sm:$0xff] %v3651_v43  ;;  %1282 = vmatmul.f32.vlgmr.msrb.gmra.mxu3 %v3649_v16  ;;  %1532 = vmatpush.msra.mxu1 %v4371_v62  ;;  %v4373_v43 = vld [vmem:[#allocation165_spill] sm:$0xff] }
 0x33e   : > { %1305 = vmatmul.f32.vlgmr.msra.gmra.mxu0 %v3654_v10  ;;  %1484 = vmatpush.msrb.mxu3 %v4372_v14 }
 0x33f   : > { %1262 = vmatmul.f32.gmra.mxu2 %v1147_v15  ;;  %1507 = vmatpush.msra.mxu0 %v4373_v43  ;;  %v4381_v15 = vld [vmem:[#allocation141_spill] sm:$0xff] }
 0x340   : > { %1331 = vmatmul.f32.gmra.mxu1 %v1150_v12  ;;  %1485 = vmatpush.msrb.mxu3 %v4374_v17 }
 0x341   : > { %1508 = vmatpush.msra.mxu0 %v4375_v11  ;;  %1464 = vmatpush.msrb.mxu2 %v4376_v2 }
 0x342   : > { %1486 = vmatpush.msrb.mxu3 %v4377_v18  ;;  %1533 = vmatpush.msra.mxu1 %v4378_v7 }
 0x343   : > { %1509 = vmatpush.msra.mxu0 %v4379_v8 }
 0x344   : > { %1487 = vmatpush.msrb.mxu3 %v4380_v27 }
 0x345   : > { %1285 = vmatmul.f32.gmra.mxu3 %v1148_v6  ;;  %1510 = vmatpush.msra.mxu0 %v4381_v15 }
 0x346   : > { %1308 = vmatmul.f32.gmra.mxu0 %v1149_v13 }
 0x3a5   : > { %v1237_v14 = vpop.f32.mrf.mxu1 }
 0x3aa   : > { %v1168_v62 = vpop.f32.mrf.mxu2 }
 0x3ab   : > { %v1214_v12 = vpop.f32.mrf.mxu0 }
 0x3ad   : > { %v1240_v18 = vpop.f32.mrf.mxu1 }
 0x3b0   : > { %v1191_v43 = vpop.f32.mrf.mxu3 }
 0x3b1   : > { %v1192_v11 = vadd.f32 %v1191_v43, %v1168_v62 }
 0x3b2   : > { %v1171_v17 = vpop.f32.mrf.mxu2 }
 0x3b3   : > { %v1217_v2 = vpop.f32.mrf.mxu0  ;;  %v1215_v20 = vadd.f32 %v1214_v12, %v1192_v11  ;;  %v4384_v11 = vld [vmem:[#allocation64_spill] sm:$0xff] }
 0x3b5   : > { %v1238_v16 = vadd.f32 %v1237_v14, %v1215_v20  ;;  %v1329_v15 = vpop.f32.mrf.mxu1  ;;  %v4382_v14 = vld [vmem:[#allocation45_spill] sm:$0xff] }
 0x3b8   : > { %v1194_v7 = vpop.f32.mrf.mxu3 }
 0x3b9   : > { %v1195_v4 = vadd.f32 %v1194_v7, %v1171_v17  ;;  %v4383_v17 = vld [vmem:[#allocation54_spill] sm:$0xff]  ;;  %v4386_v7 = vld [vmem:[#allocation44_spill] sm:$0xff] }
 0x3ba   : > { %v1260_v8 = vpop.f32.mrf.mxu2 }
 0x3bb   : > { %v1261_v56 = vadd.f32 %v1260_v8, %v1238_v16  ;;  %v1306_v3 = vpop.f32.mrf.mxu0  ;;  %v1218_v6 = vadd.f32 %v1217_v2, %v1195_v4  ;;  %v4387_v8 = vld [vmem:[#allocation53_spill] sm:$0xff] }
 0x3bd   : > { %v1241_v9 = vadd.f32 %v1240_v18, %v1218_v6  ;;  %v4385_v18 = vld [vmem:[#allocation35_spill] sm:$0xff] }
 0x3c0   : > { %v1283_v27 = vpop.f32.mrf.mxu3 }
 0x3c1   : > { %v1284_v10 = vadd.f32 %v1283_v27, %v1261_v56  ;;  %v4388_v27 = vld [vmem:[#allocation63_spill] sm:$0xff] }
 0x3c2   : > { %v1263_v44 = vpop.f32.mrf.mxu2 }
 0x3c3   : > { %v1307_v13 = vadd.f32 %v1306_v3, %v1284_v10  ;;  %v1264_v62 = vadd.f32 %v1263_v44, %v1241_v9  ;;  %v1309_v20 = vpop.f32.mrf.mxu0  ;;  %v1332_v9 = vpop.f32.mrf.mxu1 }
 0x3c5   : > { %v1330_v24 = vadd.f32 %v1329_v15, %v1307_v13  ;;  %v4389_v15 = vld [vmem:[#allocation34_spill] sm:$0xff]  ;;  %v4390_v13 = vld [vmem:[#allocation43_spill] sm:$0xff] }
 0x3c7   : > { %v3678_v42 = vmul.f32 0.03125, %v1330_v24 }
 0x3c8   : > { %v1286_v43 = vpop.f32.mrf.mxu3 }
 0x3c9   : > { %v1287_v25 = vadd.f32 %v1286_v43, %v1264_v62  ;;  %1955 = vmatmul.msk.f32.vlgmr.msra.gmra.mxu2 %vm360_vm1, %v3678_v42  ;;  %1957 = vmatmul.msk.f32.vlgmr.msra.gmra.mxu3 %vm360_vm1, %v3678_v42  ;;  %v4391_v62 = vld [vmem:[#allocation52_spill] sm:$0xff]  ;;  %v4392_v43 = vld [vmem:[#allocation62_spill] sm:$0xff] }
 0x3ca   : > { %1959 = vmatmul.msk.f32.vlgmr.msrb.gmra.mxu0 %vm360_vm1, %v3678_v42  ;;  %1961 = vmatmul.msk.f32.vlgmr.msrb.gmra.mxu1 %vm360_vm1, %v3678_v42 }
 0x3cb   : > { %v1310_v56 = vadd.f32 %v1309_v20, %v1287_v25  ;;  %1610 = vmatpush.msrb.mxu0 %v2477_v54  ;;  %1630 = vmatpush.msrb.mxu1 %v2557_v57  ;;  %v1337_v25 = vmul.f32 %v3678_v42, %v3678_v42 }
 0x3cc   : > { %1570 = vmatpush.msra.mxu2 %v2317_v36  ;;  %1590 = vmatpush.msra.mxu3 %v2397_v52 }
 0x3cd   : > { %v1333_v24 = vadd.f32 %v1332_v9, %v1310_v56  ;;  %1611 = vmatpush.msrb.mxu0 %v2472_v37  ;;  %1631 = vmatpush.msrb.mxu1 %v2552_v38  ;;  %v4393_v56 = vld [vmem:[#allocation33_spill] sm:$0xff]  ;;  %v4394_v9 = vld [vmem:[#allocation42_spill] sm:$0xff] }
 0x3ce   : > { %1571 = vmatpush.msra.mxu2 %v2312_v35  ;;  %1591 = vmatpush.msra.mxu3 %v2392_v51  ;;  %v2016_v35 = vld [vmem:[%s3930_s7] ss:$0 sm:$0xff] (%p884_p0) }
 0x3cf   : > { %v1336_v44 = vmul.f32 0.03125, %v1333_v24  ;;  %1612 = vmatpush.msrb.mxu0 %v2467_v53  ;;  %1632 = vmatpush.msrb.mxu1 %v2547_v40  ;;  %v4395_v24 = vld [vmem:[#allocation51_spill] sm:$0xff] }
 0x3d0   : > { %1572 = vmatpush.msra.mxu2 %v2307_v34  ;;  %1592 = vmatpush.msra.mxu3 %v2387_v50 }
 0x3d1   : > { %v1338_v3 = vsub.f32 %v1336_v44, %v1337_v25  ;;  %1613 = vmatpush.msrb.mxu0 %v2462_v19  ;;  %1633 = vmatpush.msrb.mxu1 %v2542_v23  ;;  %v4396_v44 = vld [vmem:[#allocation61_spill] sm:$0xff] }
 0x3d2   : > { %1573 = vmatpush.msra.mxu2 %v2302_v33  ;;  %1593 = vmatpush.msra.mxu3 %v2382_v49 }
 0x3d3   : > { %v1339_v16 = vmax.f32 %v1338_v3, 0.0  ;;  %1614 = vmatpush.msrb.mxu0 %v2457_v0  ;;  %1634 = vmatpush.msrb.mxu1 %v4237_v45  ;;  %v4397_v3 = vld [vmem:[#allocation32_spill] sm:$0xff] }
 0x3d4   : > { %1574 = vmatpush.msra.mxu2 %v2297_v32  ;;  %1594 = vmatpush.msra.mxu3 %v2377_v48 }
 0x3d5   : > { %v1340_v4 = vadd.f32 1e-05, %v1339_v16  ;;  %1615 = vmatpush.msrb.mxu0 %v2452_v63  ;;  %1635 = vmatpush.msrb.mxu1 %v4241_v55  ;;  %v4398_v16 = vld [vmem:[#allocation41_spill] sm:$0xff] }
 0x3d6   : > { %1575 = vmatpush.msra.mxu2 %v2292_v31  ;;  %1595 = vmatpush.msra.mxu3 %v2372_v47 }
 0x3d7   : > { %2014 = vrsqrt.f32 %v1340_v4  ;;  %1616 = vmatpush.msrb.mxu0 %v4236_v22  ;;  %1636 = vmatpush.msrb.mxu1 %v4245_v39  ;;  %vm1347_vm5 = vweird.f32 %v1340_v4 }
 0x3d8   : > { %1576 = vmatpush.msra.mxu2 %v2287_v30  ;;  %1596 = vmatpush.msra.mxu3 %v4234_v28 }
 0x3d9   : > { %1617 = vmatpush.msrb.mxu0 %v4240_v46  ;;  %1637 = vmatpush.msrb.mxu1 %v4249_v21 }
 0x3da   : > { %1577 = vmatpush.msra.mxu2 %v4235_v60  ;;  %1597 = vmatpush.msra.mxu3 %v4238_v41 }
 0x3db   : > { %1618 = vmatpush.msrb.mxu0 %v4244_v29  ;;  %1638 = vmatpush.msrb.mxu1 %v4253_v1  ;;  %v1742_v1 = vld [vmem:[%s3929_s6] sm:$0xff] (%p884_p0) }
 0x3dc   : > { %1578 = vmatpush.msra.mxu2 %v4239_v59  ;;  %1598 = vmatpush.msra.mxu3 %v4242_v61 }
 0x3dd   : > { %v2015_v10 = vpop.eup %2014  ;;  %1619 = vmatpush.msrb.mxu0 %v4248_v58  ;;  %1639 = vmatpush.msrb.mxu1 %v4257_v5 }
 0x3de   : > { %v1342_v12 = vmul.f32 %v2015_v10, %v1340_v4  ;;  %1579 = vmatpush.msra.mxu2 %v4243_v26  ;;  %1599 = vmatpush.msra.mxu3 %v4382_v14  ;;  %vm1348_vm4 = vweird.f32 %v2015_v10  ;;  %v4400_v14 = vld [vmem:[#allocation60_spill] sm:$0xff]  ;;  %v4403_v4 = vld [vmem:[#allocation49_spill] sm:$0xff] }
 0x3df   : > { %1620 = vmatpush.msrb.mxu0 %v4383_v17  ;;  %1640 = vmatpush.msrb.mxu1 %v4384_v11  ;;  %vm1349_vm6 = vmor %vm1347_vm5, %vm1348_vm4  ;;  %v4401_v11 = vld [vmem:[#allocation31_spill] sm:$0xff] }
 0x3e0   : > { %v1343_v2 = vmul.f32 %v2015_v10, %v1342_v12  ;;  %1580 = vmatpush.msra.mxu2 %v4385_v18  ;;  %1600 = vmatpush.msra.mxu3 %v4386_v7  ;;  %v4399_v12 = vld [vmem:[#allocation50_spill] sm:$0xff]  ;;  %v4404_v18 = vld [vmem:[#allocation59_spill] sm:$0xff] }
 0x3e1   : > { %1621 = vmatpush.msrb.mxu0 %v4387_v8  ;;  %1641 = vmatpush.msrb.mxu1 %v4388_v27  ;;  %v4405_v7 = vld [vmem:[#allocation30_spill] sm:$0xff]  ;;  %v4406_v8 = vld [vmem:[#allocation39_spill] sm:$0xff] }
 0x3e2   : > { %v1344_v6 = vmul.f32 0.5, %v1343_v2  ;;  %1581 = vmatpush.msra.mxu2 %v4389_v15  ;;  %1601 = vmatpush.msra.mxu3 %v4390_v13  ;;  %v4402_v2 = vld [vmem:[#allocation40_spill] sm:$0xff]  ;;  %v4408_v27 = vld [vmem:[#allocation134_spill] sm:$0xff]  ;;  %v4411_v13 = vld [vmem:[#allocation117_spill] sm:$0xff] }
 0x3e3   : > { %1622 = vmatpush.msrb.mxu0 %v4391_v62  ;;  %1642 = vmatpush.msrb.mxu1 %v4392_v43  ;;  %v4410_v15 = vld [vmem:[#allocation102_spill] sm:$0xff]  ;;  %v4412_v62 = vld [vmem:[#allocation133_spill] sm:$0xff] }
 0x3e4   : > { %v1345_v20 = vsub.f32 1.5, %v1344_v6  ;;  %1582 = vmatpush.msra.mxu2 %v4393_v56  ;;  %1602 = vmatpush.msra.mxu3 %v4394_v9  ;;  %v4409_v6 = vld [vmem:[#allocation86_spill] sm:$0xff]  ;;  %v4413_v43 = vld [vmem:[#allocation85_spill] sm:$0xff]  ;;  %v4415_v56 = vld [vmem:[#allocation116_spill] sm:$0xff] }
 0x3e5   : > { %1623 = vmatpush.msrb.mxu0 %v4395_v24  ;;  %1643 = vmatpush.msrb.mxu1 %v4396_v44  ;;  %v4416_v9 = vld [vmem:[#allocation132_spill] sm:$0xff]  ;;  %v4419_v44 = vld [vmem:[#allocation115_spill] sm:$0xff] }
 0x3e6   : > { %v1346_v25 = vmul.f32 %v2015_v10, %v1345_v20  ;;  %1583 = vmatpush.msra.mxu2 %v4397_v3  ;;  %1603 = vmatpush.msra.mxu3 %v4398_v16  ;;  %v4414_v20 = vld [vmem:[#allocation101_spill] sm:$0xff]  ;;  %v4418_v24 = vld [vmem:[#allocation100_spill] sm:$0xff]  ;;  %v4421_v3 = vld [vmem:[#allocation83_spill] sm:$0xff] }
 0x3e7   : > { %1624 = vmatpush.msrb.mxu0 %v4399_v12  ;;  %1644 = vmatpush.msrb.mxu1 %v4400_v14  ;;  %v4422_v16 = vld [vmem:[#allocation99_spill] sm:$0xff]  ;;  %v4423_v12 = vld [vmem:[#allocation114_spill] sm:$0xff] }
 0x3e8   : > { %v1350_v17 = vsel %vm1349_vm6, %v2015_v10, %v1346_v25  ;;  %1584 = vmatpush.msra.mxu2 %v4401_v11  ;;  %1604 = vmatpush.msra.mxu3 %v4402_v2  ;;  %v4407_v10 = vld [vmem:[#allocation118_spill] sm:$0xff]  ;;  %v4420_v25 = vld [vmem:[#allocation131_spill] sm:$0xff] }
 0x3e9   : > { %1956 = vmatmul.msk.f32.gmra.mxu2 %vm360_vm1, %v1350_v17  ;;  %1958 = vmatmul.msk.f32.gmra.mxu3 %vm360_vm1, %v1350_v17  ;;  %v4424_v14 = vld [vmem:[#allocation130_spill] sm:$0xff] }
 0x3ea   : > { %1960 = vmatmul.msk.f32.gmra.mxu0 %vm360_vm1, %v1350_v17  ;;  %1962 = vmatmul.msk.f32.gmra.mxu1 %vm360_vm1, %v1350_v17  ;;  %v4425_v11 = vld [vmem:[#allocation82_spill] sm:$0xff] }
 0x3eb   : > { %1625 = vmatpush.msrb.mxu0 %v4403_v4  ;;  %1645 = vmatpush.msrb.mxu1 %v4404_v18  ;;  %v4426_v2 = vld [vmem:[#allocation98_spill] sm:$0xff]  ;;  %v4427_v4 = vld [vmem:[#allocation113_spill] sm:$0xff] }
 0x3ec   : > { %1585 = vmatpush.msra.mxu2 %v4405_v7  ;;  %1605 = vmatpush.msra.mxu3 %v4406_v8  ;;  %v4428_v18 = vld [vmem:[#allocation129_spill] sm:$0xff]  ;;  %v4431_v8 = vld [vmem:[#allocation112_spill] sm:$0xff] }
 0x3ed   : > { %v4430_v7 = vld [vmem:[#allocation97_spill] sm:$0xff] }
 0x3f1   : > { %1963 = vmatmul.msk.f32.vlgmr.msrb.gmra.mxu2 %vm360_vm1, %v3678_v42  ;;  %1965 = vmatmul.msk.f32.vlgmr.msrb.gmra.mxu3 %vm360_vm1, %v3678_v42 }
 0x3f2   : > { %1967 = vmatmul.msk.f32.vlgmr.msra.gmra.mxu0 %vm360_vm1, %v3678_v42  ;;  %1969 = vmatmul.msk.f32.vlgmr.msra.gmra.mxu1 %vm360_vm1, %v3678_v42  ;;  %v4417_v42 = vld [vmem:[#allocation84_spill] sm:$0xff] }
 0x3f3   : > { %1690 = vmatpush.msra.mxu0 %v4407_v10  ;;  %1710 = vmatpush.msra.mxu1 %v4408_v27  ;;  %v4432_v10 = vld [vmem:[#allocation128_spill] sm:$0xff] }
 0x3f4   : > { %1650 = vmatpush.msrb.mxu2 %v4409_v6  ;;  %1670 = vmatpush.msrb.mxu3 %v4410_v15  ;;  %v4433_v27 = vld [vmem:[#allocation80_spill] sm:$0xff]  ;;  %v4435_v15 = vld [vmem:[#allocation111_spill] sm:$0xff] }
 0x3f5   : > { %1691 = vmatpush.msra.mxu0 %v4411_v13  ;;  %1711 = vmatpush.msra.mxu1 %v4412_v62  ;;  %v4434_v6 = vld [vmem:[#allocation96_spill] sm:$0xff]  ;;  %v4436_v13 = vld [vmem:[#allocation127_spill] sm:$0xff] }
 0x3f6   : > { %1651 = vmatpush.msrb.mxu2 %v4413_v43  ;;  %1671 = vmatpush.msrb.mxu3 %v4414_v20  ;;  %v4437_v62 = vld [vmem:[#allocation79_spill] sm:$0xff]  ;;  %v4439_v20 = vld [vmem:[#allocation110_spill] sm:$0xff] }
 0x3f7   : > { %1692 = vmatpush.msra.mxu0 %v4415_v56  ;;  %1712 = vmatpush.msra.mxu1 %v4416_v9  ;;  %v4438_v43 = vld [vmem:[#allocation95_spill] sm:$0xff]  ;;  %v4440_v56 = vld [vmem:[#allocation126_spill] sm:$0xff] }
 0x3f8   : > { %1652 = vmatpush.msrb.mxu2 %v4417_v42  ;;  %1672 = vmatpush.msrb.mxu3 %v4418_v24  ;;  %v4441_v9 = vld [vmem:[#allocation78_spill] sm:$0xff]  ;;  %v4443_v24 = vld [vmem:[#allocation109_spill] sm:$0xff] }
 0x3f9   : > { %1964 = vmatmul.msk.f32.gmra.mxu2 %vm360_vm1, %v1350_v17  ;;  %1966 = vmatmul.msk.f32.gmra.mxu3 %vm360_vm1, %v1350_v17  ;;  %v4442_v42 = vld [vmem:[#allocation94_spill] sm:$0xff] }
 0x3fa   : > { %1968 = vmatmul.msk.f32.gmra.mxu0 %vm360_vm1, %v1350_v17  ;;  %1970 = vmatmul.msk.f32.gmra.mxu1 %vm360_vm1, %v1350_v17  ;;  %v4429_v17 = vld [vmem:[#allocation81_spill] sm:$0xff] }
 0x3fb   : > { %1693 = vmatpush.msra.mxu0 %v4419_v44  ;;  %1713 = vmatpush.msra.mxu1 %v4420_v25  ;;  %v4444_v44 = vld [vmem:[#allocation125_spill] sm:$0xff] }
 0x3fc   : > { %1653 = vmatpush.msrb.mxu2 %v4421_v3  ;;  %1673 = vmatpush.msrb.mxu3 %v4422_v16  ;;  %v4445_v25 = vld [vmem:[#allocation77_spill] sm:$0xff]  ;;  %v4447_v16 = vld [vmem:[#allocation108_spill] sm:$0xff] }
 0x3fd   : > { %1694 = vmatpush.msra.mxu0 %v4423_v12  ;;  %1714 = vmatpush.msra.mxu1 %v4424_v14  ;;  %v4446_v3 = vld [vmem:[#allocation93_spill] sm:$0xff]  ;;  %v4448_v12 = vld [vmem:[#allocation124_spill] sm:$0xff] }
 0x3fe   : > { %1654 = vmatpush.msrb.mxu2 %v4425_v11  ;;  %1674 = vmatpush.msrb.mxu3 %v4426_v2  ;;  %v4449_v14 = vld [vmem:[#allocation76_spill] sm:$0xff]  ;;  %v4451_v2 = vld [vmem:[#allocation107_spill] sm:$0xff] }
 0x3ff   : > { %1695 = vmatpush.msra.mxu0 %v4427_v4  ;;  %1715 = vmatpush.msra.mxu1 %v4428_v18  ;;  %v4450_v11 = vld [vmem:[#allocation92_spill] sm:$0xff]  ;;  %v4452_v4 = vld [vmem:[#allocation123_spill] sm:$0xff] }
 0x400   : > { %1655 = vmatpush.msrb.mxu2 %v4429_v17  ;;  %1675 = vmatpush.msrb.mxu3 %v4430_v7  ;;  %v4453_v18 = vld [vmem:[#allocation75_spill] sm:$0xff]  ;;  %v4455_v7 = vld [vmem:[#allocation106_spill] sm:$0xff] }
 0x401   : > { %1696 = vmatpush.msra.mxu0 %v4431_v8  ;;  %1716 = vmatpush.msra.mxu1 %v4432_v10  ;;  %v4454_v17 = vld [vmem:[#allocation91_spill] sm:$0xff]  ;;  %v4456_v8 = vld [vmem:[#allocation122_spill] sm:$0xff] }
 0x402   : > { %1656 = vmatpush.msrb.mxu2 %v4433_v27  ;;  %1676 = vmatpush.msrb.mxu3 %v4434_v6  ;;  %v4457_v10 = vld [vmem:[#allocation74_spill] sm:$0xff]  ;;  %v4459_v6 = vld [vmem:[#allocation105_spill] sm:$0xff] }
 0x403   : > { %1697 = vmatpush.msra.mxu0 %v4435_v15  ;;  %1717 = vmatpush.msra.mxu1 %v4436_v13  ;;  %v4458_v27 = vld [vmem:[#allocation90_spill] sm:$0xff]  ;;  %v4460_v15 = vld [vmem:[#allocation121_spill] sm:$0xff] }
 0x404   : > { %1657 = vmatpush.msrb.mxu2 %v4437_v62  ;;  %1677 = vmatpush.msrb.mxu3 %v4438_v43  ;;  %v4461_v13 = vld [vmem:[#allocation73_spill] sm:$0xff]  ;;  %v4463_v43 = vld [vmem:[#allocation104_spill] sm:$0xff] }
 0x405   : > { %1698 = vmatpush.msra.mxu0 %v4439_v20  ;;  %1718 = vmatpush.msra.mxu1 %v4440_v56  ;;  %v4462_v62 = vld [vmem:[#allocation89_spill] sm:$0xff]  ;;  %v4464_v20 = vld [vmem:[#allocation120_spill] sm:$0xff] }
 0x406   : > { %1658 = vmatpush.msrb.mxu2 %v4441_v9  ;;  %1678 = vmatpush.msrb.mxu3 %v4442_v42  ;;  %v4465_v56 = vld [vmem:[#allocation72_spill] sm:$0xff]  ;;  %v4467_v42 = vld [vmem:[#allocation103_spill] sm:$0xff] }
 0x407   : > { %1699 = vmatpush.msra.mxu0 %v4443_v24  ;;  %1719 = vmatpush.msra.mxu1 %v4444_v44  ;;  %v4466_v9 = vld [vmem:[#allocation88_spill] sm:$0xff]  ;;  %v4468_v24 = vld [vmem:[#allocation119_spill] sm:$0xff] }
 0x408   : > { %1659 = vmatpush.msrb.mxu2 %v4445_v25  ;;  %1679 = vmatpush.msrb.mxu3 %v4446_v3  ;;  %v4469_v44 = vld [vmem:[#allocation71_spill] sm:$0xff] }
 0x409   : > { %1700 = vmatpush.msra.mxu0 %v4447_v16  ;;  %1720 = vmatpush.msra.mxu1 %v4448_v12  ;;  %v4470_v25 = vld [vmem:[#allocation87_spill] sm:$0xff]  ;;  %v2059_v12 = vmov 0  }
 0x40a   : > { %1660 = vmatpush.msrb.mxu2 %v4449_v14  ;;  %1680 = vmatpush.msrb.mxu3 %v4450_v11  ;;  %v908_v14 = vld [vmem:[%s907_s19] sm:$0xff] }
 0x40b   : > { %1701 = vmatpush.msra.mxu0 %v4451_v2  ;;  %1721 = vmatpush.msra.mxu1 %v4452_v4  ;;  %v4471_v4 = vld [vmem:[#allocation170_spill] sm:$0xff] }
 0x40c   : > { %1661 = vmatpush.msrb.mxu2 %v4453_v18  ;;  %1681 = vmatpush.msrb.mxu3 %v4454_v17  ;;  %v4472_v17 = vld [vmem:[#allocation168_spill] sm:$0xff] }
 0x40d   : > { %1702 = vmatpush.msra.mxu0 %v4455_v7  ;;  %1722 = vmatpush.msra.mxu1 %v4456_v8  ;;  %v899_v8 = vld [vmem:[%s3838_s20 + $0x10] sm:$0xff] }
 0x40e   : > { %1662 = vmatpush.msrb.mxu2 %v4457_v10  ;;  %1682 = vmatpush.msrb.mxu3 %v4458_v27  ;;  %v900_v27 = vld [vmem:[%s3838_s20 + $0x18] sm:$0xff] }
 0x40f   : > { %1703 = vmatpush.msra.mxu0 %v4459_v6  ;;  %1723 = vmatpush.msra.mxu1 %v4460_v15 }
 0x410   : > { %1663 = vmatpush.msrb.mxu2 %v4461_v13  ;;  %1683 = vmatpush.msrb.mxu3 %v4462_v62 }
 0x411   : > { %1704 = vmatpush.msra.mxu0 %v4463_v43  ;;  %1724 = vmatpush.msra.mxu1 %v4464_v20  ;;  %v4473_v20 = vld [vmem:[#allocation167_spill] sm:$0xff] }
 0x412   : > { %1664 = vmatpush.msrb.mxu2 %v4465_v56  ;;  %1684 = vmatpush.msrb.mxu3 %v4466_v9  ;;  %v4474_v9 = vld [vmem:[#allocation169_spill] sm:$0xff] }
 0x413   : > { %1705 = vmatpush.msra.mxu0 %v4467_v42  ;;  %1725 = vmatpush.msra.mxu1 %v4468_v24  ;;  %v897_v24 = vld [vmem:[%s3838_s20] sm:$0xff] }
 0x414   : > { %1665 = vmatpush.msrb.mxu2 %v4469_v44  ;;  %1685 = vmatpush.msrb.mxu3 %v4470_v25  ;;  %v898_v25 = vld [vmem:[%s3838_s20 + $0x8] sm:$0xff] }
 0x415   : > { %2013 = vset.pattern.permute.xlu0 %v2059_v12 }
 0x416   : > { %1567 = vperm.xlu0 %2013, %v908_v14  }
 0x447   : > { %v1420_v3 = vpop.f32.mrf.mxu0  ;;  %v1443_v16 = vpop.f32.mrf.mxu1 }
 0x448   : > { %v1543_v18 = vsub.f32 %v4471_v4, %v1420_v3  ;;  %v1544_v7 = vsub.f32 %v4472_v17, %v1443_v16 }
 0x44c   : > { %v1374_v11 = vpop.f32.mrf.mxu2  ;;  %v1397_v2 = vpop.f32.mrf.mxu3 }
 0x44d   : > { %v1541_v56 = vsub.f32 %v4473_v20, %v1374_v11  ;;  %v1542_v42 = vsub.f32 %v4474_v9, %v1397_v2  ;;  %v4475_v2 = vld [vmem:[#allocation175_spill] sm:$0xff] }
 0x467   : > { %v1423_v10 = vpop.f32.mrf.mxu0  ;;  %v1446_v6 = vpop.f32.mrf.mxu1 }
 0x468   : > { %v1551_v15 = vmul.f32 %v1543_v18, %v1423_v10  ;;  %v1552_v13 = vmul.f32 %v1544_v7, %v1446_v6  ;;  %v4476_v10 = vld [vmem:[#allocation172_spill] sm:$0xff]  ;;  %v903_v6 = vld [vmem:[%s3838_s20 + $0x30] sm:$0xff] }
 0x46a   : > { %v1559_v62 = vmul.f32 %v1551_v15, %v899_v8  ;;  %v1560_v43 = vmul.f32 %v1552_v13, %v900_v27  ;;  %v904_v13 = vld [vmem:[%s3838_s20 + $0x38] sm:$0xff] }
 0x46c   : > { %1626 = vmatmul.f32.vlgmr.msrb.gmra.mxu0 %v1559_v62  ;;  %1646 = vmatmul.f32.vlgmr.msrb.gmra.mxu1 %v1560_v43  ;;  %v1377_v44 = vpop.f32.mrf.mxu2  ;;  %v1400_v3 = vpop.f32.mrf.mxu3 }
 0x46d   : > { %v1549_v16 = vmul.f32 %v1541_v56, %v1377_v44  ;;  %v1550_v12 = vmul.f32 %v1542_v42, %v1400_v3  ;;  %v4477_v42 = vld [vmem:[#allocation171_spill] sm:$0xff]  ;;  %v4478_v44 = vld [vmem:[#allocation173_spill] sm:$0xff]  ;;  %v901_v3 = vld [vmem:[%s3838_s20 + $0x20] sm:$0xff] }
 0x46f   : > { %v1557_v14 = vmul.f32 %v1549_v16, %v897_v24  ;;  %v1558_v4 = vmul.f32 %v1550_v12, %v898_v25  ;;  %v1512_v18 = vpop.f32.mrf.mxu0  ;;  %v1535_v17 = vpop.f32.mrf.mxu1  ;;  %v902_v12 = vld [vmem:[%s3838_s20 + $0x28] sm:$0xff] }
 0x470   : > { %v1547_v8 = vsub.f32 %v4475_v2, %v1512_v18  ;;  %v1548_v27 = vsub.f32 %v4476_v10, %v1535_v17 }
 0x471   : > { %1586 = vmatmul.f32.vlgmr.msra.gmra.mxu2 %v1557_v14  ;;  %1606 = vmatmul.f32.vlgmr.msra.gmra.mxu3 %v1558_v4 }
 0x474   : > { %v1466_v7 = vpop.f32.mrf.mxu2  ;;  %v1489_v11 = vpop.f32.mrf.mxu3 }
 0x475   : > { %v1545_v24 = vsub.f32 %v4477_v42, %v1466_v7  ;;  %v1546_v25 = vsub.f32 %v4478_v44, %v1489_v11 }
 0x477   : > { %v1515_v15 = vpop.f32.mrf.mxu0  ;;  %v1538_v62 = vpop.f32.mrf.mxu1 }
 0x478   : > { %v1555_v43 = vmul.f32 %v1547_v8, %v1515_v15  ;;  %v1556_v20 = vmul.f32 %v1548_v27, %v1538_v62 }
 0x47a   : > { %v1563_v56 = vmul.f32 %v1555_v43, %v903_v6  ;;  %v1564_v9 = vmul.f32 %v1556_v20, %v904_v13 }
 0x47c   : > { %1706 = vmatmul.f32.vlgmr.msra.gmra.mxu0 %v1563_v56  ;;  %1726 = vmatmul.f32.vlgmr.msra.gmra.mxu1 %v1564_v9  ;;  %v1469_v16 = vpop.f32.mrf.mxu2  ;;  %v1492_v14 = vpop.f32.mrf.mxu3 }
 0x47d   : > { %v1553_v4 = vmul.f32 %v1545_v24, %v1469_v16  ;;  %v1554_v18 = vmul.f32 %v1546_v25, %v1492_v14  ;;  %v1745_v14 = vld [vmem:[%s3929_s6 + $0x18] sm:$0xff] (%p884_p0) }
 0x47e   :  { %1983 = vmatpush.msra.mxu2 (%p884_p0), %v1745_v14  ;;  %1984 = vmatpush.msra.mxu3 (%p884_p0), %v1745_v14 }
 0x47f   : > { %v1561_v17 = vmul.f32 %v1553_v4, %v901_v3  ;;  %v1562_v2 = vmul.f32 %v1554_v18, %v902_v12  ;;  %v891_v3 = vld [vmem:[%s890_s3] sm:$0xff]  ;;  %v1744_v4 = vld [vmem:[%s3929_s6 + $0x10] sm:$0xff] (%p884_p0)  ;;  %1786 = vmatpush.msra.mxu0 (%p884_p0), %v1745_v14  ;;  %1982 = vmatpush.msra.mxu1 (%p884_p0), %v1745_v14 }
 0x480   :  { %v4480_v18 = vld [vmem:[#allocation174_spill] sm:$0xff] (%p884_p0)  ;;  %1986 = vmatpush.msra.mxu2 (%p884_p0), %v1744_v4  ;;  %1987 = vmatpush.msra.mxu3 (%p884_p0), %v1744_v4 }
 0x481   : > { %1666 = vmatmul.f32.vlgmr.msrb.gmra.mxu2 %v1561_v17  ;;  %1686 = vmatmul.f32.vlgmr.msrb.gmra.mxu3 %v1562_v2  ;;  %1823 = vst.msk [vmem:[#allocation7] sm:$0xff] (%p884_p0), %vm369_vm2, %v4480_v18  ;;  %v1743_v17 = vld [vmem:[%s3929_s6 + $0x8] sm:$0xff] (%p884_p0)  ;;  %s2060_s6 = smov (%p884_p0), [#allocation7]  }
 0x482   :  { %1787 = vmatpush.msra.mxu0 (%p884_p0), %v1744_v4  ;;  %1985 = vmatpush.msra.mxu1 (%p884_p0), %v1744_v4  ;;  %s1831_s26 = sshll.u32 (%p884_p0), %s2060_s6, 4  ;;  %s1832_s26 = int_to_ptr.vmem [resolvable:$true] %s1831_s26 }
 0x483   :  { %1989 = vmatpush.msra.mxu2 (%p884_p0), %v1743_v17  ;;  %1990 = vmatpush.msra.mxu3 (%p884_p0), %v1743_v17  ;;  %1836 = dma.vmem_to_hbm [thread:$0]  (%p884_p0), %s1832_s26, 128, %s1834_s27, [#allocation8]  }
 0x484   :  { %1788 = vmatpush.msra.mxu0 (%p884_p0), %v1743_v17  ;;  %1988 = vmatpush.msra.mxu1 (%p884_p0), %v1743_v17 }
 0x485   :  { %1992 = vmatpush.msra.mxu2 (%p884_p0), %v1742_v1  ;;  %1993 = vmatpush.msra.mxu3 (%p884_p0), %v1742_v1 }
 0x486   :  { %1789 = vmatpush.msra.mxu0 (%p884_p0), %v1742_v1  ;;  %1991 = vmatpush.msra.mxu1 (%p884_p0), %v1742_v1 }
 0x488   : > { %v1568_v8 = vpop.permute.xlu0 %1567 }
 0x4e9   : > { %v1627_v15 = vpop.f32.mrf.mxu0  ;;  %v1647_v13 = vpop.f32.mrf.mxu1 }
 0x4f4   : > { %v1587_v10 = vpop.f32.mrf.mxu2  ;;  %v1607_v6 = vpop.f32.mrf.mxu3 }
 0x4f5   : > { %v1588_v27 = vadd.f32 %v1587_v10, %v1568_v8 }
 0x4f7   : > { %v1608_v7 = vadd.f32 %v1607_v6, %v1588_v27 }
 0x4f9   : > { %v1628_v11 = vadd.f32 %v1627_v15, %v1608_v7  ;;  %v1707_v42 = vpop.f32.mrf.mxu0  ;;  %v1727_v44 = vpop.f32.mrf.mxu1 }
 0x4fb   : > { %v1648_v62 = vadd.f32 %v1647_v13, %v1628_v11 }
 0x504   : > { %v1667_v43 = vpop.f32.mrf.mxu2  ;;  %v1687_v56 = vpop.f32.mrf.mxu3 }
 0x505   : > { %v1668_v20 = vadd.f32 %v1667_v43, %v1648_v62  ;;  %v4479_v43 = vld [vmem:[#allocation174_spill] sm:$0xff] }
 0x507   : > { %v1688_v9 = vadd.f32 %v1687_v56, %v1668_v20 }
 0x509   : > { %v1708_v24 = vadd.f32 %v1707_v42, %v1688_v9 }
 0x50b   : > { %v1728_v25 = vadd.f32 %v1727_v44, %v1708_v24 }
 0x50d   : > { %v1730_v16 = vmax.f32 %v1728_v25, 0.0  ;;  %886 = sbr.rel (!%p884_p0) target bundleno = 541 (0x21d), region = 92 }
 0x50f   : > { %v1731_v12 = vadd.f32 %v1730_v16, %v891_v3 }
 0x511   : > { %1733 = vst.msk [vmem:[%s1732_s21] sm:$0xff] %vm360_vm1, %v1731_v12 }
 0x518   :  { %v1738_v5 = vld [vmem:[#allocation6 + $0x20] sm:$0xff]  ;;  %v1740_v19 = vld [vmem:[#allocation6 + $0x30] sm:$0xff]  ;;  %v1739_v31 = vld [vmem:[#allocation6 + $0x28] sm:$0xff] }
 0x519   :  { %v1734_v23 = vld [vmem:[#allocation6] sm:$0xff]  ;;  %v1736_v30 = vld [vmem:[#allocation6 + $0x10] sm:$0xff]  ;;  %1975 = vmatmul.msk.f32.vlgmr.msra.gmra.mxu2 %vm360_vm1, %v1738_v5  ;;  %1977 = vmatmul.msk.f32.vlgmr.msra.gmra.mxu3 %vm360_vm1, %v1740_v19  ;;  %v1741_v32 = vld [vmem:[#allocation6 + $0x38] sm:$0xff] }
 0x51a   :  { %1971 = vmatmul.msk.f32.vlgmr.msra.gmra.mxu0 %vm360_vm1, %v1734_v23  ;;  %1973 = vmatmul.msk.f32.vlgmr.msra.gmra.mxu1 %vm360_vm1, %v1736_v30  ;;  %v1735_v33 = vld [vmem:[#allocation6 + $0x8] sm:$0xff]  ;;  %v1737_v34 = vld [vmem:[#allocation6 + $0x18] sm:$0xff] }
 0x521   :  { %1976 = vmatmul.msk.f32.gmra.mxu2 %vm360_vm1, %v1739_v31  ;;  %1978 = vmatmul.msk.f32.gmra.mxu3 %vm360_vm1, %v1741_v32 }
 0x522   :  { %1972 = vmatmul.msk.f32.gmra.mxu0 %vm360_vm1, %v1735_v33  ;;  %1974 = vmatmul.msk.f32.gmra.mxu1 %vm360_vm1, %v1737_v34 }
 0x597   :  { %v1791_v36 = vpop.f32.mrf.mxu0  ;;  %v1797_v37 = vpop.f32.mrf.mxu1 }
 0x598   :  { %v1792_v38 = vadd.f32 %v2016_v35, %v1791_v36  ;;  %v1798_v40 = vadd.f32 %v2016_v35, %v1797_v37 }
 0x59a   :  { %1815 = vst.msk [vmem:[%s3936_s13] sm:$0xff] %vm245_vm0, %v1792_v38 }
 0x59b   :  { %1817 = vst.msk [vmem:[%s3936_s13 + $0x10] sm:$0xff] %vm245_vm0, %v1798_v40 }
 0x59c   :  { %v1803_v47 = vpop.f32.mrf.mxu2  ;;  %v1809_v48 = vpop.f32.mrf.mxu3 }
 0x59d   :  { %v1804_v49 = vadd.f32 %v2016_v35, %v1803_v47  ;;  %v1810_v50 = vadd.f32 %v2016_v35, %v1809_v48 }
 0x59f   :  { %1819 = vst.msk [vmem:[%s3936_s13 + $0x20] sm:$0xff] %vm245_vm0, %v1804_v49  ;;  %v1794_v51 = vpop.f32.mrf.mxu0  ;;  %v1800_v52 = vpop.f32.mrf.mxu1 }
 0x5a0   :  { %1821 = vst.msk [vmem:[%s3936_s13 + $0x30] sm:$0xff] %vm245_vm0, %v1810_v50  ;;  %v1795_v53 = vadd.f32 %v2016_v35, %v1794_v51  ;;  %v1801_v54 = vadd.f32 %v2016_v35, %v1800_v52 }
 0x5a2   :  { %1816 = vst.msk [vmem:[%s3936_s13 + $0x8] sm:$0xff] %vm245_vm0, %v1795_v53 }
 0x5a3   :  { %1818 = vst.msk [vmem:[%s3936_s13 + $0x18] sm:$0xff] %vm245_vm0, %v1801_v54 }
 0x5a4   :  { %v1806_v57 = vpop.f32.mrf.mxu2  ;;  %v1812_v63 = vpop.f32.mrf.mxu3 }
 0x5a5   :  { %v1807_v0 = vadd.f32 %v2016_v35, %v1806_v57  ;;  %v1813_v28 = vadd.f32 %v2016_v35, %v1812_v63 }
 0x5a7   :  { %1820 = vst.msk [vmem:[%s3936_s13 + $0x28] sm:$0xff] %vm245_vm0, %v1807_v0 }
 0x5a8   :  { %1822 = vst.msk [vmem:[%s3936_s13 + $0x38] sm:$0xff] %vm245_vm0, %v1813_v28 }
 0x5a9   :  { %2049 = dma.done.wait [#allocation8], 128  }
 0x5aa   :  { %2050 = vsyncadd [#allocation8], 4294967168 }
 0x5ab   :  { %1843 = vsyncpa [#allocation8], 1 }

</bundles_post_ra>
